<compile_context>
chip_gen: v7x
topology: tpu7x:2x2x1
jax: 0.10.0
libtpu: 0.0.40
codegen_flags: <defaults>
</compile_context>

<pallas_src>
import math
from functools import partial

import jax
import jax.numpy as jnp
from jax.experimental import pallas as pl
from jax.experimental.pallas import tpu as pltpu

LEAKY_SLOPE = 0.2
_BLUR = (1.0, 2.0, 1.0, 2.0, 4.0, 2.0, 1.0, 2.0, 1.0)   # [1,2,1] x [1,2,1], /16


# ------------------------------ kernel A ---------------------------------
def _make_main_kernel(H, W):
    """Fused: conv1(3x3,pad1)+leaky -> conv2(3x3,pad1)+leaky -> 3x3 reflect blur."""

    def kernel(xp_ref, w1_ref, b1_ref, w2_ref, b2_ref, o_ref, pad_ref):
        Cin = xp_ref.shape[-1]
        Cmid = w1_ref.shape[-1]

        def conv3x3_leaky(src_ref, squeeze_lead, w_ref, b_ref, cin):
            # sum of 9 shifted matmuls, bf16 MXU operands, f32 accumulate.
            acc = jnp.zeros((H * W, w_ref.shape[-1]), jnp.float32)
            for kh in range(3):
                for kw in range(3):
                    if squeeze_lead:
                        win = src_ref[0, kh:kh + H, kw:kw + W, :]
                    else:
                        win = src_ref[kh:kh + H, kw:kw + W, :]
                    win = win.reshape(H * W, cin).astype(jnp.bfloat16)
                    acc = acc + jnp.dot(
                        win, w_ref[kh * 3 + kw].astype(jnp.bfloat16),
                        preferred_element_type=jnp.float32)
            acc = acc + b_ref[...]
            return jnp.maximum(acc, LEAKY_SLOPE * acc)      # leaky_relu(0.2)

        # ---- conv1 + leaky (input already zero-padded by the wrapper) ----
        act1 = conv3x3_leaky(xp_ref, True, w1_ref, b1_ref, Cin)

        # ---- zero-pad act1 into VMEM scratch, then conv2 + leaky ----
        pad_ref[...] = jnp.zeros_like(pad_ref)
        pad_ref[1:H + 1, 1:W + 1, :] = act1.reshape(H, W, Cmid)
        act2 = conv3x3_leaky(pad_ref, False, w2_ref, b2_ref, Cmid)
        act2 = act2.reshape(H, W, Cmid)

        # ---- reflect-pad act2 into the (reused) scratch (kornia filter2D) ----
        pad_ref[1:H + 1, 1:W + 1, :] = act2
        pad_ref[1:H + 1, 0:1, :] = act2[:, 1:2, :]
        pad_ref[1:H + 1, W + 1:W + 2, :] = act2[:, W - 2:W - 1, :]
        pad_ref[0:1, :, :] = pad_ref[2:3, :, :]
        pad_ref[H + 1:H + 2, :, :] = pad_ref[H - 1:H, :, :]

        # ---- depthwise 3x3 blur: 9 shifted weighted adds ----
        bacc = jnp.zeros((H, W, Cmid), jnp.float32)
        for t in range(9):
            kh, kw = divmod(t, 3)
            bacc = bacc + (_BLUR[t] / 16.0) * pad_ref[kh:kh + H, kw:kw + W, :]
        o_ref[0] = bacc.astype(o_ref.dtype)

    return kernel


# ------------------------------ kernel B ---------------------------------
def _make_downsample_kernel(H2, W2):
    """3x3 stride-2 conv (parity planes) + 1x1 stride-2 residual + /sqrt(2)."""
    inv_sqrt2 = 1.0 / math.sqrt(2.0)

    def kernel(p00_ref, p01_ref, p10_ref, p11_ref, xs_ref,
               w3_ref, b3_ref, wres_ref, bres_ref, o_ref):
        Cmid = w3_ref.shape[-1]
        Cin = wres_ref.shape[0]
        planes = ((p00_ref, p01_ref), (p10_ref, p11_ref))

        acc = jnp.zeros((H2 * W2, Cmid), jnp.float32)
        for kh in range(3):
            for kw in range(3):
                pref = planes[kh % 2][kw % 2]        # plane[i,j] = pad[2i+rp,2j+cp]
                r0, c0 = kh // 2, kw // 2
                win = pref[0, r0:r0 + H2, c0:c0 + W2, :]
                win = win.reshape(H2 * W2, Cmid).astype(jnp.bfloat16)
                acc = acc + jnp.dot(
                    win, w3_ref[kh * 3 + kw].astype(jnp.bfloat16),
                    preferred_element_type=jnp.float32)
        acc = acc + b3_ref[...]

        # residual: 1x1 conv with stride 2 (input already subsampled)
        xs = xs_ref[0].reshape(H2 * W2, Cin).astype(jnp.bfloat16)
        res = jnp.dot(xs, wres_ref[...].astype(jnp.bfloat16),
                      preferred_element_type=jnp.float32) + bres_ref[...]

        o_ref[0] = ((acc + res) * inv_sqrt2).astype(o_ref.dtype)

    return kernel


# ------------------------------ wrapper ----------------------------------
def _taps(w):
    # torch OIHW (Cout, Cin, 3, 3) -> (9, Cin, Cout), tap index = kh*3 + kw
    co, ci = w.shape[0], w.shape[1]
    return jnp.transpose(w, (2, 3, 1, 0)).reshape(9, ci, co)


@partial(jax.jit, static_argnames=("downsample",))
def discriminator_block_forward(params, x_nchw, downsample=True):
    # TODO(synk): downsample=False variant (stride-1 conv_res, no blur/conv3)
    # is not implemented; default path (downsample=True) only.
    assert downsample
    x = jnp.transpose(x_nchw, (0, 2, 3, 1)).astype(jnp.float32)     # NHWC
    B, H, W, Cin = x.shape
    Cmid = params["conv1_w"].shape[0]
    H2, W2 = H // 2, W // 2

    w1, b1 = _taps(params["conv1_w"]), params["conv1_b"].reshape(1, Cmid)
    w2, b2 = _taps(params["conv2_w"]), params["conv2_b"].reshape(1, Cmid)
    w3, b3 = _taps(params["conv3_w"]), params["conv3_b"].reshape(1, Cmid)
    wres = params["conv_res_w"].reshape(Cmid, Cin).T
    bres = params["conv_res_b"].reshape(1, Cmid)

    cparams = pltpu.CompilerParams(dimension_semantics=("parallel",),
                                   vmem_limit_bytes=32 * 1024 * 1024)

    # ---- kernel A: conv1 + leaky + conv2 + leaky + blur (all in VMEM) ----
    xp = jnp.pad(x, ((0, 0), (1, 1), (1, 1), (0, 0)))
    blurred = pl.pallas_call(
        _make_main_kernel(H, W),
        out_shape=jax.ShapeDtypeStruct((B, H, W, Cmid), jnp.float32),
        grid=(B,),
        in_specs=[
            pl.BlockSpec((1, H + 2, W + 2, Cin), lambda b: (b, 0, 0, 0)),
            pl.BlockSpec((9, Cin, Cmid), lambda b: (0, 0, 0)),
            pl.BlockSpec((1, Cmid), lambda b: (0, 0)),
            pl.BlockSpec((9, Cmid, Cmid), lambda b: (0, 0, 0)),
            pl.BlockSpec((1, Cmid), lambda b: (0, 0)),
        ],
        out_specs=pl.BlockSpec((1, H, W, Cmid), lambda b: (b, 0, 0, 0)),
        scratch_shapes=[pltpu.VMEM((H + 2, W + 2, Cmid), jnp.float32)],
        compiler_params=cparams,
    )(xp, w1, b1, w2, b2)

    # ---- thin XLA glue: zero-pad + stride-2 parity split of the blurred map ----
    bz = jnp.pad(blurred, ((0, 0), (1, 1), (1, 1), (0, 0)))
    p00 = bz[:, 0::2, 0::2, :]
    p01 = bz[:, 0::2, 1::2, :]
    p10 = bz[:, 1::2, 0::2, :]
    p11 = bz[:, 1::2, 1::2, :]
    xs = x[:, ::2, ::2, :]                      # input for 1x1 stride-2 residual

    # ---- kernel B: stride-2 3x3 conv + residual + (x+res)/sqrt(2) ----
    plane_spec = pl.BlockSpec((1, H2 + 1, W2 + 1, Cmid), lambda b: (b, 0, 0, 0))
    out = pl.pallas_call(
        _make_downsample_kernel(H2, W2),
        out_shape=jax.ShapeDtypeStruct((B, H2 * W2, Cmid), jnp.float32),
        grid=(B,),
        in_specs=[
            plane_spec, plane_spec, plane_spec, plane_spec,
            pl.BlockSpec((1, H2, W2, Cin), lambda b: (b, 0, 0, 0)),
            pl.BlockSpec((9, Cmid, Cmid), lambda b: (0, 0, 0)),
            pl.BlockSpec((1, Cmid), lambda b: (0, 0)),
            pl.BlockSpec((Cin, Cmid), lambda b: (0, 0)),
            pl.BlockSpec((1, Cmid), lambda b: (0, 0)),
        ],
        out_specs=pl.BlockSpec((1, H2 * W2, Cmid), lambda b: (b, 0, 0)),
        compiler_params=cparams,
    )(p00, p01, p10, p11, xs, w3, b3, wres, bres)

    out = out.reshape(B, H2, W2, Cmid)
    return jnp.transpose(out, (0, 3, 1, 2))      # back to NCHW


# --------------------------- reference (pure JAX) -------------------------
def _reference_forward(params, x_nchw):
    dn = ("NCHW", "OIHW", "NCHW")

    def conv(x, w, b, stride, padding):
        y = jax.lax.conv_general_dilated(x, w, (stride, stride), padding,
                                         dimension_numbers=dn)
        return y + b.reshape(1, -1, 1, 1)

    x = x_nchw.astype(jnp.float32)
    res = conv(x, params["conv_res_w"], params["conv_res_b"], 2, "VALID")
    y = conv(x, params["conv1_w"], params["conv1_b"], 1, ((1, 1), (1, 1)))
    y = jnp.where(y >= 0, y, LEAKY_SLOPE * y)
    y = conv(y, params["conv2_w"], params["conv2_b"], 1, ((1, 1), (1, 1)))
    y = jnp.where(y >= 0, y, LEAKY_SLOPE * y)
    # Blur: depthwise [1,2,1]x[1,2,1]/16 with reflect padding (kornia filter2D)
    C = y.shape[1]
    f = jnp.array([1.0, 2.0, 1.0])
    kd = jnp.broadcast_to((f[:, None] * f[None, :]) / 16.0, (C, 1, 3, 3))
    yp = jnp.pad(y, ((0, 0), (0, 0), (1, 1), (1, 1)), mode="reflect")
    y = jax.lax.conv_general_dilated(yp, kd, (1, 1), "VALID",
                                     dimension_numbers=dn,
                                     feature_group_count=C)
    y = conv(y, params["conv3_w"], params["conv3_b"], 2, ((1, 1), (1, 1)))
    return (y + res) * (1.0 / math.sqrt(2.0))


def init_params(key, in_channels, filters):
    ks = jax.random.split(key, 8)

    def conv_w(k, co, ci, ksz):
        fan_in = ci * ksz * ksz
        return (math.sqrt(2.0 / fan_in)
                * jax.random.normal(k, (co, ci, ksz, ksz))).astype(jnp.float32)

    def conv_b(k, co):
        return (0.05 * jax.random.normal(k, (co,))).astype(jnp.float32)

    return {
        "conv_res_w": conv_w(ks[0], filters, in_channels, 1),
        "conv_res_b": conv_b(ks[1], filters),
        "conv1_w": conv_w(ks[2], filters, in_channels, 3),
        "conv1_b": conv_b(ks[3], filters),
        "conv2_w": conv_w(ks[4], filters, filters, 3),
        "conv2_b": conv_b(ks[5], filters),
        "conv3_w": conv_w(ks[6], filters, filters, 3),
        "conv3_b": conv_b(ks[7], filters),
    }


if __name__ == "__main__":
    key = jax.random.PRNGKey(0)
    kp, kx = jax.random.split(key)
    B, IN_CH, FILTERS, SIZE = 2, 16, 32, 16

    params = init_params(kp, IN_CH, FILTERS)
    x = jax.random.normal(kx, (B, IN_CH, SIZE, SIZE), jnp.float32)

    out = discriminator_block_forward(params, x)
    out = jax.block_until_ready(out)

    assert out.shape == (B, FILTERS, SIZE // 2, SIZE // 2), out.shape
    assert bool(jnp.all(jnp.isfinite(out)))

    # bf16 MXU operands + f32 accumulation: allow small drift vs f32 reference.
    ref = _reference_forward(params, x)
    max_err = float(jnp.max(jnp.abs(out - ref)))
    assert max_err < 2e-1, f"mismatch vs reference: max |err| = {max_err}"
    print("KERNEL_OK")
</pallas_src>

<mosaic_0001>
module attributes {stable_mosaic.version = 11 : i64} {
  func.func @kernel(%arg0: i32, %arg1: memref<1x18x18x16xf32, #tpu.memory_space<vmem>>, %arg2: memref<9x16x32xf32, #tpu.memory_space<vmem>>, %arg3: memref<1x32xf32, #tpu.memory_space<vmem>>, %arg4: memref<9x32x32xf32, #tpu.memory_space<vmem>>, %arg5: memref<1x32xf32, #tpu.memory_space<vmem>>, %arg6: memref<1x16x16x32xf32, #tpu.memory_space<vmem>>, %arg7: memref<18x18x32xf32, #tpu.memory_space<vmem>>) attributes {dimension_semantics = [#tpu.dimension_semantics<parallel>], iteration_bounds = array<i64: 2>, scalar_prefetch = 0 : i64, scratch_operands = 1 : i64, tpu.core_type = #tpu.core_type<tc>, window_params = [{transform_indices = @transform_0, window_bounds = array<i64: 1, 18, 18, 16>}, {pipeline_mode = #tpu.pipeline_mode<synchronous>, transform_indices = @transform_1, window_bounds = array<i64: 9, 16, 32>}, {pipeline_mode = #tpu.pipeline_mode<synchronous>, transform_indices = @transform_2, window_bounds = array<i64: 1, 32>}, {pipeline_mode = #tpu.pipeline_mode<synchronous>, transform_indices = @transform_3, window_bounds = array<i64: 9, 32, 32>}, {pipeline_mode = #tpu.pipeline_mode<synchronous>, transform_indices = @transform_4, window_bounds = array<i64: 1, 32>}, {transform_indices = @transform_5, window_bounds = array<i64: 1, 16, 16, 32>}]} {
    %cst = arith.constant 0.000000e+00 : f32
    %0 = vector.broadcast %cst : f32 to vector<256x32xf32>
    %c0 = arith.constant 0 : index
    %c0_0 = arith.constant 0 : index
    %c0_1 = arith.constant 0 : index
    %c0_2 = arith.constant 0 : index
    %1 = vector.load %arg1[%c0, %c0_0, %c0_1, %c0_2] : memref<1x18x18x16xf32, #tpu.memory_space<vmem>>, vector<1x16x16x16xf32>
    %2 = vector.shape_cast %1 : vector<1x16x16x16xf32> to vector<16x16x16xf32>
    %3 = vector.shape_cast %2 : vector<16x16x16xf32> to vector<256x16xf32>
    %4 = arith.truncf %3 : vector<256x16xf32> to vector<256x16xbf16>
    %c0_3 = arith.constant 0 : index
    %c0_4 = arith.constant 0 : index
    %c0_5 = arith.constant 0 : index
    %5 = vector.load %arg2[%c0_3, %c0_4, %c0_5] : memref<9x16x32xf32, #tpu.memory_space<vmem>>, vector<1x16x32xf32>
    %6 = vector.shape_cast %5 : vector<1x16x32xf32> to vector<16x32xf32>
    %7 = arith.truncf %6 : vector<16x32xf32> to vector<16x32xbf16>
    %cst_6 = arith.constant dense<0.000000e+00> : vector<256x32xf32>
    %8 = tpu.matmul %4, %7, %cst_6 {dimension_numbers = #tpu.dot_dimension_numbers<[1], [0], [0], [1], [0, 0, 1, 1], [], []>} : vector<256x16xbf16>, vector<16x32xbf16>, vector<256x32xf32> -> vector<256x32xf32>
    %9 = arith.addf %0, %8 : vector<256x32xf32>
    %c0_7 = arith.constant 0 : index
    %c0_8 = arith.constant 0 : index
    %c1 = arith.constant 1 : index
    %c0_9 = arith.constant 0 : index
    %10 = vector.load %arg1[%c0_7, %c0_8, %c1, %c0_9] : memref<1x18x18x16xf32, #tpu.memory_space<vmem>>, vector<1x16x16x16xf32>
    %11 = vector.shape_cast %10 : vector<1x16x16x16xf32> to vector<16x16x16xf32>
    %12 = vector.shape_cast %11 : vector<16x16x16xf32> to vector<256x16xf32>
    %13 = arith.truncf %12 : vector<256x16xf32> to vector<256x16xbf16>
    %c1_10 = arith.constant 1 : index
    %c0_11 = arith.constant 0 : index
    %c0_12 = arith.constant 0 : index
    %14 = vector.load %arg2[%c1_10, %c0_11, %c0_12] : memref<9x16x32xf32, #tpu.memory_space<vmem>>, vector<1x16x32xf32>
    %15 = vector.shape_cast %14 : vector<1x16x32xf32> to vector<16x32xf32>
    %16 = arith.truncf %15 : vector<16x32xf32> to vector<16x32xbf16>
    %cst_13 = arith.constant dense<0.000000e+00> : vector<256x32xf32>
    %17 = tpu.matmul %13, %16, %cst_13 {dimension_numbers = #tpu.dot_dimension_numbers<[1], [0], [0], [1], [0, 0, 1, 1], [], []>} : vector<256x16xbf16>, vector<16x32xbf16>, vector<256x32xf32> -> vector<256x32xf32>
    %18 = arith.addf %9, %17 : vector<256x32xf32>
    %c0_14 = arith.constant 0 : index
    %c0_15 = arith.constant 0 : index
    %c2 = arith.constant 2 : index
    %c0_16 = arith.constant 0 : index
    %19 = vector.load %arg1[%c0_14, %c0_15, %c2, %c0_16] : memref<1x18x18x16xf32, #tpu.memory_space<vmem>>, vector<1x16x16x16xf32>
    %20 = vector.shape_cast %19 : vector<1x16x16x16xf32> to vector<16x16x16xf32>
    %21 = vector.shape_cast %20 : vector<16x16x16xf32> to vector<256x16xf32>
    %22 = arith.truncf %21 : vector<256x16xf32> to vector<256x16xbf16>
    %c2_17 = arith.constant 2 : index
    %c0_18 = arith.constant 0 : index
    %c0_19 = arith.constant 0 : index
    %23 = vector.load %arg2[%c2_17, %c0_18, %c0_19] : memref<9x16x32xf32, #tpu.memory_space<vmem>>, vector<1x16x32xf32>
    %24 = vector.shape_cast %23 : vector<1x16x32xf32> to vector<16x32xf32>
    %25 = arith.truncf %24 : vector<16x32xf32> to vector<16x32xbf16>
    %cst_20 = arith.constant dense<0.000000e+00> : vector<256x32xf32>
    %26 = tpu.matmul %22, %25, %cst_20 {dimension_numbers = #tpu.dot_dimension_numbers<[1], [0], [0], [1], [0, 0, 1, 1], [], []>} : vector<256x16xbf16>, vector<16x32xbf16>, vector<256x32xf32> -> vector<256x32xf32>
    %27 = arith.addf %18, %26 : vector<256x32xf32>
    %c0_21 = arith.constant 0 : index
    %c1_22 = arith.constant 1 : index
    %c0_23 = arith.constant 0 : index
    %c0_24 = arith.constant 0 : index
    %28 = vector.load %arg1[%c0_21, %c1_22, %c0_23, %c0_24] : memref<1x18x18x16xf32, #tpu.memory_space<vmem>>, vector<1x16x16x16xf32>
    %29 = vector.shape_cast %28 : vector<1x16x16x16xf32> to vector<16x16x16xf32>
    %30 = vector.shape_cast %29 : vector<16x16x16xf32> to vector<256x16xf32>
    %31 = arith.truncf %30 : vector<256x16xf32> to vector<256x16xbf16>
    %c3 = arith.constant 3 : index
    %c0_25 = arith.constant 0 : index
    %c0_26 = arith.constant 0 : index
    %32 = vector.load %arg2[%c3, %c0_25, %c0_26] : memref<9x16x32xf32, #tpu.memory_space<vmem>>, vector<1x16x32xf32>
    %33 = vector.shape_cast %32 : vector<1x16x32xf32> to vector<16x32xf32>
    %34 = arith.truncf %33 : vector<16x32xf32> to vector<16x32xbf16>
    %cst_27 = arith.constant dense<0.000000e+00> : vector<256x32xf32>
    %35 = tpu.matmul %31, %34, %cst_27 {dimension_numbers = #tpu.dot_dimension_numbers<[1], [0], [0], [1], [0, 0, 1, 1], [], []>} : vector<256x16xbf16>, vector<16x32xbf16>, vector<256x32xf32> -> vector<256x32xf32>
    %36 = arith.addf %27, %35 : vector<256x32xf32>
    %c0_28 = arith.constant 0 : index
    %c1_29 = arith.constant 1 : index
    %c1_30 = arith.constant 1 : index
    %c0_31 = arith.constant 0 : index
    %37 = vector.load %arg1[%c0_28, %c1_29, %c1_30, %c0_31] : memref<1x18x18x16xf32, #tpu.memory_space<vmem>>, vector<1x16x16x16xf32>
    %38 = vector.shape_cast %37 : vector<1x16x16x16xf32> to vector<16x16x16xf32>
    %39 = vector.shape_cast %38 : vector<16x16x16xf32> to vector<256x16xf32>
    %40 = arith.truncf %39 : vector<256x16xf32> to vector<256x16xbf16>
    %c4 = arith.constant 4 : index
    %c0_32 = arith.constant 0 : index
    %c0_33 = arith.constant 0 : index
    %41 = vector.load %arg2[%c4, %c0_32, %c0_33] : memref<9x16x32xf32, #tpu.memory_space<vmem>>, vector<1x16x32xf32>
    %42 = vector.shape_cast %41 : vector<1x16x32xf32> to vector<16x32xf32>
    %43 = arith.truncf %42 : vector<16x32xf32> to vector<16x32xbf16>
    %cst_34 = arith.constant dense<0.000000e+00> : vector<256x32xf32>
    %44 = tpu.matmul %40, %43, %cst_34 {dimension_numbers = #tpu.dot_dimension_numbers<[1], [0], [0], [1], [0, 0, 1, 1], [], []>} : vector<256x16xbf16>, vector<16x32xbf16>, vector<256x32xf32> -> vector<256x32xf32>
    %45 = arith.addf %36, %44 : vector<256x32xf32>
    %c0_35 = arith.constant 0 : index
    %c1_36 = arith.constant 1 : index
    %c2_37 = arith.constant 2 : index
    %c0_38 = arith.constant 0 : index
    %46 = vector.load %arg1[%c0_35, %c1_36, %c2_37, %c0_38] : memref<1x18x18x16xf32, #tpu.memory_space<vmem>>, vector<1x16x16x16xf32>
    %47 = vector.shape_cast %46 : vector<1x16x16x16xf32> to vector<16x16x16xf32>
    %48 = vector.shape_cast %47 : vector<16x16x16xf32> to vector<256x16xf32>
    %49 = arith.truncf %48 : vector<256x16xf32> to vector<256x16xbf16>
    %c5 = arith.constant 5 : index
    %c0_39 = arith.constant 0 : index
    %c0_40 = arith.constant 0 : index
    %50 = vector.load %arg2[%c5, %c0_39, %c0_40] : memref<9x16x32xf32, #tpu.memory_space<vmem>>, vector<1x16x32xf32>
    %51 = vector.shape_cast %50 : vector<1x16x32xf32> to vector<16x32xf32>
    %52 = arith.truncf %51 : vector<16x32xf32> to vector<16x32xbf16>
    %cst_41 = arith.constant dense<0.000000e+00> : vector<256x32xf32>
    %53 = tpu.matmul %49, %52, %cst_41 {dimension_numbers = #tpu.dot_dimension_numbers<[1], [0], [0], [1], [0, 0, 1, 1], [], []>} : vector<256x16xbf16>, vector<16x32xbf16>, vector<256x32xf32> -> vector<256x32xf32>
    %54 = arith.addf %45, %53 : vector<256x32xf32>
    %c0_42 = arith.constant 0 : index
    %c2_43 = arith.constant 2 : index
    %c0_44 = arith.constant 0 : index
    %c0_45 = arith.constant 0 : index
    %55 = vector.load %arg1[%c0_42, %c2_43, %c0_44, %c0_45] : memref<1x18x18x16xf32, #tpu.memory_space<vmem>>, vector<1x16x16x16xf32>
    %56 = vector.shape_cast %55 : vector<1x16x16x16xf32> to vector<16x16x16xf32>
    %57 = vector.shape_cast %56 : vector<16x16x16xf32> to vector<256x16xf32>
    %58 = arith.truncf %57 : vector<256x16xf32> to vector<256x16xbf16>
    %c6 = arith.constant 6 : index
    %c0_46 = arith.constant 0 : index
    %c0_47 = arith.constant 0 : index
    %59 = vector.load %arg2[%c6, %c0_46, %c0_47] : memref<9x16x32xf32, #tpu.memory_space<vmem>>, vector<1x16x32xf32>
    %60 = vector.shape_cast %59 : vector<1x16x32xf32> to vector<16x32xf32>
    %61 = arith.truncf %60 : vector<16x32xf32> to vector<16x32xbf16>
    %cst_48 = arith.constant dense<0.000000e+00> : vector<256x32xf32>
    %62 = tpu.matmul %58, %61, %cst_48 {dimension_numbers = #tpu.dot_dimension_numbers<[1], [0], [0], [1], [0, 0, 1, 1], [], []>} : vector<256x16xbf16>, vector<16x32xbf16>, vector<256x32xf32> -> vector<256x32xf32>
    %63 = arith.addf %54, %62 : vector<256x32xf32>
    %c0_49 = arith.constant 0 : index
    %c2_50 = arith.constant 2 : index
    %c1_51 = arith.constant 1 : index
    %c0_52 = arith.constant 0 : index
    %64 = vector.load %arg1[%c0_49, %c2_50, %c1_51, %c0_52] : memref<1x18x18x16xf32, #tpu.memory_space<vmem>>, vector<1x16x16x16xf32>
    %65 = vector.shape_cast %64 : vector<1x16x16x16xf32> to vector<16x16x16xf32>
    %66 = vector.shape_cast %65 : vector<16x16x16xf32> to vector<256x16xf32>
    %67 = arith.truncf %66 : vector<256x16xf32> to vector<256x16xbf16>
    %c7 = arith.constant 7 : index
    %c0_53 = arith.constant 0 : index
    %c0_54 = arith.constant 0 : index
    %68 = vector.load %arg2[%c7, %c0_53, %c0_54] : memref<9x16x32xf32, #tpu.memory_space<vmem>>, vector<1x16x32xf32>
    %69 = vector.shape_cast %68 : vector<1x16x32xf32> to vector<16x32xf32>
    %70 = arith.truncf %69 : vector<16x32xf32> to vector<16x32xbf16>
    %cst_55 = arith.constant dense<0.000000e+00> : vector<256x32xf32>
    %71 = tpu.matmul %67, %70, %cst_55 {dimension_numbers = #tpu.dot_dimension_numbers<[1], [0], [0], [1], [0, 0, 1, 1], [], []>} : vector<256x16xbf16>, vector<16x32xbf16>, vector<256x32xf32> -> vector<256x32xf32>
    %72 = arith.addf %63, %71 : vector<256x32xf32>
    %c0_56 = arith.constant 0 : index
    %c2_57 = arith.constant 2 : index
    %c2_58 = arith.constant 2 : index
    %c0_59 = arith.constant 0 : index
    %73 = vector.load %arg1[%c0_56, %c2_57, %c2_58, %c0_59] : memref<1x18x18x16xf32, #tpu.memory_space<vmem>>, vector<1x16x16x16xf32>
    %74 = vector.shape_cast %73 : vector<1x16x16x16xf32> to vector<16x16x16xf32>
    %75 = vector.shape_cast %74 : vector<16x16x16xf32> to vector<256x16xf32>
    %76 = arith.truncf %75 : vector<256x16xf32> to vector<256x16xbf16>
    %c8 = arith.constant 8 : index
    %c0_60 = arith.constant 0 : index
    %c0_61 = arith.constant 0 : index
    %77 = vector.load %arg2[%c8, %c0_60, %c0_61] : memref<9x16x32xf32, #tpu.memory_space<vmem>>, vector<1x16x32xf32>
    %78 = vector.shape_cast %77 : vector<1x16x32xf32> to vector<16x32xf32>
    %79 = arith.truncf %78 : vector<16x32xf32> to vector<16x32xbf16>
    %cst_62 = arith.constant dense<0.000000e+00> : vector<256x32xf32>
    %80 = tpu.matmul %76, %79, %cst_62 {dimension_numbers = #tpu.dot_dimension_numbers<[1], [0], [0], [1], [0, 0, 1, 1], [], []>} : vector<256x16xbf16>, vector<16x32xbf16>, vector<256x32xf32> -> vector<256x32xf32>
    %81 = arith.addf %72, %80 : vector<256x32xf32>
    %c0_63 = arith.constant 0 : index
    %c0_64 = arith.constant 0 : index
    %82 = vector.load %arg3[%c0_63, %c0_64] : memref<1x32xf32, #tpu.memory_space<vmem>>, vector<1x32xf32>
    %83 = vector.broadcast %82 : vector<1x32xf32> to vector<256x32xf32>
    %84 = arith.addf %81, %83 : vector<256x32xf32>
    %cst_65 = arith.constant 2.000000e-01 : f32
    %85 = vector.broadcast %cst_65 : f32 to vector<256x32xf32>
    %86 = arith.mulf %85, %84 : vector<256x32xf32>
    %87 = arith.maximumf %84, %86 : vector<256x32xf32>
    %cst_66 = arith.constant 0.000000e+00 : f32
    %88 = vector.broadcast %cst_66 : f32 to vector<18x18x32xf32>
    %c0_67 = arith.constant 0 : index
    %c0_68 = arith.constant 0 : index
    %c0_69 = arith.constant 0 : index
    %89 = vector.load %arg7[%c0_67, %c0_68, %c0_69] : memref<18x18x32xf32, #tpu.memory_space<vmem>>, vector<18x18x32xf32>
    tpu.vector_store %arg7[%c0_67, %c0_68, %c0_69], %88 {strides = array<i32>} : memref<18x18x32xf32, #tpu.memory_space<vmem>>, vector<18x18x32xf32>,
    %90 = vector.shape_cast %87 : vector<256x32xf32> to vector<16x16x32xf32>
    %c1_70 = arith.constant 1 : index
    %c1_71 = arith.constant 1 : index
    %c0_72 = arith.constant 0 : index
    %91 = vector.load %arg7[%c1_70, %c1_71, %c0_72] : memref<18x18x32xf32, #tpu.memory_space<vmem>>, vector<16x16x32xf32>
    tpu.vector_store %arg7[%c1_70, %c1_71, %c0_72], %90 {strides = array<i32>} : memref<18x18x32xf32, #tpu.memory_space<vmem>>, vector<16x16x32xf32>,
    %cst_73 = arith.constant 0.000000e+00 : f32
    %92 = vector.broadcast %cst_73 : f32 to vector<256x32xf32>
    %c0_74 = arith.constant 0 : index
    %c0_75 = arith.constant 0 : index
    %c0_76 = arith.constant 0 : index
    %93 = vector.load %arg7[%c0_74, %c0_75, %c0_76] : memref<18x18x32xf32, #tpu.memory_space<vmem>>, vector<16x16x32xf32>
    %94 = vector.shape_cast %93 : vector<16x16x32xf32> to vector<256x32xf32>
    %95 = arith.truncf %94 : vector<256x32xf32> to vector<256x32xbf16>
    %c0_77 = arith.constant 0 : index
    %c0_78 = arith.constant 0 : index
    %c0_79 = arith.constant 0 : index
    %96 = vector.load %arg4[%c0_77, %c0_78, %c0_79] : memref<9x32x32xf32, #tpu.memory_space<vmem>>, vector<1x32x32xf32>
    %97 = vector.shape_cast %96 : vector<1x32x32xf32> to vector<32x32xf32>
    %98 = arith.truncf %97 : vector<32x32xf32> to vector<32x32xbf16>
    %cst_80 = arith.constant dense<0.000000e+00> : vector<256x32xf32>
    %99 = tpu.matmul %95, %98, %cst_80 {dimension_numbers = #tpu.dot_dimension_numbers<[1], [0], [0], [1], [0, 0, 1, 1], [], []>} : vector<256x32xbf16>, vector<32x32xbf16>, vector<256x32xf32> -> vector<256x32xf32>
    %100 = arith.addf %92, %99 : vector<256x32xf32>
    %c0_81 = arith.constant 0 : index
    %c1_82 = arith.constant 1 : index
    %c0_83 = arith.constant 0 : index
    %101 = vector.load %arg7[%c0_81, %c1_82, %c0_83] : memref<18x18x32xf32, #tpu.memory_space<vmem>>, vector<16x16x32xf32>
    %102 = vector.shape_cast %101 : vector<16x16x32xf32> to vector<256x32xf32>
    %103 = arith.truncf %102 : vector<256x32xf32> to vector<256x32xbf16>
    %c1_84 = arith.constant 1 : index
    %c0_85 = arith.constant 0 : index
    %c0_86 = arith.constant 0 : index
    %104 = vector.load %arg4[%c1_84, %c0_85, %c0_86] : memref<9x32x32xf32, #tpu.memory_space<vmem>>, vector<1x32x32xf32>
    %105 = vector.shape_cast %104 : vector<1x32x32xf32> to vector<32x32xf32>
    %106 = arith.truncf %105 : vector<32x32xf32> to vector<32x32xbf16>
    %cst_87 = arith.constant dense<0.000000e+00> : vector<256x32xf32>
    %107 = tpu.matmul %103, %106, %cst_87 {dimension_numbers = #tpu.dot_dimension_numbers<[1], [0], [0], [1], [0, 0, 1, 1], [], []>} : vector<256x32xbf16>, vector<32x32xbf16>, vector<256x32xf32> -> vector<256x32xf32>
    %108 = arith.addf %100, %107 : vector<256x32xf32>
    %c0_88 = arith.constant 0 : index
    %c2_89 = arith.constant 2 : index
    %c0_90 = arith.constant 0 : index
    %109 = vector.load %arg7[%c0_88, %c2_89, %c0_90] : memref<18x18x32xf32, #tpu.memory_space<vmem>>, vector<16x16x32xf32>
    %110 = vector.shape_cast %109 : vector<16x16x32xf32> to vector<256x32xf32>
    %111 = arith.truncf %110 : vector<256x32xf32> to vector<256x32xbf16>
    %c2_91 = arith.constant 2 : index
    %c0_92 = arith.constant 0 : index
    %c0_93 = arith.constant 0 : index
    %112 = vector.load %arg4[%c2_91, %c0_92, %c0_93] : memref<9x32x32xf32, #tpu.memory_space<vmem>>, vector<1x32x32xf32>
    %113 = vector.shape_cast %112 : vector<1x32x32xf32> to vector<32x32xf32>
    %114 = arith.truncf %113 : vector<32x32xf32> to vector<32x32xbf16>
    %cst_94 = arith.constant dense<0.000000e+00> : vector<256x32xf32>
    %115 = tpu.matmul %111, %114, %cst_94 {dimension_numbers = #tpu.dot_dimension_numbers<[1], [0], [0], [1], [0, 0, 1, 1], [], []>} : vector<256x32xbf16>, vector<32x32xbf16>, vector<256x32xf32> -> vector<256x32xf32>
    %116 = arith.addf %108, %115 : vector<256x32xf32>
    %c1_95 = arith.constant 1 : index
    %c0_96 = arith.constant 0 : index
    %c0_97 = arith.constant 0 : index
    %117 = vector.load %arg7[%c1_95, %c0_96, %c0_97] : memref<18x18x32xf32, #tpu.memory_space<vmem>>, vector<16x16x32xf32>
    %118 = vector.shape_cast %117 : vector<16x16x32xf32> to vector<256x32xf32>
    %119 = arith.truncf %118 : vector<256x32xf32> to vector<256x32xbf16>
    %c3_98 = arith.constant 3 : index
    %c0_99 = arith.constant 0 : index
    %c0_100 = arith.constant 0 : index
    %120 = vector.load %arg4[%c3_98, %c0_99, %c0_100] : memref<9x32x32xf32, #tpu.memory_space<vmem>>, vector<1x32x32xf32>
    %121 = vector.shape_cast %120 : vector<1x32x32xf32> to vector<32x32xf32>
    %122 = arith.truncf %121 : vector<32x32xf32> to vector<32x32xbf16>
    %cst_101 = arith.constant dense<0.000000e+00> : vector<256x32xf32>
    %123 = tpu.matmul %119, %122, %cst_101 {dimension_numbers = #tpu.dot_dimension_numbers<[1], [0], [0], [1], [0, 0, 1, 1], [], []>} : vector<256x32xbf16>, vector<32x32xbf16>, vector<256x32xf32> -> vector<256x32xf32>
    %124 = arith.addf %116, %123 : vector<256x32xf32>
    %c1_102 = arith.constant 1 : index
    %c1_103 = arith.constant 1 : index
    %c0_104 = arith.constant 0 : index
    %125 = vector.load %arg7[%c1_102, %c1_103, %c0_104] : memref<18x18x32xf32, #tpu.memory_space<vmem>>, vector<16x16x32xf32>
    %126 = vector.shape_cast %125 : vector<16x16x32xf32> to vector<256x32xf32>
    %127 = arith.truncf %126 : vector<256x32xf32> to vector<256x32xbf16>
    %c4_105 = arith.constant 4 : index
    %c0_106 = arith.constant 0 : index
    %c0_107 = arith.constant 0 : index
    %128 = vector.load %arg4[%c4_105, %c0_106, %c0_107] : memref<9x32x32xf32, #tpu.memory_space<vmem>>, vector<1x32x32xf32>
    %129 = vector.shape_cast %128 : vector<1x32x32xf32> to vector<32x32xf32>
    %130 = arith.truncf %129 : vector<32x32xf32> to vector<32x32xbf16>
    %cst_108 = arith.constant dense<0.000000e+00> : vector<256x32xf32>
    %131 = tpu.matmul %127, %130, %cst_108 {dimension_numbers = #tpu.dot_dimension_numbers<[1], [0], [0], [1], [0, 0, 1, 1], [], []>} : vector<256x32xbf16>, vector<32x32xbf16>, vector<256x32xf32> -> vector<256x32xf32>
    %132 = arith.addf %124, %131 : vector<256x32xf32>
    %c1_109 = arith.constant 1 : index
    %c2_110 = arith.constant 2 : index
    %c0_111 = arith.constant 0 : index
    %133 = vector.load %arg7[%c1_109, %c2_110, %c0_111] : memref<18x18x32xf32, #tpu.memory_space<vmem>>, vector<16x16x32xf32>
    %134 = vector.shape_cast %133 : vector<16x16x32xf32> to vector<256x32xf32>
    %135 = arith.truncf %134 : vector<256x32xf32> to vector<256x32xbf16>
    %c5_112 = arith.constant 5 : index
    %c0_113 = arith.constant 0 : index
    %c0_114 = arith.constant 0 : index
    %136 = vector.load %arg4[%c5_112, %c0_113, %c0_114] : memref<9x32x32xf32, #tpu.memory_space<vmem>>, vector<1x32x32xf32>
    %137 = vector.shape_cast %136 : vector<1x32x32xf32> to vector<32x32xf32>
    %138 = arith.truncf %137 : vector<32x32xf32> to vector<32x32xbf16>
    %cst_115 = arith.constant dense<0.000000e+00> : vector<256x32xf32>
    %139 = tpu.matmul %135, %138, %cst_115 {dimension_numbers = #tpu.dot_dimension_numbers<[1], [0], [0], [1], [0, 0, 1, 1], [], []>} : vector<256x32xbf16>, vector<32x32xbf16>, vector<256x32xf32> -> vector<256x32xf32>
    %140 = arith.addf %132, %139 : vector<256x32xf32>
    %c2_116 = arith.constant 2 : index
    %c0_117 = arith.constant 0 : index
    %c0_118 = arith.constant 0 : index
    %141 = vector.load %arg7[%c2_116, %c0_117, %c0_118] : memref<18x18x32xf32, #tpu.memory_space<vmem>>, vector<16x16x32xf32>
    %142 = vector.shape_cast %141 : vector<16x16x32xf32> to vector<256x32xf32>
    %143 = arith.truncf %142 : vector<256x32xf32> to vector<256x32xbf16>
    %c6_119 = arith.constant 6 : index
    %c0_120 = arith.constant 0 : index
    %c0_121 = arith.constant 0 : index
    %144 = vector.load %arg4[%c6_119, %c0_120, %c0_121] : memref<9x32x32xf32, #tpu.memory_space<vmem>>, vector<1x32x32xf32>
    %145 = vector.shape_cast %144 : vector<1x32x32xf32> to vector<32x32xf32>
    %146 = arith.truncf %145 : vector<32x32xf32> to vector<32x32xbf16>
    %cst_122 = arith.constant dense<0.000000e+00> : vector<256x32xf32>
    %147 = tpu.matmul %143, %146, %cst_122 {dimension_numbers = #tpu.dot_dimension_numbers<[1], [0], [0], [1], [0, 0, 1, 1], [], []>} : vector<256x32xbf16>, vector<32x32xbf16>, vector<256x32xf32> -> vector<256x32xf32>
    %148 = arith.addf %140, %147 : vector<256x32xf32>
    %c2_123 = arith.constant 2 : index
    %c1_124 = arith.constant 1 : index
    %c0_125 = arith.constant 0 : index
    %149 = vector.load %arg7[%c2_123, %c1_124, %c0_125] : memref<18x18x32xf32, #tpu.memory_space<vmem>>, vector<16x16x32xf32>
    %150 = vector.shape_cast %149 : vector<16x16x32xf32> to vector<256x32xf32>
    %151 = arith.truncf %150 : vector<256x32xf32> to vector<256x32xbf16>
    %c7_126 = arith.constant 7 : index
    %c0_127 = arith.constant 0 : index
    %c0_128 = arith.constant 0 : index
    %152 = vector.load %arg4[%c7_126, %c0_127, %c0_128] : memref<9x32x32xf32, #tpu.memory_space<vmem>>, vector<1x32x32xf32>
    %153 = vector.shape_cast %152 : vector<1x32x32xf32> to vector<32x32xf32>
    %154 = arith.truncf %153 : vector<32x32xf32> to vector<32x32xbf16>
    %cst_129 = arith.constant dense<0.000000e+00> : vector<256x32xf32>
    %155 = tpu.matmul %151, %154, %cst_129 {dimension_numbers = #tpu.dot_dimension_numbers<[1], [0], [0], [1], [0, 0, 1, 1], [], []>} : vector<256x32xbf16>, vector<32x32xbf16>, vector<256x32xf32> -> vector<256x32xf32>
    %156 = arith.addf %148, %155 : vector<256x32xf32>
    %c2_130 = arith.constant 2 : index
    %c2_131 = arith.constant 2 : index
    %c0_132 = arith.constant 0 : index
    %157 = vector.load %arg7[%c2_130, %c2_131, %c0_132] : memref<18x18x32xf32, #tpu.memory_space<vmem>>, vector<16x16x32xf32>
    %158 = vector.shape_cast %157 : vector<16x16x32xf32> to vector<256x32xf32>
    %159 = arith.truncf %158 : vector<256x32xf32> to vector<256x32xbf16>
    %c8_133 = arith.constant 8 : index
    %c0_134 = arith.constant 0 : index
    %c0_135 = arith.constant 0 : index
    %160 = vector.load %arg4[%c8_133, %c0_134, %c0_135] : memref<9x32x32xf32, #tpu.memory_space<vmem>>, vector<1x32x32xf32>
    %161 = vector.shape_cast %160 : vector<1x32x32xf32> to vector<32x32xf32>
    %162 = arith.truncf %161 : vector<32x32xf32> to vector<32x32xbf16>
    %cst_136 = arith.constant dense<0.000000e+00> : vector<256x32xf32>
    %163 = tpu.matmul %159, %162, %cst_136 {dimension_numbers = #tpu.dot_dimension_numbers<[1], [0], [0], [1], [0, 0, 1, 1], [], []>} : vector<256x32xbf16>, vector<32x32xbf16>, vector<256x32xf32> -> vector<256x32xf32>
    %164 = arith.addf %156, %163 : vector<256x32xf32>
    %c0_137 = arith.constant 0 : index
    %c0_138 = arith.constant 0 : index
    %165 = vector.load %arg5[%c0_137, %c0_138] : memref<1x32xf32, #tpu.memory_space<vmem>>, vector<1x32xf32>
    %166 = vector.broadcast %165 : vector<1x32xf32> to vector<256x32xf32>
    %167 = arith.addf %164, %166 : vector<256x32xf32>
    %cst_139 = arith.constant 2.000000e-01 : f32
    %168 = vector.broadcast %cst_139 : f32 to vector<256x32xf32>
    %169 = arith.mulf %168, %167 : vector<256x32xf32>
    %170 = arith.maximumf %167, %169 : vector<256x32xf32>
    %171 = vector.shape_cast %170 : vector<256x32xf32> to vector<16x16x32xf32>
    %c1_140 = arith.constant 1 : index
    %c1_141 = arith.constant 1 : index
    %c0_142 = arith.constant 0 : index
    %172 = vector.load %arg7[%c1_140, %c1_141, %c0_142] : memref<18x18x32xf32, #tpu.memory_space<vmem>>, vector<16x16x32xf32>
    tpu.vector_store %arg7[%c1_140, %c1_141, %c0_142], %171 {strides = array<i32>} : memref<18x18x32xf32, #tpu.memory_space<vmem>>, vector<16x16x32xf32>,
    %173 = vector.extract_strided_slice %171 {offsets = [0, 1, 0], sizes = [16, 1, 32], strides = [1, 1, 1]} : vector<16x16x32xf32> to vector<16x1x32xf32>
    %c1_143 = arith.constant 1 : index
    %c0_144 = arith.constant 0 : index
    %c0_145 = arith.constant 0 : index
    %174 = vector.load %arg7[%c1_143, %c0_144, %c0_145] : memref<18x18x32xf32, #tpu.memory_space<vmem>>, vector<16x1x32xf32>
    tpu.vector_store %arg7[%c1_143, %c0_144, %c0_145], %173 {strides = array<i32>} : memref<18x18x32xf32, #tpu.memory_space<vmem>>, vector<16x1x32xf32>,
    %175 = vector.extract_strided_slice %171 {offsets = [0, 14, 0], sizes = [16, 1, 32], strides = [1, 1, 1]} : vector<16x16x32xf32> to vector<16x1x32xf32>
    %c1_146 = arith.constant 1 : index
    %c17 = arith.constant 17 : index
    %c0_147 = arith.constant 0 : index
    %176 = vector.load %arg7[%c1_146, %c17, %c0_147] : memref<18x18x32xf32, #tpu.memory_space<vmem>>, vector<16x1x32xf32>
    tpu.vector_store %arg7[%c1_146, %c17, %c0_147], %175 {strides = array<i32>} : memref<18x18x32xf32, #tpu.memory_space<vmem>>, vector<16x1x32xf32>,
    %c2_148 = arith.constant 2 : index
    %c0_149 = arith.constant 0 : index
    %c0_150 = arith.constant 0 : index
    %177 = vector.load %arg7[%c2_148, %c0_149, %c0_150] : memref<18x18x32xf32, #tpu.memory_space<vmem>>, vector<1x18x32xf32>
    %c0_151 = arith.constant 0 : index
    %c0_152 = arith.constant 0 : index
    %c0_153 = arith.constant 0 : index
    %178 = vector.load %arg7[%c0_151, %c0_152, %c0_153] : memref<18x18x32xf32, #tpu.memory_space<vmem>>, vector<1x18x32xf32>
    tpu.vector_store %arg7[%c0_151, %c0_152, %c0_153], %177 {strides = array<i32>} : memref<18x18x32xf32, #tpu.memory_space<vmem>>, vector<1x18x32xf32>,
    %c15 = arith.constant 15 : index
    %c0_154 = arith.constant 0 : index
    %c0_155 = arith.constant 0 : index
    %179 = vector.load %arg7[%c15, %c0_154, %c0_155] : memref<18x18x32xf32, #tpu.memory_space<vmem>>, vector<1x18x32xf32>
    %c17_156 = arith.constant 17 : index
    %c0_157 = arith.constant 0 : index
    %c0_158 = arith.constant 0 : index
    %180 = vector.load %arg7[%c17_156, %c0_157, %c0_158] : memref<18x18x32xf32, #tpu.memory_space<vmem>>, vector<1x18x32xf32>
    tpu.vector_store %arg7[%c17_156, %c0_157, %c0_158], %179 {strides = array<i32>} : memref<18x18x32xf32, #tpu.memory_space<vmem>>, vector<1x18x32xf32>,
    %cst_159 = arith.constant 0.000000e+00 : f32
    %181 = vector.broadcast %cst_159 : f32 to vector<16x16x32xf32>
    %c0_160 = arith.constant 0 : index
    %c0_161 = arith.constant 0 : index
    %c0_162 = arith.constant 0 : index
    %182 = vector.load %arg7[%c0_160, %c0_161, %c0_162] : memref<18x18x32xf32, #tpu.memory_space<vmem>>, vector<16x16x32xf32>
    %cst_163 = arith.constant 6.250000e-02 : f32
    %183 = vector.broadcast %cst_163 : f32 to vector<16x16x32xf32>
    %184 = arith.mulf %183, %182 : vector<16x16x32xf32>
    %185 = arith.addf %181, %184 : vector<16x16x32xf32>
    %c0_164 = arith.constant 0 : index
    %c1_165 = arith.constant 1 : index
    %c0_166 = arith.constant 0 : index
    %186 = vector.load %arg7[%c0_164, %c1_165, %c0_166] : memref<18x18x32xf32, #tpu.memory_space<vmem>>, vector<16x16x32xf32>
    %cst_167 = arith.constant 1.250000e-01 : f32
    %187 = vector.broadcast %cst_167 : f32 to vector<16x16x32xf32>
    %188 = arith.mulf %187, %186 : vector<16x16x32xf32>
    %189 = arith.addf %185, %188 : vector<16x16x32xf32>
    %c0_168 = arith.constant 0 : index
    %c2_169 = arith.constant 2 : index
    %c0_170 = arith.constant 0 : index
    %190 = vector.load %arg7[%c0_168, %c2_169, %c0_170] : memref<18x18x32xf32, #tpu.memory_space<vmem>>, vector<16x16x32xf32>
    %cst_171 = arith.constant 6.250000e-02 : f32
    %191 = vector.broadcast %cst_171 : f32 to vector<16x16x32xf32>
    %192 = arith.mulf %191, %190 : vector<16x16x32xf32>
    %193 = arith.addf %189, %192 : vector<16x16x32xf32>
    %c1_172 = arith.constant 1 : index
    %c0_173 = arith.constant 0 : index
    %c0_174 = arith.constant 0 : index
    %194 = vector.load %arg7[%c1_172, %c0_173, %c0_174] : memref<18x18x32xf32, #tpu.memory_space<vmem>>, vector<16x16x32xf32>
    %cst_175 = arith.constant 1.250000e-01 : f32
    %195 = vector.broadcast %cst_175 : f32 to vector<16x16x32xf32>
    %196 = arith.mulf %195, %194 : vector<16x16x32xf32>
    %197 = arith.addf %193, %196 : vector<16x16x32xf32>
    %c1_176 = arith.constant 1 : index
    %c1_177 = arith.constant 1 : index
    %c0_178 = arith.constant 0 : index
    %198 = vector.load %arg7[%c1_176, %c1_177, %c0_178] : memref<18x18x32xf32, #tpu.memory_space<vmem>>, vector<16x16x32xf32>
    %cst_179 = arith.constant 2.500000e-01 : f32
    %199 = vector.broadcast %cst_179 : f32 to vector<16x16x32xf32>
    %200 = arith.mulf %199, %198 : vector<16x16x32xf32>
    %201 = arith.addf %197, %200 : vector<16x16x32xf32>
    %c1_180 = arith.constant 1 : index
    %c2_181 = arith.constant 2 : index
    %c0_182 = arith.constant 0 : index
    %202 = vector.load %arg7[%c1_180, %c2_181, %c0_182] : memref<18x18x32xf32, #tpu.memory_space<vmem>>, vector<16x16x32xf32>
    %cst_183 = arith.constant 1.250000e-01 : f32
    %203 = vector.broadcast %cst_183 : f32 to vector<16x16x32xf32>
    %204 = arith.mulf %203, %202 : vector<16x16x32xf32>
    %205 = arith.addf %201, %204 : vector<16x16x32xf32>
    %c2_184 = arith.constant 2 : index
    %c0_185 = arith.constant 0 : index
    %c0_186 = arith.constant 0 : index
    %206 = vector.load %arg7[%c2_184, %c0_185, %c0_186] : memref<18x18x32xf32, #tpu.memory_space<vmem>>, vector<16x16x32xf32>
    %cst_187 = arith.constant 6.250000e-02 : f32
    %207 = vector.broadcast %cst_187 : f32 to vector<16x16x32xf32>
    %208 = arith.mulf %207, %206 : vector<16x16x32xf32>
    %209 = arith.addf %205, %208 : vector<16x16x32xf32>
    %c2_188 = arith.constant 2 : index
    %c1_189 = arith.constant 1 : index
    %c0_190 = arith.constant 0 : index
    %210 = vector.load %arg7[%c2_188, %c1_189, %c0_190] : memref<18x18x32xf32, #tpu.memory_space<vmem>>, vector<16x16x32xf32>
    %cst_191 = arith.constant 1.250000e-01 : f32
    %211 = vector.broadcast %cst_191 : f32 to vector<16x16x32xf32>
    %212 = arith.mulf %211, %210 : vector<16x16x32xf32>
    %213 = arith.addf %209, %212 : vector<16x16x32xf32>
    %c2_192 = arith.constant 2 : index
    %c2_193 = arith.constant 2 : index
    %c0_194 = arith.constant 0 : index
    %214 = vector.load %arg7[%c2_192, %c2_193, %c0_194] : memref<18x18x32xf32, #tpu.memory_space<vmem>>, vector<16x16x32xf32>
    %cst_195 = arith.constant 6.250000e-02 : f32
    %215 = vector.broadcast %cst_195 : f32 to vector<16x16x32xf32>
    %216 = arith.mulf %215, %214 : vector<16x16x32xf32>
    %217 = arith.addf %213, %216 : vector<16x16x32xf32>
    %c0_196 = arith.constant 0 : index
    %c0_197 = arith.constant 0 : index
    %c0_198 = arith.constant 0 : index
    %c0_199 = arith.constant 0 : index
    %218 = vector.load %arg6[%c0_196, %c0_197, %c0_198, %c0_199] : memref<1x16x16x32xf32, #tpu.memory_space<vmem>>, vector<1x16x16x32xf32>
    %219 = vector.shape_cast %218 : vector<1x16x16x32xf32> to vector<16x16x32xf32>
    %220 = vector.shape_cast %217 : vector<16x16x32xf32> to vector<1x16x16x32xf32>
    tpu.vector_store %arg6[%c0_196, %c0_197, %c0_198, %c0_199], %220 {strides = array<i32>} : memref<1x16x16x32xf32, #tpu.memory_space<vmem>>, vector<1x16x16x32xf32>,
    return
  }
  func.func @transform_0(%arg0: i32) -> (i32, i32, i32, i32) {
    %c0_i32 = arith.constant 0 : i32
    %c0_i32_0 = arith.constant 0 : i32
    %c0_i32_1 = arith.constant 0 : i32
    %c0_i32_2 = arith.constant 0 : i32
    return %arg0, %c0_i32, %c0_i32_0, %c0_i32_1 : i32, i32, i32, i32
  }
  func.func @transform_1(%arg0: i32) -> (i32, i32, i32) {
    %c0_i32 = arith.constant 0 : i32
    %c0_i32_0 = arith.constant 0 : i32
    %c0_i32_1 = arith.constant 0 : i32
    %c0_i32_2 = arith.constant 0 : i32
    return %c0_i32, %c0_i32_0, %c0_i32_1 : i32, i32, i32
  }
  func.func @transform_2(%arg0: i32) -> (i32, i32) {
    %c0_i32 = arith.constant 0 : i32
    %c0_i32_0 = arith.constant 0 : i32
    %c0_i32_1 = arith.constant 0 : i32
    return %c0_i32, %c0_i32_0 : i32, i32
  }
  func.func @transform_3(%arg0: i32) -> (i32, i32, i32) {
    %c0_i32 = arith.constant 0 : i32
    %c0_i32_0 = arith.constant 0 : i32
    %c0_i32_1 = arith.constant 0 : i32
    %c0_i32_2 = arith.constant 0 : i32
    return %c0_i32, %c0_i32_0, %c0_i32_1 : i32, i32, i32
  }
  func.func @transform_4(%arg0: i32) -> (i32, i32) {
    %c0_i32 = arith.constant 0 : i32
    %c0_i32_0 = arith.constant 0 : i32
    %c0_i32_1 = arith.constant 0 : i32
    return %c0_i32, %c0_i32_0 : i32, i32
  }
  func.func @transform_5(%arg0: i32) -> (i32, i32, i32, i32) {
    %c0_i32 = arith.constant 0 : i32
    %c0_i32_0 = arith.constant 0 : i32
    %c0_i32_1 = arith.constant 0 : i32
    %c0_i32_2 = arith.constant 0 : i32
    return %arg0, %c0_i32, %c0_i32_0, %c0_i32_1 : i32, i32, i32, i32
  }
}

module attributes {stable_mosaic.version = 11 : i64} {
  func.func @kernel(%arg0: i32, %arg1: memref<1x9x9x32xf32, #tpu.memory_space<vmem>>, %arg2: memref<1x9x9x32xf32, #tpu.memory_space<vmem>>, %arg3: memref<1x9x9x32xf32, #tpu.memory_space<vmem>>, %arg4: memref<1x9x9x32xf32, #tpu.memory_space<vmem>>, %arg5: memref<1x8x8x16xf32, #tpu.memory_space<vmem>>, %arg6: memref<9x32x32xf32, #tpu.memory_space<vmem>>, %arg7: memref<1x32xf32, #tpu.memory_space<vmem>>, %arg8: memref<16x32xf32, #tpu.memory_space<vmem>>, %arg9: memref<1x32xf32, #tpu.memory_space<vmem>>, %arg10: memref<1x64x32xf32, #tpu.memory_space<vmem>>) attributes {dimension_semantics = [#tpu.dimension_semantics<parallel>], iteration_bounds = array<i64: 2>, scalar_prefetch = 0 : i64, scratch_operands = 0 : i64, tpu.core_type = #tpu.core_type<tc>, window_params = [{transform_indices = @transform_0, window_bounds = array<i64: 1, 9, 9, 32>}, {transform_indices = @transform_1, window_bounds = array<i64: 1, 9, 9, 32>}, {transform_indices = @transform_2, window_bounds = array<i64: 1, 9, 9, 32>}, {transform_indices = @transform_3, window_bounds = array<i64: 1, 9, 9, 32>}, {transform_indices = @transform_4, window_bounds = array<i64: 1, 8, 8, 16>}, {pipeline_mode = #tpu.pipeline_mode<synchronous>, transform_indices = @transform_5, window_bounds = array<i64: 9, 32, 32>}, {pipeline_mode = #tpu.pipeline_mode<synchronous>, transform_indices = @transform_6, window_bounds = array<i64: 1, 32>}, {pipeline_mode = #tpu.pipeline_mode<synchronous>, transform_indices = @transform_7, window_bounds = array<i64: 16, 32>}, {pipeline_mode = #tpu.pipeline_mode<synchronous>, transform_indices = @transform_8, window_bounds = array<i64: 1, 32>}, {transform_indices = @transform_9, window_bounds = array<i64: 1, 64, 32>}]} {
    %cst = arith.constant 0.000000e+00 : f32
    %0 = vector.broadcast %cst : f32 to vector<64x32xf32>
    %c0 = arith.constant 0 : index
    %c0_0 = arith.constant 0 : index
    %c0_1 = arith.constant 0 : index
    %c0_2 = arith.constant 0 : index
    %1 = vector.load %arg1[%c0, %c0_0, %c0_1, %c0_2] : memref<1x9x9x32xf32, #tpu.memory_space<vmem>>, vector<1x8x8x32xf32>
    %2 = vector.shape_cast %1 : vector<1x8x8x32xf32> to vector<8x8x32xf32>
    %3 = vector.shape_cast %2 : vector<8x8x32xf32> to vector<64x32xf32>
    %4 = arith.truncf %3 : vector<64x32xf32> to vector<64x32xbf16>
    %c0_3 = arith.constant 0 : index
    %c0_4 = arith.constant 0 : index
    %c0_5 = arith.constant 0 : index
    %5 = vector.load %arg6[%c0_3, %c0_4, %c0_5] : memref<9x32x32xf32, #tpu.memory_space<vmem>>, vector<1x32x32xf32>
    %6 = vector.shape_cast %5 : vector<1x32x32xf32> to vector<32x32xf32>
    %7 = arith.truncf %6 : vector<32x32xf32> to vector<32x32xbf16>
    %cst_6 = arith.constant dense<0.000000e+00> : vector<64x32xf32>
    %8 = tpu.matmul %4, %7, %cst_6 {dimension_numbers = #tpu.dot_dimension_numbers<[1], [0], [0], [1], [0, 0, 1, 1], [], []>} : vector<64x32xbf16>, vector<32x32xbf16>, vector<64x32xf32> -> vector<64x32xf32>
    %9 = arith.addf %0, %8 : vector<64x32xf32>
    %c0_7 = arith.constant 0 : index
    %c0_8 = arith.constant 0 : index
    %c0_9 = arith.constant 0 : index
    %c0_10 = arith.constant 0 : index
    %10 = vector.load %arg2[%c0_7, %c0_8, %c0_9, %c0_10] : memref<1x9x9x32xf32, #tpu.memory_space<vmem>>, vector<1x8x8x32xf32>
    %11 = vector.shape_cast %10 : vector<1x8x8x32xf32> to vector<8x8x32xf32>
    %12 = vector.shape_cast %11 : vector<8x8x32xf32> to vector<64x32xf32>
    %13 = arith.truncf %12 : vector<64x32xf32> to vector<64x32xbf16>
    %c1 = arith.constant 1 : index
    %c0_11 = arith.constant 0 : index
    %c0_12 = arith.constant 0 : index
    %14 = vector.load %arg6[%c1, %c0_11, %c0_12] : memref<9x32x32xf32, #tpu.memory_space<vmem>>, vector<1x32x32xf32>
    %15 = vector.shape_cast %14 : vector<1x32x32xf32> to vector<32x32xf32>
    %16 = arith.truncf %15 : vector<32x32xf32> to vector<32x32xbf16>
    %cst_13 = arith.constant dense<0.000000e+00> : vector<64x32xf32>
    %17 = tpu.matmul %13, %16, %cst_13 {dimension_numbers = #tpu.dot_dimension_numbers<[1], [0], [0], [1], [0, 0, 1, 1], [], []>} : vector<64x32xbf16>, vector<32x32xbf16>, vector<64x32xf32> -> vector<64x32xf32>
    %18 = arith.addf %9, %17 : vector<64x32xf32>
    %c0_14 = arith.constant 0 : index
    %c0_15 = arith.constant 0 : index
    %c1_16 = arith.constant 1 : index
    %c0_17 = arith.constant 0 : index
    %19 = vector.load %arg1[%c0_14, %c0_15, %c1_16, %c0_17] : memref<1x9x9x32xf32, #tpu.memory_space<vmem>>, vector<1x8x8x32xf32>
    %20 = vector.shape_cast %19 : vector<1x8x8x32xf32> to vector<8x8x32xf32>
    %21 = vector.shape_cast %20 : vector<8x8x32xf32> to vector<64x32xf32>
    %22 = arith.truncf %21 : vector<64x32xf32> to vector<64x32xbf16>
    %c2 = arith.constant 2 : index
    %c0_18 = arith.constant 0 : index
    %c0_19 = arith.constant 0 : index
    %23 = vector.load %arg6[%c2, %c0_18, %c0_19] : memref<9x32x32xf32, #tpu.memory_space<vmem>>, vector<1x32x32xf32>
    %24 = vector.shape_cast %23 : vector<1x32x32xf32> to vector<32x32xf32>
    %25 = arith.truncf %24 : vector<32x32xf32> to vector<32x32xbf16>
    %cst_20 = arith.constant dense<0.000000e+00> : vector<64x32xf32>
    %26 = tpu.matmul %22, %25, %cst_20 {dimension_numbers = #tpu.dot_dimension_numbers<[1], [0], [0], [1], [0, 0, 1, 1], [], []>} : vector<64x32xbf16>, vector<32x32xbf16>, vector<64x32xf32> -> vector<64x32xf32>
    %27 = arith.addf %18, %26 : vector<64x32xf32>
    %c0_21 = arith.constant 0 : index
    %c0_22 = arith.constant 0 : index
    %c0_23 = arith.constant 0 : index
    %c0_24 = arith.constant 0 : index
    %28 = vector.load %arg3[%c0_21, %c0_22, %c0_23, %c0_24] : memref<1x9x9x32xf32, #tpu.memory_space<vmem>>, vector<1x8x8x32xf32>
    %29 = vector.shape_cast %28 : vector<1x8x8x32xf32> to vector<8x8x32xf32>
    %30 = vector.shape_cast %29 : vector<8x8x32xf32> to vector<64x32xf32>
    %31 = arith.truncf %30 : vector<64x32xf32> to vector<64x32xbf16>
    %c3 = arith.constant 3 : index
    %c0_25 = arith.constant 0 : index
    %c0_26 = arith.constant 0 : index
    %32 = vector.load %arg6[%c3, %c0_25, %c0_26] : memref<9x32x32xf32, #tpu.memory_space<vmem>>, vector<1x32x32xf32>
    %33 = vector.shape_cast %32 : vector<1x32x32xf32> to vector<32x32xf32>
    %34 = arith.truncf %33 : vector<32x32xf32> to vector<32x32xbf16>
    %cst_27 = arith.constant dense<0.000000e+00> : vector<64x32xf32>
    %35 = tpu.matmul %31, %34, %cst_27 {dimension_numbers = #tpu.dot_dimension_numbers<[1], [0], [0], [1], [0, 0, 1, 1], [], []>} : vector<64x32xbf16>, vector<32x32xbf16>, vector<64x32xf32> -> vector<64x32xf32>
    %36 = arith.addf %27, %35 : vector<64x32xf32>
    %c0_28 = arith.constant 0 : index
    %c0_29 = arith.constant 0 : index
    %c0_30 = arith.constant 0 : index
    %c0_31 = arith.constant 0 : index
    %37 = vector.load %arg4[%c0_28, %c0_29, %c0_30, %c0_31] : memref<1x9x9x32xf32, #tpu.memory_space<vmem>>, vector<1x8x8x32xf32>
    %38 = vector.shape_cast %37 : vector<1x8x8x32xf32> to vector<8x8x32xf32>
    %39 = vector.shape_cast %38 : vector<8x8x32xf32> to vector<64x32xf32>
    %40 = arith.truncf %39 : vector<64x32xf32> to vector<64x32xbf16>
    %c4 = arith.constant 4 : index
    %c0_32 = arith.constant 0 : index
    %c0_33 = arith.constant 0 : index
    %41 = vector.load %arg6[%c4, %c0_32, %c0_33] : memref<9x32x32xf32, #tpu.memory_space<vmem>>, vector<1x32x32xf32>
    %42 = vector.shape_cast %41 : vector<1x32x32xf32> to vector<32x32xf32>
    %43 = arith.truncf %42 : vector<32x32xf32> to vector<32x32xbf16>
    %cst_34 = arith.constant dense<0.000000e+00> : vector<64x32xf32>
    %44 = tpu.matmul %40, %43, %cst_34 {dimension_numbers = #tpu.dot_dimension_numbers<[1], [0], [0], [1], [0, 0, 1, 1], [], []>} : vector<64x32xbf16>, vector<32x32xbf16>, vector<64x32xf32> -> vector<64x32xf32>
    %45 = arith.addf %36, %44 : vector<64x32xf32>
    %c0_35 = arith.constant 0 : index
    %c0_36 = arith.constant 0 : index
    %c1_37 = arith.constant 1 : index
    %c0_38 = arith.constant 0 : index
    %46 = vector.load %arg3[%c0_35, %c0_36, %c1_37, %c0_38] : memref<1x9x9x32xf32, #tpu.memory_space<vmem>>, vector<1x8x8x32xf32>
    %47 = vector.shape_cast %46 : vector<1x8x8x32xf32> to vector<8x8x32xf32>
    %48 = vector.shape_cast %47 : vector<8x8x32xf32> to vector<64x32xf32>
    %49 = arith.truncf %48 : vector<64x32xf32> to vector<64x32xbf16>
    %c5 = arith.constant 5 : index
    %c0_39 = arith.constant 0 : index
    %c0_40 = arith.constant 0 : index
    %50 = vector.load %arg6[%c5, %c0_39, %c0_40] : memref<9x32x32xf32, #tpu.memory_space<vmem>>, vector<1x32x32xf32>
    %51 = vector.shape_cast %50 : vector<1x32x32xf32> to vector<32x32xf32>
    %52 = arith.truncf %51 : vector<32x32xf32> to vector<32x32xbf16>
    %cst_41 = arith.constant dense<0.000000e+00> : vector<64x32xf32>
    %53 = tpu.matmul %49, %52, %cst_41 {dimension_numbers = #tpu.dot_dimension_numbers<[1], [0], [0], [1], [0, 0, 1, 1], [], []>} : vector<64x32xbf16>, vector<32x32xbf16>, vector<64x32xf32> -> vector<64x32xf32>
    %54 = arith.addf %45, %53 : vector<64x32xf32>
    %c0_42 = arith.constant 0 : index
    %c1_43 = arith.constant 1 : index
    %c0_44 = arith.constant 0 : index
    %c0_45 = arith.constant 0 : index
    %55 = vector.load %arg1[%c0_42, %c1_43, %c0_44, %c0_45] : memref<1x9x9x32xf32, #tpu.memory_space<vmem>>, vector<1x8x8x32xf32>
    %56 = vector.shape_cast %55 : vector<1x8x8x32xf32> to vector<8x8x32xf32>
    %57 = vector.shape_cast %56 : vector<8x8x32xf32> to vector<64x32xf32>
    %58 = arith.truncf %57 : vector<64x32xf32> to vector<64x32xbf16>
    %c6 = arith.constant 6 : index
    %c0_46 = arith.constant 0 : index
    %c0_47 = arith.constant 0 : index
    %59 = vector.load %arg6[%c6, %c0_46, %c0_47] : memref<9x32x32xf32, #tpu.memory_space<vmem>>, vector<1x32x32xf32>
    %60 = vector.shape_cast %59 : vector<1x32x32xf32> to vector<32x32xf32>
    %61 = arith.truncf %60 : vector<32x32xf32> to vector<32x32xbf16>
    %cst_48 = arith.constant dense<0.000000e+00> : vector<64x32xf32>
    %62 = tpu.matmul %58, %61, %cst_48 {dimension_numbers = #tpu.dot_dimension_numbers<[1], [0], [0], [1], [0, 0, 1, 1], [], []>} : vector<64x32xbf16>, vector<32x32xbf16>, vector<64x32xf32> -> vector<64x32xf32>
    %63 = arith.addf %54, %62 : vector<64x32xf32>
    %c0_49 = arith.constant 0 : index
    %c1_50 = arith.constant 1 : index
    %c0_51 = arith.constant 0 : index
    %c0_52 = arith.constant 0 : index
    %64 = vector.load %arg2[%c0_49, %c1_50, %c0_51, %c0_52] : memref<1x9x9x32xf32, #tpu.memory_space<vmem>>, vector<1x8x8x32xf32>
    %65 = vector.shape_cast %64 : vector<1x8x8x32xf32> to vector<8x8x32xf32>
    %66 = vector.shape_cast %65 : vector<8x8x32xf32> to vector<64x32xf32>
    %67 = arith.truncf %66 : vector<64x32xf32> to vector<64x32xbf16>
    %c7 = arith.constant 7 : index
    %c0_53 = arith.constant 0 : index
    %c0_54 = arith.constant 0 : index
    %68 = vector.load %arg6[%c7, %c0_53, %c0_54] : memref<9x32x32xf32, #tpu.memory_space<vmem>>, vector<1x32x32xf32>
    %69 = vector.shape_cast %68 : vector<1x32x32xf32> to vector<32x32xf32>
    %70 = arith.truncf %69 : vector<32x32xf32> to vector<32x32xbf16>
    %cst_55 = arith.constant dense<0.000000e+00> : vector<64x32xf32>
    %71 = tpu.matmul %67, %70, %cst_55 {dimension_numbers = #tpu.dot_dimension_numbers<[1], [0], [0], [1], [0, 0, 1, 1], [], []>} : vector<64x32xbf16>, vector<32x32xbf16>, vector<64x32xf32> -> vector<64x32xf32>
    %72 = arith.addf %63, %71 : vector<64x32xf32>
    %c0_56 = arith.constant 0 : index
    %c1_57 = arith.constant 1 : index
    %c1_58 = arith.constant 1 : index
    %c0_59 = arith.constant 0 : index
    %73 = vector.load %arg1[%c0_56, %c1_57, %c1_58, %c0_59] : memref<1x9x9x32xf32, #tpu.memory_space<vmem>>, vector<1x8x8x32xf32>
    %74 = vector.shape_cast %73 : vector<1x8x8x32xf32> to vector<8x8x32xf32>
    %75 = vector.shape_cast %74 : vector<8x8x32xf32> to vector<64x32xf32>
    %76 = arith.truncf %75 : vector<64x32xf32> to vector<64x32xbf16>
    %c8 = arith.constant 8 : index
    %c0_60 = arith.constant 0 : index
    %c0_61 = arith.constant 0 : index
    %77 = vector.load %arg6[%c8, %c0_60, %c0_61] : memref<9x32x32xf32, #tpu.memory_space<vmem>>, vector<1x32x32xf32>
    %78 = vector.shape_cast %77 : vector<1x32x32xf32> to vector<32x32xf32>
    %79 = arith.truncf %78 : vector<32x32xf32> to vector<32x32xbf16>
    %cst_62 = arith.constant dense<0.000000e+00> : vector<64x32xf32>
    %80 = tpu.matmul %76, %79, %cst_62 {dimension_numbers = #tpu.dot_dimension_numbers<[1], [0], [0], [1], [0, 0, 1, 1], [], []>} : vector<64x32xbf16>, vector<32x32xbf16>, vector<64x32xf32> -> vector<64x32xf32>
    %81 = arith.addf %72, %80 : vector<64x32xf32>
    %c0_63 = arith.constant 0 : index
    %c0_64 = arith.constant 0 : index
    %82 = vector.load %arg7[%c0_63, %c0_64] : memref<1x32xf32, #tpu.memory_space<vmem>>, vector<1x32xf32>
    %83 = vector.broadcast %82 : vector<1x32xf32> to vector<64x32xf32>
    %84 = arith.addf %81, %83 : vector<64x32xf32>
    %c0_65 = arith.constant 0 : index
    %c0_66 = arith.constant 0 : index
    %c0_67 = arith.constant 0 : index
    %c0_68 = arith.constant 0 : index
    %85 = vector.load %arg5[%c0_65, %c0_66, %c0_67, %c0_68] : memref<1x8x8x16xf32, #tpu.memory_space<vmem>>, vector<1x8x8x16xf32>
    %86 = vector.shape_cast %85 : vector<1x8x8x16xf32> to vector<8x8x16xf32>
    %87 = vector.shape_cast %86 : vector<8x8x16xf32> to vector<64x16xf32>
    %88 = arith.truncf %87 : vector<64x16xf32> to vector<64x16xbf16>
    %c0_69 = arith.constant 0 : index
    %c0_70 = arith.constant 0 : index
    %89 = vector.load %arg8[%c0_69, %c0_70] : memref<16x32xf32, #tpu.memory_space<vmem>>, vector<16x32xf32>
    %90 = arith.truncf %89 : vector<16x32xf32> to vector<16x32xbf16>
    %cst_71 = arith.constant dense<0.000000e+00> : vector<64x32xf32>
    %91 = tpu.matmul %88, %90, %cst_71 {dimension_numbers = #tpu.dot_dimension_numbers<[1], [0], [0], [1], [0, 0, 1, 1], [], []>} : vector<64x16xbf16>, vector<16x32xbf16>, vector<64x32xf32> -> vector<64x32xf32>
    %c0_72 = arith.constant 0 : index
    %c0_73 = arith.constant 0 : index
    %92 = vector.load %arg9[%c0_72, %c0_73] : memref<1x32xf32, #tpu.memory_space<vmem>>, vector<1x32xf32>
    %93 = vector.broadcast %92 : vector<1x32xf32> to vector<64x32xf32>
    %94 = arith.addf %91, %93 : vector<64x32xf32>
    %95 = arith.addf %84, %94 : vector<64x32xf32>
    %cst_74 = arith.constant 0.707106769 : f32
    %96 = vector.broadcast %cst_74 : f32 to vector<64x32xf32>
    %97 = arith.mulf %95, %96 : vector<64x32xf32>
    %c0_75 = arith.constant 0 : index
    %c0_76 = arith.constant 0 : index
    %c0_77 = arith.constant 0 : index
    %98 = vector.load %arg10[%c0_75, %c0_76, %c0_77] : memref<1x64x32xf32, #tpu.memory_space<vmem>>, vector<1x64x32xf32>
    %99 = vector.shape_cast %98 : vector<1x64x32xf32> to vector<64x32xf32>
    %100 = vector.shape_cast %97 : vector<64x32xf32> to vector<1x64x32xf32>
    tpu.vector_store %arg10[%c0_75, %c0_76, %c0_77], %100 {strides = array<i32>} : memref<1x64x32xf32, #tpu.memory_space<vmem>>, vector<1x64x32xf32>,
    return
  }
  func.func @transform_0(%arg0: i32) -> (i32, i32, i32, i32) {
    %c0_i32 = arith.constant 0 : i32
    %c0_i32_0 = arith.constant 0 : i32
    %c0_i32_1 = arith.constant 0 : i32
    %c0_i32_2 = arith.constant 0 : i32
    return %arg0, %c0_i32, %c0_i32_0, %c0_i32_1 : i32, i32, i32, i32
  }
  func.func @transform_1(%arg0: i32) -> (i32, i32, i32, i32) {
    %c0_i32 = arith.constant 0 : i32
    %c0_i32_0 = arith.constant 0 : i32
    %c0_i32_1 = arith.constant 0 : i32
    %c0_i32_2 = arith.constant 0 : i32
    return %arg0, %c0_i32, %c0_i32_0, %c0_i32_1 : i32, i32, i32, i32
  }
  func.func @transform_2(%arg0: i32) -> (i32, i32, i32, i32) {
    %c0_i32 = arith.constant 0 : i32
    %c0_i32_0 = arith.constant 0 : i32
    %c0_i32_1 = arith.constant 0 : i32
    %c0_i32_2 = arith.constant 0 : i32
    return %arg0, %c0_i32, %c0_i32_0, %c0_i32_1 : i32, i32, i32, i32
  }
  func.func @transform_3(%arg0: i32) -> (i32, i32, i32, i32) {
    %c0_i32 = arith.constant 0 : i32
    %c0_i32_0 = arith.constant 0 : i32
    %c0_i32_1 = arith.constant 0 : i32
    %c0_i32_2 = arith.constant 0 : i32
    return %arg0, %c0_i32, %c0_i32_0, %c0_i32_1 : i32, i32, i32, i32
  }
  func.func @transform_4(%arg0: i32) -> (i32, i32, i32, i32) {
    %c0_i32 = arith.constant 0 : i32
    %c0_i32_0 = arith.constant 0 : i32
    %c0_i32_1 = arith.constant 0 : i32
    %c0_i32_2 = arith.constant 0 : i32
    return %arg0, %c0_i32, %c0_i32_0, %c0_i32_1 : i32, i32, i32, i32
  }
  func.func @transform_5(%arg0: i32) -> (i32, i32, i32) {
    %c0_i32 = arith.constant 0 : i32
    %c0_i32_0 = arith.constant 0 : i32
    %c0_i32_1 = arith.constant 0 : i32
    %c0_i32_2 = arith.constant 0 : i32
    return %c0_i32, %c0_i32_0, %c0_i32_1 : i32, i32, i32
  }
  func.func @transform_6(%arg0: i32) -> (i32, i32) {
    %c0_i32 = arith.constant 0 : i32
    %c0_i32_0 = arith.constant 0 : i32
    %c0_i32_1 = arith.constant 0 : i32
    return %c0_i32, %c0_i32_0 : i32, i32
  }
  func.func @transform_7(%arg0: i32) -> (i32, i32) {
    %c0_i32 = arith.constant 0 : i32
    %c0_i32_0 = arith.constant 0 : i32
    %c0_i32_1 = arith.constant 0 : i32
    return %c0_i32, %c0_i32_0 : i32, i32
  }
  func.func @transform_8(%arg0: i32) -> (i32, i32) {
    %c0_i32 = arith.constant 0 : i32
    %c0_i32_0 = arith.constant 0 : i32
    %c0_i32_1 = arith.constant 0 : i32
    return %c0_i32, %c0_i32_0 : i32, i32
  }
  func.func @transform_9(%arg0: i32) -> (i32, i32, i32) {
    %c0_i32 = arith.constant 0 : i32
    %c0_i32_0 = arith.constant 0 : i32
    %c0_i32_1 = arith.constant 0 : i32
    return %arg0, %c0_i32, %c0_i32_0 : i32, i32, i32
  }
}

</mosaic_0001>

<bundles_post_ra>
// kernel: discriminator_block_forward.3
= control target key start
LH: loop header
LB: loop body
LE: loop exit
PB: predicated region body
PF: predicated region fallthrough
CT: control target
= control target key end

     0   :  { %s2550_s0 = inlined_call_operand.vmem [shape: f32[2,9,9,32], index: 0, kind: input, shape index: {}]   ;;  %s2551_s1 = inlined_call_operand.vmem [shape: f32[2,9,9,32], index: 1, kind: input, shape index: {}]   ;;  %s2552_s2 = inlined_call_operand.vmem [shape: f32[2,9,9,32], index: 2, kind: input, shape index: {}]   ;;  %s2553_s3 = inlined_call_operand.vmem [shape: f32[2,9,9,32], index: 3, kind: input, shape index: {}]   ;;  %s2554_s4 = inlined_call_operand.vmem [shape: f32[2,8,8,16], index: 4, kind: input, shape index: {}]   ;;  %s2555_s5 = inlined_call_operand.vmem [shape: f32[9,32,32], index: 5, kind: input, shape index: {}]   ;;  %s2556_s6 = inlined_call_operand.vmem [shape: f32[1,32], index: 6, kind: input, shape index: {}]   ;;  %s2557_s7 = inlined_call_operand.vmem [shape: f32[16,32], index: 7, kind: input, shape index: {}]   ;;  %s2558_s8 = inlined_call_operand.vmem [shape: f32[1,32], index: 8, kind: input, shape index: {}]   ;;  %s2559_s9 = inlined_call_operand.hbm [shape: f32[2,64,32], index: 9, kind: output, shape index: {}]  }
   0x1   :  { %2560 = sst [smem:[#allocation5_spill]] %s2550_s0 }
   0x2   :  { %14 = vsyncpa [#allocation3], 0 }
   0x3   :  { %16 = vsyncpa [#allocation3 + $0x1], 0  ;;  %s2137_s30 = smov 0   ;;  %s2139_s10 = smov 0  }
   0x4   :  { %s2141_s11 = smov 0   ;;  %s2143_s12 = smov 0  }
   0x5 LB: > { %s2158_s13 = sadd.s32 4294967295, %s2082_s12   ;;  %s1597_s14 = sadd.s32 4294967294, %s2082_s12   ;;  %s2082_s12 = sphi %s2143_s12, %s2567_s12   ;;  %s2078_s11 = sphi %s2141_s11, %s2566_s11   ;;  %s2074_s10 = sphi %s2139_s10, %s2565_s10   ;;  %s2070_s30 = sphi %s2137_s30, %s2564_s30  }
   0x6   : > { %s2162_s15 = sadd.s32 1, %s2082_s12   ;;  %s243_s16 = sadd.s32 1, %s2078_s11 }
   0x7   : > { %s240_s17 = ssub.s32 %s2082_s12, %s2162_s15  ;;  %p253_p0 = scmp.ne.s32.totalorder %s2078_s11, %s2074_s10 }
   0x8   : > { %p241_p1 = scmp.eq.s32.totalorder %s240_s17, 0  ;;  %p254_p2 = scmp.eq.s32.totalorder %s2158_s13, 1 }
   0x9   : > { %p259_p3 = scmp.ne.s32.totalorder %s2074_s10, %s2070_s30  ;;  %p260_p4 = scmp.eq.s32.totalorder %s1597_s14, 1 }
   0xa   : > { %s2173_s18 = scalar_select %p241_p1, %s2078_s11, %s243_s16  }
   0xb   : > { %p2175_p5 = por %p254_p2, %p253_p0  ;;  %p2179_p6 = por %p260_p4, %p259_p3 }
   0xc   : > { %p1600_p7 = scmp.ge.s32.totalorder %s2082_s12, 1  ;;  %p330_p8 = scmp.lt.s32.totalorder %s2082_s12, 3 }
   0xe   : > { %p331_p9 = pnand %p1600_p7, %p330_p8 }
   0xf   : > { %v1608_v0 = vld [vmem:[%s2555_s5 + $0x20] sm:$0xff] (!%p331_p9)  ;;  %v1609_v1 = vld [vmem:[%s2555_s5 + $0x28] sm:$0xff] (!%p331_p9)  ;;  %p386_p10 = scmp.lt.s32.totalorder (!%p331_p9), %s2158_s13, 1  ;;  %v1610_v5 = vld [vmem:[%s2555_s5 + $0x30] sm:$0xff] (!%p331_p9)  ;;  %vm449_vm0 = vcmask (!%p331_p9), 261120   ;;  %s2563_s0 = sld [smem:[#allocation5_spill]] (!%p331_p9) }
  0x10   : > { %334 = sbr.rel (%p331_p9) target bundleno = 343 (0x157), region = 56  ;;  %v1644_v2 = vld [vmem:[%s2555_s5 + $0xa0] sm:$0xff] (!%p331_p9)  ;;  %v447_v3 = vpack.c.bf16 (!%p331_p9), %v1609_v1, %v1608_v0  ;;  %v1645_v4 = vld [vmem:[%s2555_s5 + $0xa8] sm:$0xff] (!%p331_p9)  ;;  %v1611_v6 = vld [vmem:[%s2555_s5 + $0x38] sm:$0xff] (!%p331_p9)  ;;  %vm1371_vm1 = vcmask (!%p331_p9), 130048   ;;  %s1712_s29 = sshll.u32 (!%p331_p9), %s2158_s13, 10 }
  0x11   : > { %v933_v7 = vpack.c.bf16 (!%p331_p9), %v1645_v4, %v1644_v2  ;;  %v448_v8 = vpack.c.bf16 (!%p331_p9), %v1611_v6, %v1610_v5  ;;  %v1646_v9 = vld [vmem:[%s2555_s5 + $0xb0] sm:$0xff] (!%p331_p9)  ;;  %v1647_v10 = vld [vmem:[%s2555_s5 + $0xb8] sm:$0xff] (!%p331_p9)  ;;  %v424_v11 = vld [vmem:[%s2555_s5] sm:$0xff] (!%p331_p9) }
  0x12   : > { %1772 = vmatprep.subr.bf16.mxu1 (!%p331_p9), %v447_v3  ;;  %v934_v12 = vpack.c.bf16 (!%p331_p9), %v1647_v10, %v1646_v9  ;;  %v425_v13 = vld [vmem:[%s2555_s5 + $0x8] sm:$0xff] (!%p331_p9)  ;;  %v1660_v14 = vld [vmem:[%s2555_s5 + $0xc0] sm:$0xff] (!%p331_p9)  ;;  %v426_v17 = vld [vmem:[%s2555_s5 + $0x10] sm:$0xff] (!%p331_p9) }
  0x13   : > { %v1661_v15 = vld [vmem:[%s2555_s5 + $0xc8] sm:$0xff] (!%p331_p9)  ;;  %1832 = vmatprep.subr.bf16.mxu0 (!%p331_p9), %v933_v7  ;;  %1773 = vmatpush3.bf16.msra.mxu1 (!%p331_p9), %v447_v3  ;;  %v428_v16 = vpack.c.bf16 (!%p331_p9), %v425_v13, %v424_v11  ;;  %v427_v19 = vld [vmem:[%s2555_s5 + $0x18] sm:$0xff] (!%p331_p9)  ;;  %v1662_v20 = vld [vmem:[%s2555_s5 + $0xd0] sm:$0xff] (!%p331_p9) }
  0x14   : > { %1833 = vmatpush3.bf16.msra.mxu0 (!%p331_p9), %v933_v7  ;;  %1774 = vmatprep.subr.bf16.mxu1 (!%p331_p9), %v448_v8  ;;  %v1038_v18 = vpack.c.bf16 (!%p331_p9), %v1661_v15, %v1660_v14  ;;  %v1663_v21 = vld [vmem:[%s2555_s5 + $0xd8] sm:$0xff] (!%p331_p9)  ;;  %v1620_v29 = vld [vmem:[%s2555_s5 + $0x40] sm:$0xff] (!%p331_p9)  ;;  %v1621_v30 = vld [vmem:[%s2555_s5 + $0x48] sm:$0xff] (!%p331_p9)  ;;  %v429_v40 = vpack.c.bf16 (!%p331_p9), %v427_v19, %v426_v17 }
  0x15   : > { %1834 = vmatprep.subr.bf16.mxu0 (!%p331_p9), %v934_v12  ;;  %v1039_v43 = vpack.c.bf16 (!%p331_p9), %v1663_v21, %v1662_v20  ;;  %v1676_v44 = vld [vmem:[%s2555_s5 + $0xe0] sm:$0xff] (!%p331_p9)  ;;  %v1677_v45 = vld [vmem:[%s2555_s5 + $0xe8] sm:$0xff] (!%p331_p9)  ;;  %v621_v52 = vpack.c.bf16 (!%p331_p9), %v1621_v30, %v1620_v29  ;;  %v1622_v0 = vld [vmem:[%s2555_s5 + $0x50] sm:$0xff] (!%p331_p9) }
  0x16   : > { %v1143_v54 = vpack.c.bf16 (!%p331_p9), %v1677_v45, %v1676_v44  ;;  %v1623_v1 = vld [vmem:[%s2555_s5 + $0x58] sm:$0xff] (!%p331_p9)  ;;  %v1678_v3 = vld [vmem:[%s2555_s5 + $0xf0] sm:$0xff] (!%p331_p9)  ;;  %v1629_v9 = vld [vmem:[%s2555_s5 + $0x68] sm:$0xff] (!%p331_p9) }
  0x17   : > { %s2211_s25 = scalar_select %p386_p10, %s2158_s13, 1  ;;  %1775 = vmatpush3.bf16.msra.mxu1 %v448_v8  ;;  %v1679_v4 = vld [vmem:[%s2555_s5 + $0xf8] sm:$0xff]  ;;  %v622_v7 = vpack.c.bf16 %v1623_v1, %v1622_v0  ;;  %v1628_v8 = vld [vmem:[%s2555_s5 + $0x60] sm:$0xff] }
  0x18   : > { %1835 = vmatpush3.bf16.msra.mxu0 %v934_v12  ;;  %1784 = vmatprep.subr.bf16.mxu1 %v428_v16  ;;  %v1144_v10 = vpack.c.bf16 %v1679_v4, %v1678_v3  ;;  %v1692_v11 = vld [vmem:[%s2555_s5 + $0x100] sm:$0xff]  ;;  %v1693_v12 = vld [vmem:[%s2555_s5 + $0x108] sm:$0xff]  ;;  %v725_v17 = vpack.c.bf16 %v1629_v9, %v1628_v8 }
  0x19   : > { %s2226_s22 = smul.u32 144, %s2211_s25  ;;  %1844 = vmatprep.subr.bf16.mxu0 %v1038_v18  ;;  %s1711_s26 = sshll.u32 %s2211_s25, 6 }
  0x1a   : > { %s2437_s17 = scalar_lea.vmem %s2554_s4, %s1711_s26  ;;  %s2084_s25 = smov [#allocation2]  }
  0x1b   : > { %s2235_s28 = scalar_lea.vmem %s2551_s1, %s2226_s22  ;;  %s2254_s27 = scalar_lea.vmem %s2552_s2, %s2226_s22  ;;  %v1349_v4 = vld [vmem:[%s2437_s17] sm:$0xff] }
  0x1c   : > { %v430_v22 = vld [vmem:[%s2235_s28] sm:$0xff]  ;;  %v2248_v23 = vld [vmem:[%s2235_s28 + $0x10] sm:$0xff]  ;;  %s2282_s24 = scalar_lea.vmem %s2563_s0, %s2226_s22  ;;  %s2431_s14 = scalar_lea.vmem %s2553_s3, %s2226_s22 }
  0x1d   : > { %v2257_v24 = vld [vmem:[%s2235_s28 + $0x20] sm:$0xff]  ;;  %v438_v25 = vpack.c.bf16 %v2248_v23, %v430_v22  ;;  %v917_v27 = vld [vmem:[%s2254_s27 + $0x11] sm:$0xff]  ;;  %s2024_s22 = sshll.u32 %s2084_s25, 4  ;;  %s2025_s22 = int_to_ptr.vmem [resolvable:$false] %s2024_s22 }
  0x1e   : > { %v916_v26 = vld [vmem:[%s2254_s27 + $0x1] sm:$0xff]  ;;  %v2263_v28 = vld [vmem:[%s2235_s28 + $0x30] sm:$0xff]  ;;  %v1134_v22 = vpack.c.bf16 %v2257_v24, %v2248_v23 }
  0x1f   : > { %v924_v31 = vpack.c.bf16 %v917_v27, %v916_v26  ;;  %v439_v32 = vpack.c.bf16 %v2263_v28, %v2257_v24  ;;  %v918_v33 = vld [vmem:[%s2254_s27 + $0x21] sm:$0xff]  ;;  %v919_v34 = vld [vmem:[%s2254_s27 + $0x31] sm:$0xff]  ;;  %1776 = vmatprep.mubr.msk.bf16.mxu1 %vm449_vm0, %v438_v25 }
  0x20   : > { %v2276_v35 = vld [vmem:[%s2235_s28 + $0x40] sm:$0xff]  ;;  %v925_v36 = vpack.c.bf16 %v919_v34, %v918_v33  ;;  %v2286_v37 = vld [vmem:[%s2235_s28 + $0x50] sm:$0xff]  ;;  %v1631_v24 = vld [vmem:[%s2555_s5 + $0x78] sm:$0xff] }
  0x21   : > { %v920_v38 = vld [vmem:[%s2254_s27 + $0x41] sm:$0xff]  ;;  %v921_v39 = vld [vmem:[%s2254_s27 + $0x51] sm:$0xff]  ;;  %1836 = vmatprep.mubr.msk.bf16.mxu0 %vm449_vm0, %v924_v31  ;;  %1777 = vmatmul.mubr.msk.bf16.vlgmr.msra.gmra.mrb[0].mxu1 %vm449_vm0, %v439_v32  ;;  %v440_v41 = vpack.c.bf16 %v2286_v37, %v2276_v35  ;;  %v1135_v31 = vpack.c.bf16 %v2276_v35, %v2263_v28 }
  0x22   : > { %v926_v42 = vpack.c.bf16 %v921_v39, %v920_v38  ;;  %1837 = vmatmul.mubr.msk.bf16.vlgmr.msra.gmra.mrb[0].mxu0 %vm449_vm0, %v925_v36  ;;  %1785 = vmatpush3.bf16.msra.mxu1 %v428_v16  ;;  %v2302_v46 = vld [vmem:[%s2235_s28 + $0x60] sm:$0xff]  ;;  %v2305_v47 = vld [vmem:[%s2235_s28 + $0x70] sm:$0xff]  ;;  %v1695_v33 = vld [vmem:[%s2555_s5 + $0x118] sm:$0xff] }
  0x23   : > { %v922_v48 = vld [vmem:[%s2254_s27 + $0x61] sm:$0xff]  ;;  %1845 = vmatpush3.bf16.msra.mxu0 %v1038_v18  ;;  %1780 = vmatprep.mubr.msk.bf16.mxu1 %vm449_vm0, %v440_v41  ;;  %v923_v49 = vld [vmem:[%s2254_s27 + $0x71] sm:$0xff]  ;;  %v441_v55 = vpack.c.bf16 %v2305_v47, %v2302_v46  ;;  %v1247_v18 = vpack.c.bf16 %v1693_v12, %v1692_v11  ;;  %v1136_v36 = vpack.c.bf16 %v2302_v46, %v2286_v37 }
  0x24   : > { %v412_v50 = vld [vmem:[%s2282_s24] sm:$0xff]  ;;  %v413_v51 = vld [vmem:[%s2282_s24 + $0x10] sm:$0xff]  ;;  %1840 = vmatprep.mubr.msk.bf16.mxu0 %vm449_vm0, %v926_v42  ;;  %1786 = vmatprep.subr.bf16.mxu1 %v429_v40  ;;  %v927_v56 = vpack.c.bf16 %v923_v49, %v922_v48  ;;  %v1637_v35 = vld [vmem:[%s2555_s5 + $0x88] sm:$0xff] }
  0x25   : > { %v1653_v53 = vld [vmem:[%s2282_s24 + $0x20] sm:$0xff]  ;;  %1846 = vmatprep.subr.bf16.mxu0 %v1039_v43  ;;  %v420_v57 = vpack.c.bf16 %v413_v51, %v412_v50  ;;  %v415_v59 = vld [vmem:[%s2282_s24 + $0x30] sm:$0xff]  ;;  %v1362_v37 = vld [vmem:[%s2557_s7 + $0x8] sm:$0xff] }
  0x26   : > { %1787 = vmatpush3.bf16.msra.mxu1 %v429_v40  ;;  %v1029_v58 = vpack.c.bf16 %v1653_v53, %v413_v51  ;;  %v1655_v60 = vld [vmem:[%s2282_s24 + $0x40] sm:$0xff]  ;;  %v417_v61 = vld [vmem:[%s2282_s24 + $0x50] sm:$0xff]  ;;  %v421_v62 = vpack.c.bf16 %v415_v59, %v1653_v53 }
  0x27   : > { %1847 = vmatpush3.bf16.msra.mxu0 %v1039_v43  ;;  %1796 = vmatprep.subr.bf16.mxu1 %v621_v52  ;;  %v1657_v63 = vld [vmem:[%s2282_s24 + $0x60] sm:$0xff]  ;;  %v1030_v2 = vpack.c.bf16 %v1655_v60, %v415_v59  ;;  %v422_v5 = vpack.c.bf16 %v417_v61, %v1655_v60  ;;  %v419_v13 = vld [vmem:[%s2282_s24 + $0x70] sm:$0xff] }
  0x28   : > { %1856 = vmatprep.subr.bf16.mxu0 %v1143_v54  ;;  %v1031_v6 = vpack.c.bf16 %v1657_v63, %v417_v61  ;;  %v1659_v14 = vld [vmem:[%s2282_s24 + $0x80] sm:$0xff]  ;;  %v2355_v16 = vld [vmem:[%s2282_s24 + $0x11] sm:$0xff]  ;;  %v423_v19 = vpack.c.bf16 %v419_v13, %v1657_v63 }
  0x29   : > { %1781 = vmatmul.mubr.msk.bf16.gmra.mrb[4].mxu1 %vm449_vm0, %v441_v55  ;;  %v604_v15 = vld [vmem:[%s2282_s24 + $0x1] sm:$0xff]  ;;  %v1032_v20 = vpack.c.bf16 %v1659_v14, %v419_v13  ;;  %v607_v26 = vld [vmem:[%s2282_s24 + $0x31] sm:$0xff] }
  0x2a   : > { %1841 = vmatmul.mubr.msk.bf16.gmra.mrb[4].mxu0 %vm449_vm0, %v927_v56  ;;  %1788 = vmatprep.mubr.msk.bf16.mxu1 %vm449_vm0, %v420_v57  ;;  %v612_v21 = vpack.c.bf16 %v2355_v16, %v604_v15  ;;  %v606_v25 = vld [vmem:[%s2282_s24 + $0x21] sm:$0xff]  ;;  %v2369_v29 = vld [vmem:[%s2282_s24 + $0x51] sm:$0xff] }
  0x2b   : > { %1848 = vmatprep.mubr.msk.bf16.mxu0 %vm449_vm0, %v1029_v58  ;;  %v608_v27 = vld [vmem:[%s2282_s24 + $0x41] sm:$0xff]  ;;  %v613_v30 = vpack.c.bf16 %v607_v26, %v606_v25  ;;  %v1630_v23 = vld [vmem:[%s2555_s5 + $0x70] sm:$0xff]  ;;  %v1639_v58 = vld [vmem:[%s2555_s5 + $0x98] sm:$0xff] }
  0x2c   : > { %v1694_v32 = vld [vmem:[%s2555_s5 + $0x110] sm:$0xff]  ;;  %v614_v34 = vpack.c.bf16 %v2369_v29, %v608_v27  ;;  %v726_v38 = vpack.c.bf16 %v1631_v24, %v1630_v23  ;;  %v1636_v28 = vld [vmem:[%s2555_s5 + $0x80] sm:$0xff]  ;;  %v1239_v59 = vpack.c.bf16 %v608_v27, %v607_v26  ;;  %v1352_v13 = vld [vmem:[%s2437_s17 + $0x18] sm:$0xff] }
  0x2d   : > { %v1248_v39 = vpack.c.bf16 %v1695_v33, %v1694_v32  ;;  %v1361_v40 = vld [vmem:[%s2557_s7] sm:$0xff]  ;;  %v611_v42 = vld [vmem:[%s2282_s24 + $0x71] sm:$0xff]  ;;  %v829_v46 = vpack.c.bf16 %v1637_v35, %v1636_v28 }
  0x2e   : > { %v610_v41 = vld [vmem:[%s2282_s24 + $0x61] sm:$0xff]  ;;  %v709_v45 = vld [vmem:[%s2254_s27 + $0x10] sm:$0xff]  ;;  %v1363_v48 = vpack.c.bf16 %v1362_v37, %v1361_v40  ;;  %v1356_v27 = vld [vmem:[%s2437_s17 + $0x38] sm:$0xff] }
  0x2f   : > { %v1675_v43 = vld [vmem:[%s2235_s28 + $0x80] sm:$0xff]  ;;  %v615_v49 = vpack.c.bf16 %v611_v42, %v610_v41  ;;  %v713_v55 = vld [vmem:[%s2254_s27 + $0x50] sm:$0xff]  ;;  %v1240_v61 = vpack.c.bf16 %v610_v41, %v2369_v29  ;;  %s2497_s28 = scalar_lea.hbm %s2559_s9, %s1712_s29 }
  0x30   : > { %v708_v44 = vld [vmem:[%s2254_s27] sm:$0xff]  ;;  %v1137_v50 = vpack.c.bf16 %v1675_v43, %v2305_v47  ;;  %v1638_v57 = vld [vmem:[%s2555_s5 + $0x90] sm:$0xff] }
  0x31   : > { %1789 = vmatmul.mubr.msk.bf16.vlgmr.msra.gmra.mrb[0].mxu1 %vm449_vm0, %v421_v62  ;;  %v716_v51 = vpack.c.bf16 %v709_v45, %v708_v44  ;;  %v710_v53 = vld [vmem:[%s2254_s27 + $0x20] sm:$0xff]  ;;  %v830_v62 = vpack.c.bf16 %v1639_v58, %v1638_v57  ;;  %v715_v0 = vld [vmem:[%s2254_s27 + $0x70] sm:$0xff] }
  0x32   : > { %1849 = vmatmul.mubr.msk.bf16.vlgmr.msra.gmra.mrb[0].mxu0 %vm449_vm0, %v1030_v2  ;;  %1797 = vmatpush3.bf16.msra.mxu1 %v621_v52  ;;  %v1238_v52 = vpack.c.bf16 %v606_v25, %v2355_v16  ;;  %v712_v47 = vld [vmem:[%s2254_s27 + $0x40] sm:$0xff]  ;;  %v813_v3 = vld [vmem:[%s2431_s14 + $0x10] sm:$0xff] }
  0x33   : > { %1857 = vmatpush3.bf16.msra.mxu0 %v1143_v54  ;;  %1792 = vmatprep.mubr.msk.bf16.mxu1 %vm449_vm0, %v422_v5  ;;  %v711_v54 = vld [vmem:[%s2254_s27 + $0x30] sm:$0xff]  ;;  %v718_v60 = vpack.c.bf16 %v713_v55, %v712_v47  ;;  %v714_v63 = vld [vmem:[%s2254_s27 + $0x60] sm:$0xff]  ;;  %v1350_v5 = vld [vmem:[%s2437_s17 + $0x8] sm:$0xff]  ;;  %s383_s27 = sand.u32 1, %s2074_s10  }
  0x34   : > { %1852 = vmatprep.mubr.msk.bf16.mxu0 %vm449_vm0, %v1031_v6  ;;  %1798 = vmatprep.subr.bf16.mxu1 %v622_v7  ;;  %v717_v56 = vpack.c.bf16 %v711_v54, %v710_v53  ;;  %v1691_v1 = vld [vmem:[%s2282_s24 + $0x81] sm:$0xff]  ;;  %v719_v6 = vpack.c.bf16 %v715_v0, %v714_v63  ;;  %v1357_v9 = vpack.c.bf16 %v1350_v5, %v1349_v4  ;;  %v815_v11 = vld [vmem:[%s2431_s14 + $0x30] sm:$0xff]  ;;  %v1700_v23 = vld [vmem:[%s2556_s6] ss:$0 sm:$0xff]  ;;  %s1601_s23 = sshll.u32 %s383_s27, 6  ;;  %s2509_s13 = scalar_lea.sflag [#allocation3], %s383_s27 }
  0x35   : > { %1858 = vmatprep.subr.bf16.mxu0 %v1144_v10  ;;  %v812_v2 = vld [vmem:[%s2431_s14] sm:$0xff]  ;;  %v1351_v12 = vld [vmem:[%s2437_s17 + $0x10] sm:$0xff]  ;;  %s2480_s26 = scalar_lea.vmem [#allocation2], %s1601_s23  ;;  %s2026_s24 = scalar_lea.vmem %s2025_s22, 2048 }
  0x36   : > { %1799 = vmatpush3.bf16.msra.mxu1 %v622_v7  ;;  %v1241_v7 = vpack.c.bf16 %v1691_v1, %v611_v42  ;;  %v820_v8 = vpack.c.bf16 %v813_v3, %v812_v2  ;;  %v816_v14 = vld [vmem:[%s2431_s14 + $0x40] sm:$0xff]  ;;  %v817_v15 = vld [vmem:[%s2431_s14 + $0x50] sm:$0xff]  ;;  %s1487_s0 = sshll.u32 %s2480_s26, 4  ;;  %s2499_s0 = int_to_ptr.vmem [resolvable:$true] %s1487_s0 }
  0x37   : > { %1859 = vmatpush3.bf16.msra.mxu0 %v1144_v10  ;;  %1808 = vmatprep.subr.bf16.mxu1 %v725_v17  ;;  %v814_v10 = vld [vmem:[%s2431_s14 + $0x20] sm:$0xff]  ;;  %v819_v25 = vld [vmem:[%s2431_s14 + $0x70] sm:$0xff]  ;;  %p2027_p0 = scmp.lt.s32.totalorder %s2499_s0, %s2025_s22 }
  0x38   : > { %1868 = vmatprep.subr.bf16.mxu0 %v1247_v18  ;;  %v1353_v16 = vld [vmem:[%s2437_s17 + $0x20] sm:$0xff]  ;;  %v1355_v26 = vld [vmem:[%s2437_s17 + $0x30] sm:$0xff] }
  0x39   : > { %1793 = vmatmul.mubr.msk.bf16.gmra.mrb[4].mxu1 %vm449_vm0, %v423_v19  ;;  %v1358_v19 = vpack.c.bf16 %v1352_v13, %v1351_v12 }
  0x3a   : > { %1853 = vmatmul.mubr.msk.bf16.gmra.mrb[4].mxu0 %vm449_vm0, %v1032_v20  ;;  %1800 = vmatprep.mubr.msk.bf16.mxu1 %vm449_vm0, %v612_v21  ;;  %v822_v20 = vpack.c.bf16 %v817_v15, %v816_v14 }
  0x3b   : > { %1860 = vmatprep.mubr.msk.bf16.mxu0 %vm449_vm0, %v1134_v22  ;;  %v818_v22 = vld [vmem:[%s2431_s14 + $0x60] sm:$0xff] }
  0x3c   : > { %v823_v29 = vpack.c.bf16 %v819_v25, %v818_v22 }
  0x41   : > { %1801 = vmatmul.mubr.msk.bf16.vlgmr.msra.gmra.mrb[0].mxu1 %vm449_vm0, %v613_v30  ;;  %v1360_v30 = vpack.c.bf16 %v1356_v27, %v1355_v26 }
  0x42   : > { %1861 = vmatmul.mubr.msk.bf16.vlgmr.msra.gmra.mrb[0].mxu0 %vm449_vm0, %v1135_v31  ;;  %1809 = vmatpush3.bf16.msra.mxu1 %v725_v17  ;;  %v1354_v17 = vld [vmem:[%s2437_s17 + $0x28] sm:$0xff]  ;;  %s2020_s17 = scalar_lea.vmem %s2499_s0, 1024 }
  0x43   : > { %1869 = vmatpush3.bf16.msra.mxu0 %v1247_v18  ;;  %1804 = vmatprep.mubr.msk.bf16.mxu1 %vm449_vm0, %v614_v34  ;;  %v821_v18 = vpack.c.bf16 %v815_v11, %v814_v10  ;;  %v1359_v21 = vpack.c.bf16 %v1354_v17, %v1353_v16  ;;  %v1701_v34 = vld [vmem:[%s2558_s8] ss:$0 sm:$0xff]  ;;  %p2021_p11 = scmp.ne.s32.totalorder %s2499_s0, %s2020_s17  ;;  %p2028_p1 = scmp.lt.s32.totalorder %s2026_s24, %s2020_s17 }
  0x44   : > { %1864 = vmatprep.mubr.msk.bf16.mxu0 %vm449_vm0, %v1136_v36  ;;  %1810 = vmatprep.subr.bf16.mxu1 %v726_v38 }
  0x45   : > { %1870 = vmatprep.subr.bf16.mxu0 %v1248_v39  ;;  %p2022_p12 = pnand %p2021_p11, %p2175_p5  ;;  %p2029_p2 = por %p2028_p1, %p2027_p0 }
  0x46   : > { %1811 = vmatpush3.bf16.msra.mxu1 %v726_v38 }
  0x47   : > { %1871 = vmatpush3.bf16.msra.mxu0 %v1248_v39  ;;  %1820 = vmatprep.subr.bf16.mxu1 %v829_v46  ;;  %p2023_p13 = pneg %p2022_p12 }
  0x48   : > { %1880 = vmatprep.subr.bf16.mxu0 %v1363_v48 }
  0x49   : > { %1805 = vmatmul.mubr.msk.bf16.gmra.mrb[4].mxu1 %vm449_vm0, %v615_v49  ;;  %p2030_p3 = pnand %p2029_p2, %p2023_p13 }
  0x4a   : > { %1865 = vmatmul.mubr.msk.bf16.gmra.mrb[4].mxu0 %vm449_vm0, %v1137_v50  ;;  %1812 = vmatprep.mubr.msk.bf16.mxu1 %vm449_vm0, %v716_v51 }
  0x4b   : > { %1872 = vmatprep.mubr.msk.bf16.mxu0 %vm449_vm0, %v1238_v52 }
  0x51   : > { %1813 = vmatmul.mubr.msk.bf16.vlgmr.msra.gmra.mrb[0].mxu1 %vm449_vm0, %v717_v56 }
  0x52   : > { %1873 = vmatmul.mubr.msk.bf16.vlgmr.msra.gmra.mrb[0].mxu0 %vm449_vm0, %v1239_v59  ;;  %1821 = vmatpush3.bf16.msra.mxu1 %v829_v46 }
  0x53   : > { %1881 = vmatpush3.bf16.msra.mxu0 %v1363_v48  ;;  %1816 = vmatprep.mubr.msk.bf16.mxu1 %vm449_vm0, %v718_v60 }
  0x54   : > { %1876 = vmatprep.mubr.msk.bf16.mxu0 %vm449_vm0, %v1240_v61  ;;  %1822 = vmatprep.subr.bf16.mxu1 %v830_v62 }
  0x56   : > { %1823 = vmatpush3.bf16.msra.mxu1 %v830_v62 }
  0x59   : > { %1817 = vmatmul.mubr.msk.bf16.gmra.mrb[4].mxu1 %vm449_vm0, %v719_v6 }
  0x5a   : > { %1877 = vmatmul.mubr.msk.bf16.gmra.mrb[4].mxu0 %vm449_vm0, %v1241_v7  ;;  %1824 = vmatprep.mubr.msk.bf16.mxu1 %vm449_vm0, %v820_v8 }
  0x5b   : > { %1882 = vmatprep.mubr.msk.bf16.mxu0 %vm1371_vm1, %v1357_v9 }
  0x61   : > { %1825 = vmatmul.mubr.msk.bf16.vlgmr.msra.gmra.mrb[0].mxu1 %vm449_vm0, %v821_v18 }
  0x62   : > { %1883 = vmatmul.mubr.msk.bf16.vlgmr.msra.gmra.mrb[0].mxu0 %vm1371_vm1, %v1358_v19  ;;  %1828 = vmatprep.mubr.msk.bf16.mxu1 %vm449_vm0, %v822_v20 }
  0x63   : > { %1886 = vmatprep.mubr.msk.bf16.mxu0 %vm1371_vm1, %v1359_v21 }
  0x69   : > { %1829 = vmatmul.mubr.msk.bf16.gmra.mrb[4].mxu1 %vm449_vm0, %v823_v29 }
  0x6a   : > { %1887 = vmatmul.mubr.msk.bf16.gmra.mrb[4].mxu0 %vm1371_vm1, %v1360_v30 }
 0x134   : > { %v1826_v24 = vpop.f32.mrb[0].mxu1 }
 0x135   : > { %v1890_v31 = vadd.f32 %v1826_v24, %v1700_v23  ;;  %v1884_v32 = vpop.f32.mrb[0].mxu0  ;;  %v877_v33 = vpop.f32.mrb[1].mxu1 }
 0x136   : > { %v1893_v36 = vadd.f32 %v1700_v23, %v877_v33  ;;  %v1418_v38 = vpop.f32.mrb[1].mxu0  ;;  %v1827_v28 = vpop.f32.mrb[2].mxu1 }
 0x137   : > { %v1891_v35 = vadd.f32 %v1890_v31, %v1884_v32  ;;  %v1896_v39 = vadd.f32 %v1827_v28, %v1700_v23  ;;  %v1885_v40 = vpop.f32.mrb[2].mxu0  ;;  %v880_v37 = vpop.f32.mrb[3].mxu1 }
 0x138   : > { %v1894_v41 = vadd.f32 %v1893_v36, %v1418_v38  ;;  %v1899_v42 = vadd.f32 %v1700_v23, %v880_v37  ;;  %v1421_v43 = vpop.f32.mrb[3].mxu0 }
 0x139   : > { %v1892_v44 = vadd.f32 %v1891_v35, %v1701_v34  ;;  %v1897_v45 = vadd.f32 %v1896_v39, %v1701_v34 }
 0x13a   : > { %v1895_v46 = vadd.f32 %v1894_v41, %v1701_v34  ;;  %v1900_v48 = vadd.f32 %v1899_v42, %v1701_v34 }
 0x13b   : > { %v1459_v49 = vmul.f32 0.70710677, %v1892_v44  ;;  %v1898_v50 = vadd.f32 %v1897_v45, %v1885_v40 }
 0x13c   : > { %v1457_v51 = vmul.f32 0.70710677, %v1895_v46  ;;  %v1901_v52 = vadd.f32 %v1900_v48, %v1421_v43  ;;  %v1830_v53 = vpop.f32.mrb[4].mxu1 }
 0x13d   : > { %1467 = vst.msk [vmem:[%s2480_s26 + $0x10] sm:$0xff] %vm449_vm0, %v1459_v49  ;;  %v1460_v54 = vmul.f32 0.70710677, %v1898_v50  ;;  %v1902_v47 = vadd.f32 %v1830_v53, %v1700_v23  ;;  %v1888_v55 = vpop.f32.mrb[4].mxu0  ;;  %v893_v56 = vpop.f32.mrb[5].mxu1 }
 0x13e   : > { %1465 = vst.msk [vmem:[%s2480_s26] sm:$0xff] %vm449_vm0, %v1457_v51  ;;  %v1458_v57 = vmul.f32 0.70710677, %v1901_v52  ;;  %v1905_v58 = vadd.f32 %v1700_v23, %v893_v56  ;;  %v1434_v59 = vpop.f32.mrb[5].mxu0  ;;  %v1831_v60 = vpop.f32.mrb[6].mxu1 }
 0x13f   : > { %1468 = vst.msk [vmem:[%s2480_s26 + $0x18] sm:$0xff] %vm449_vm0, %v1460_v54  ;;  %v1903_v61 = vadd.f32 %v1902_v47, %v1701_v34  ;;  %v1908_v62 = vadd.f32 %v1831_v60, %v1700_v23  ;;  %v1889_v63 = vpop.f32.mrb[6].mxu0  ;;  %v896_v0 = vpop.f32.mrb[7].mxu1 }
 0x140   : > { %1466 = vst.msk [vmem:[%s2480_s26 + $0x8] sm:$0xff] %vm449_vm0, %v1458_v57  ;;  %v1906_v1 = vadd.f32 %v1905_v58, %v1701_v34  ;;  %v1911_v2 = vadd.f32 %v1700_v23, %v896_v0  ;;  %v1437_v3 = vpop.f32.mrb[7].mxu0 }
 0x141   : > { %v1904_v4 = vadd.f32 %v1903_v61, %v1888_v55  ;;  %v1909_v5 = vadd.f32 %v1908_v62, %v1701_v34 }
 0x142   : > { %v1907_v6 = vadd.f32 %v1906_v1, %v1434_v59  ;;  %v1912_v7 = vadd.f32 %v1911_v2, %v1701_v34 }
 0x143   : > { %v1463_v8 = vmul.f32 0.70710677, %v1904_v4  ;;  %v1910_v9 = vadd.f32 %v1909_v5, %v1889_v63 }
 0x144   : > { %v1461_v10 = vmul.f32 0.70710677, %v1907_v6  ;;  %v1913_v11 = vadd.f32 %v1912_v7, %v1437_v3 }
 0x145   : > { %1471 = vst.msk [vmem:[%s2480_s26 + $0x30] sm:$0xff] %vm449_vm0, %v1463_v8  ;;  %v1464_v12 = vmul.f32 0.70710677, %v1910_v9 }
 0x146   : > { %1469 = vst.msk [vmem:[%s2480_s26 + $0x20] sm:$0xff] %vm449_vm0, %v1461_v10  ;;  %v1462_v13 = vmul.f32 0.70710677, %v1913_v11 }
 0x147   : > { %1472 = vst.msk [vmem:[%s2480_s26 + $0x38] sm:$0xff] %vm449_vm0, %v1464_v12 }
 0x148   : > { %1470 = vst.msk [vmem:[%s2480_s26 + $0x28] sm:$0xff] %vm449_vm0, %v1462_v13 }
 0x149   : > { %2033 = shalt.err (!%p2030_p3)
}
 0x14a   : > { %s2034_s27 = scalar_lea.hbm %s2497_s28, 1024  ;;  %s2038_s26 = scalar_lea.hbm %s2559_s9, 2048 }
 0x14b   : > { %p2035_p4 = scmp.ne.s32.totalorder %s2497_s28, %s2034_s27  ;;  %p2039_p9 = scmp.lt.u32.totalorder %s2497_s28, %s2559_s9 }
 0x14c   : > { %p2040_p10 = scmp.lt.u32.totalorder %s2038_s26, %s2034_s27  ;;  %p2042_p12 = scmp.lt.u32.totalorder %s2034_s27, %s2497_s28 }
 0x14d   : > { %p2036_p7 = pnand %p2035_p4, %p2175_p5 }
 0x14e   : > { %p2041_p11 = por %p2040_p10, %p2039_p9 }
 0x14f   : > { %p2037_p8 = pneg %p2036_p7 }
 0x150   : > { %p2043_p13 = por %p2042_p12, %p2041_p11 }
 0x152   : > { %p2044_p0 = pnand %p2043_p13, %p2037_p8 }
 0x154   : > { %2047 = shalt.err (!%p2044_p0)
}
 0x155   : > { %s2085_s16 = smov 128   ;;  %s2086_s17 = smov 8  }
 0x156   : > { %1979 = dma.vmem_to_hbm [thread:$0]  (%p2175_p5), %s2499_s0, 1024, %s2497_s28, %s2509_s13, %s2085_s16, %s2085_s16, %s2086_s17  }
 0x157 PF: > { %p1985_p1 = scmp.ge.s32.totalorder %s2082_s12, 2  ;;  %s1502_s25 = sand.u32 1, %s2070_s30  }
 0x158   : > { %s1503_s22 = scalar_lea.sflag [#allocation3], %s1502_s25 }
 0x159   : > { %p1982_p2 = pnand %p1985_p1, %p2179_p6 }
 0x15b   : > { %2065 = dma.done.wait (!%p1982_p2), %s1503_s22, 1024  }
 0x15c   : > { %2067 = vsyncadd (!%p1982_p2), %s1503_s22, 4294966272  ;;  %p19_p3 = scmp.ge.s32.totalorder %s2162_s15, 4   ;;  %s2564_s30 = smov %s2074_s10 }
 0x15d   : > { %s2565_s10 = smov %s2078_s11  ;;  %s2566_s11 = smov %s2173_s18 }
 0x15e   : > { %s2567_s12 = smov %s2162_s15  ;;  %21 = sbr.rel (!%p19_p3) target bundleno = 5 (0x5), region = 113 }
 0x165   :  { %1508 = vsyncpa [#allocation3], 1 }
 0x166   :  { %1510 = vsyncpa [#allocation3 + $0x1], 1 }

// kernel: discriminator_block_forward.2
= control target key start
LH: loop header
LB: loop body
LE: loop exit
PB: predicated region body
PF: predicated region fallthrough
CT: control target
= control target key end

     0   :  { %s8775_s18 = smov 0   ;;  %s10353_s0 = inlined_call_operand.vmem [shape: f32[2,18,18,16], index: 0, kind: input, shape index: {}]   ;;  %s10354_s1 = inlined_call_operand.vmem [shape: f32[9,16,32], index: 1, kind: input, shape index: {}]   ;;  %s10355_s2 = inlined_call_operand.vmem [shape: f32[1,32], index: 2, kind: input, shape index: {}]   ;;  %s10356_s3 = inlined_call_operand.vmem [shape: f32[9,32,32], index: 3, kind: input, shape index: {}]   ;;  %s10357_s4 = inlined_call_operand.vmem [shape: f32[1,32], index: 4, kind: input, shape index: {}]   ;;  %s10358_s5 = inlined_call_operand.vmem [shape: f32[2,16,16,32], index: 5, kind: output, shape index: {}]  }
   0x1 LB: > { %s6727_s19 = sadd.s32 4294967295, %s8742_s18   ;;  %p6731_p0 = scmp.ge.s32.totalorder %s8742_s18, 1  ;;  %s8742_s18 = sphi %s8775_s18, %s15_s18  }
   0x2   : > { %p187_p1 = scmp.lt.s32.totalorder %s8742_s18, 3 }
   0x4   : > { %p188_p2 = pnand %p6731_p0, %p187_p1 }
   0x5   : > { %v6735_v0 = vld [vmem:[%s10354_s1 + $0x10] sm:$0xff] (!%p188_p2)  ;;  %v6736_v1 = vld [vmem:[%s10354_s1 + $0x18] sm:$0xff] (!%p188_p2)  ;;  %p215_p3 = scmp.lt.s32.totalorder (!%p188_p2), %s6727_s19, 1  ;;  %v274_v2 = vld [vmem:[%s10354_s1] sm:$0xff] (!%p188_p2)  ;;  %vm329_vm0 = vcmask (!%p188_p2), 130048   ;;  %vm2904_vm1 = vcmask (!%p188_p2), 261120  }
   0x6   : > { %191 = sbr.rel (%p188_p2) target bundleno = 1653 (0x675), region = 40  ;;  %v328_v3 = vpack.c.bf16 (!%p188_p2), %v6736_v1, %v6735_v0  ;;  %v275_v4 = vld [vmem:[%s10354_s1 + $0x8] sm:$0xff] (!%p188_p2)  ;;  %v6769_v6 = vld [vmem:[%s10354_s1 + $0x20] sm:$0xff] (!%p188_p2)  ;;  %v6819_v0 = vld [vmem:[%s10354_s1 + $0x30] sm:$0xff] (!%p188_p2)  ;;  %vm2907_vm2 = vcmask (!%p188_p2), 254976   ;;  %vm5728_vm3 = vcmask (!%p188_p2), 254977  }
   0x7   : > { %v276_v5 = vpack.c.bf16 (!%p188_p2), %v275_v4, %v274_v2  ;;  %v6770_v7 = vld [vmem:[%s10354_s1 + $0x28] sm:$0xff] (!%p188_p2)  ;;  %v6820_v1 = vld [vmem:[%s10354_s1 + $0x38] sm:$0xff] (!%p188_p2)  ;;  %vm5745_vm4 = vcmask (!%p188_p2), 260102  }
   0x8   : > { %7583 = vmatprep.subr.bf16.mxu0 (!%p188_p2), %v328_v3  ;;  %v8819_v17 = vpack.c.bf16 (!%p188_p2), %v6770_v7, %v6769_v6  ;;  %v8922_v4 = vpack.c.bf16 (!%p188_p2), %v6820_v1, %v6819_v0 }
   0x9   : > { %7584 = vmatpush3.bf16.msra.mxu0 (!%p188_p2), %v328_v3 }
   0xa   : > { %7617 = vmatprep.subr.bf16.mxu0 (!%p188_p2), %v276_v5 }
   0xd   : > { %s10360_s19 = smov (!%p215_p3, %s6727_s19), 1 }
   0xe   : > { %s8725_s28 = smul.u32 432, %s10360_s19  ;;  %s7267_s21 = sshll.u32 %s10360_s19, 8 }
   0xf   : > { %s10071_s23 = scalar_lea.vmem %s10358_s5, %s7267_s21 }
  0x10   : > { %s8801_s6 = scalar_lea.vmem %s10353_s0, %s8725_s28 }
  0x11   : > { %v277_v8 = vld [vmem:[%s8801_s6 + $0x1] sm:$0xff]  ;;  %v278_v9 = vld [vmem:[%s8801_s6 + $0x9] sm:$0xff]  ;;  %v279_v10 = vld [vmem:[%s8801_s6 + $0x19] sm:$0xff] }
  0x12   : > { %v309_v11 = vpack.c.bf16 %v278_v9, %v277_v8  ;;  %v280_v12 = vld [vmem:[%s8801_s6 + $0x21] sm:$0xff]  ;;  %v281_v13 = vld [vmem:[%s8801_s6 + $0x31] sm:$0xff]  ;;  %v282_v14 = vld [vmem:[%s8801_s6 + $0x39] sm:$0xff] }
  0x13   : > { %v8815_v15 = vpack.c.bf16 %v280_v12, %v279_v10  ;;  %v8817_v16 = vpack.c.bf16 %v282_v14, %v281_v13  ;;  %v283_v18 = vld [vmem:[%s8801_s6 + $0x49] sm:$0xff]  ;;  %v284_v19 = vld [vmem:[%s8801_s6 + $0x51] sm:$0xff]  ;;  %v285_v20 = vld [vmem:[%s8801_s6 + $0x61] sm:$0xff] }
  0x14   : > { %7585 = vmatprep.mubr.msk.bf16.mxu0 %vm329_vm0, %v309_v11  ;;  %v286_v21 = vld [vmem:[%s8801_s6 + $0x69] sm:$0xff]  ;;  %v8831_v22 = vpack.c.bf16 %v284_v19, %v283_v18  ;;  %v287_v24 = vld [vmem:[%s8801_s6 + $0x79] sm:$0xff]  ;;  %v288_v25 = vld [vmem:[%s8801_s6 + $0x81] sm:$0xff] }
  0x15   : > { %7586 = vmatmul.mubr.msk.bf16.vlgmr.msra.gmra.mrb[0].mxu0 %vm329_vm0, %v8815_v15  ;;  %v8833_v23 = vpack.c.bf16 %v286_v21, %v285_v20  ;;  %v289_v26 = vld [vmem:[%s8801_s6 + $0x91] sm:$0xff]  ;;  %v290_v27 = vld [vmem:[%s8801_s6 + $0x99] sm:$0xff]  ;;  %v8843_v28 = vpack.c.bf16 %v288_v25, %v287_v24  ;;  %v291_v30 = vld [vmem:[%s8801_s6 + $0xa9] sm:$0xff] }
  0x16   : > { %7618 = vmatpush3.bf16.msra.mxu0 %v276_v5  ;;  %7589 = vmatprep.mubr.msk.bf16.mxu0 %vm329_vm0, %v8817_v16  ;;  %v8845_v29 = vpack.c.bf16 %v290_v27, %v289_v26  ;;  %v292_v31 = vld [vmem:[%s8801_s6 + $0xb1] sm:$0xff]  ;;  %v293_v32 = vld [vmem:[%s8801_s6 + $0xc1] sm:$0xff]  ;;  %v294_v33 = vld [vmem:[%s8801_s6 + $0xc9] sm:$0xff] }
  0x17   : > { %7651 = vmatprep.subr.bf16.mxu0 %v8819_v17  ;;  %v8855_v34 = vpack.c.bf16 %v292_v31, %v291_v30  ;;  %v8857_v35 = vpack.c.bf16 %v294_v33, %v293_v32  ;;  %v295_v36 = vld [vmem:[%s8801_s6 + $0xd9] sm:$0xff]  ;;  %v296_v37 = vld [vmem:[%s8801_s6 + $0xe1] sm:$0xff]  ;;  %v297_v38 = vld [vmem:[%s8801_s6 + $0xf1] sm:$0xff] }
  0x18   : > { %v298_v39 = vld [vmem:[%s8801_s6 + $0xf9] sm:$0xff]  ;;  %v8867_v40 = vpack.c.bf16 %v296_v37, %v295_v36  ;;  %v299_v42 = vld [vmem:[%s8801_s6 + $0x109] sm:$0xff]  ;;  %v300_v43 = vld [vmem:[%s8801_s6 + $0x111] sm:$0xff] }
  0x19   : > { %v8869_v41 = vpack.c.bf16 %v298_v39, %v297_v38  ;;  %v301_v44 = vld [vmem:[%s8801_s6 + $0x121] sm:$0xff]  ;;  %v302_v45 = vld [vmem:[%s8801_s6 + $0x129] sm:$0xff]  ;;  %v8879_v46 = vpack.c.bf16 %v300_v43, %v299_v42  ;;  %v303_v48 = vld [vmem:[%s8801_s6 + $0x139] sm:$0xff] }
  0x1a   : > { %v8881_v47 = vpack.c.bf16 %v302_v45, %v301_v44  ;;  %v304_v49 = vld [vmem:[%s8801_s6 + $0x141] sm:$0xff]  ;;  %v305_v50 = vld [vmem:[%s8801_s6 + $0x151] sm:$0xff]  ;;  %v306_v51 = vld [vmem:[%s8801_s6 + $0x159] sm:$0xff] }
  0x1b   : > { %v8891_v52 = vpack.c.bf16 %v304_v49, %v303_v48  ;;  %v8893_v53 = vpack.c.bf16 %v306_v51, %v305_v50  ;;  %v307_v54 = vld [vmem:[%s8801_s6 + $0x169] sm:$0xff]  ;;  %v308_v55 = vld [vmem:[%s8801_s6 + $0x171] sm:$0xff]  ;;  %v226_v56 = vld [vmem:[%s8801_s6] sm:$0xff] }
  0x1c   : > { %v227_v57 = vld [vmem:[%s8801_s6 + $0x8] sm:$0xff]  ;;  %v8903_v58 = vpack.c.bf16 %v308_v55, %v307_v54  ;;  %v228_v60 = vld [vmem:[%s8801_s6 + $0x18] sm:$0xff]  ;;  %v229_v61 = vld [vmem:[%s8801_s6 + $0x20] sm:$0xff] }
  0x1d   : > { %7590 = vmatmul.mubr.msk.bf16.gmra.mrb[4].mxu0 %vm329_vm0, %v8831_v22  ;;  %v258_v59 = vpack.c.bf16 %v227_v57, %v226_v56  ;;  %v230_v62 = vld [vmem:[%s8801_s6 + $0x30] sm:$0xff]  ;;  %v231_v63 = vld [vmem:[%s8801_s6 + $0x38] sm:$0xff]  ;;  %v8918_v2 = vpack.c.bf16 %v229_v61, %v228_v60  ;;  %v232_v5 = vld [vmem:[%s8801_s6 + $0x48] sm:$0xff] }
  0x1e   : > { %7593 = vmatprep.mubr.msk.bf16.mxu0 %vm329_vm0, %v8833_v23  ;;  %v8920_v3 = vpack.c.bf16 %v231_v63, %v230_v62  ;;  %v233_v6 = vld [vmem:[%s8801_s6 + $0x50] sm:$0xff]  ;;  %v234_v7 = vld [vmem:[%s8801_s6 + $0x60] sm:$0xff]  ;;  %v235_v8 = vld [vmem:[%s8801_s6 + $0x68] sm:$0xff] }
  0x1f   : > { %v8934_v9 = vpack.c.bf16 %v233_v6, %v232_v5  ;;  %v8936_v10 = vpack.c.bf16 %v235_v8, %v234_v7  ;;  %v236_v11 = vld [vmem:[%s8801_s6 + $0x78] sm:$0xff]  ;;  %v237_v12 = vld [vmem:[%s8801_s6 + $0x80] sm:$0xff]  ;;  %v238_v13 = vld [vmem:[%s8801_s6 + $0x90] sm:$0xff] }
  0x20   : > { %v239_v14 = vld [vmem:[%s8801_s6 + $0x98] sm:$0xff]  ;;  %v240_v19 = vld [vmem:[%s8801_s6 + $0xa8] sm:$0xff]  ;;  %v241_v20 = vld [vmem:[%s8801_s6 + $0xb0] sm:$0xff] }
  0x21   : > { %v8948_v18 = vpack.c.bf16 %v239_v14, %v238_v13  ;;  %v242_v21 = vld [vmem:[%s8801_s6 + $0xc0] sm:$0xff]  ;;  %v243_v24 = vld [vmem:[%s8801_s6 + $0xc8] sm:$0xff]  ;;  %v8958_v25 = vpack.c.bf16 %v241_v20, %v240_v19  ;;  %v244_v27 = vld [vmem:[%s8801_s6 + $0xd8] sm:$0xff] }
  0x22   : > { %v8960_v26 = vpack.c.bf16 %v243_v24, %v242_v21  ;;  %v245_v30 = vld [vmem:[%s8801_s6 + $0xe0] sm:$0xff]  ;;  %v246_v31 = vld [vmem:[%s8801_s6 + $0xf0] sm:$0xff]  ;;  %v247_v32 = vld [vmem:[%s8801_s6 + $0xf8] sm:$0xff] }
  0x23   : > { %v8970_v33 = vpack.c.bf16 %v245_v30, %v244_v27  ;;  %v8972_v36 = vpack.c.bf16 %v247_v32, %v246_v31  ;;  %v248_v37 = vld [vmem:[%s8801_s6 + $0x108] sm:$0xff]  ;;  %v249_v38 = vld [vmem:[%s8801_s6 + $0x110] sm:$0xff]  ;;  %v250_v39 = vld [vmem:[%s8801_s6 + $0x120] sm:$0xff] }
  0x24   : > { %v251_v42 = vld [vmem:[%s8801_s6 + $0x128] sm:$0xff]  ;;  %v8982_v43 = vpack.c.bf16 %v249_v38, %v248_v37  ;;  %v252_v45 = vld [vmem:[%s8801_s6 + $0x138] sm:$0xff]  ;;  %v253_v48 = vld [vmem:[%s8801_s6 + $0x140] sm:$0xff] }
  0x25   : > { %7594 = vmatmul.mubr.msk.bf16.gmra.mrb[8].mxu0 %vm329_vm0, %v8843_v28  ;;  %v8984_v44 = vpack.c.bf16 %v251_v42, %v250_v39  ;;  %v254_v49 = vld [vmem:[%s8801_s6 + $0x150] sm:$0xff]  ;;  %v255_v50 = vld [vmem:[%s8801_s6 + $0x158] sm:$0xff]  ;;  %v8994_v51 = vpack.c.bf16 %v253_v48, %v252_v45  ;;  %v256_v55 = vld [vmem:[%s8801_s6 + $0x168] sm:$0xff] }
  0x26   : > { %7597 = vmatprep.mubr.msk.bf16.mxu0 %vm329_vm0, %v8845_v29  ;;  %v8996_v54 = vpack.c.bf16 %v255_v50, %v254_v49  ;;  %v257_v56 = vld [vmem:[%s8801_s6 + $0x170] sm:$0xff]  ;;  %v748_v57 = vld [vmem:[%s8801_s6 + $0x2] sm:$0xff]  ;;  %v750_v62 = vld [vmem:[%s8801_s6 + $0x1a] sm:$0xff] }
  0x27   : > { %v9006_v60 = vpack.c.bf16 %v257_v56, %v256_v55  ;;  %v751_v63 = vld [vmem:[%s8801_s6 + $0x22] sm:$0xff]  ;;  %v752_v0 = vld [vmem:[%s8801_s6 + $0x32] sm:$0xff]  ;;  %v753_v1 = vld [vmem:[%s8801_s6 + $0x3a] sm:$0xff] }
  0x28   : > { %v6869_v5 = vld [vmem:[%s10354_s1 + $0x40] sm:$0xff]  ;;  %v6870_v6 = vld [vmem:[%s10354_s1 + $0x48] sm:$0xff]  ;;  %v9021_v7 = vpack.c.bf16 %v751_v63, %v750_v62  ;;  %v9023_v8 = vpack.c.bf16 %v753_v1, %v752_v0  ;;  %v755_v13 = vld [vmem:[%s8801_s6 + $0x52] sm:$0xff] }
  0x29   : > { %v756_v14 = vld [vmem:[%s8801_s6 + $0x62] sm:$0xff]  ;;  %v757_v19 = vld [vmem:[%s8801_s6 + $0x6a] sm:$0xff]  ;;  %v760_v27 = vld [vmem:[%s8801_s6 + $0x92] sm:$0xff] }
  0x2a   : > { %v9036_v21 = vpack.c.bf16 %v757_v19, %v756_v14  ;;  %v759_v24 = vld [vmem:[%s8801_s6 + $0x82] sm:$0xff]  ;;  %v761_v30 = vld [vmem:[%s8801_s6 + $0x9a] sm:$0xff]  ;;  %v762_v37 = vld [vmem:[%s8801_s6 + $0xaa] sm:$0xff] }
  0x2b   : > { %v9048_v32 = vpack.c.bf16 %v761_v30, %v760_v27  ;;  %v763_v38 = vld [vmem:[%s8801_s6 + $0xb2] sm:$0xff]  ;;  %v764_v39 = vld [vmem:[%s8801_s6 + $0xc2] sm:$0xff]  ;;  %v765_v42 = vld [vmem:[%s8801_s6 + $0xca] sm:$0xff] }
  0x2c   : > { %v9058_v45 = vpack.c.bf16 %v763_v38, %v762_v37  ;;  %v9060_v48 = vpack.c.bf16 %v765_v42, %v764_v39  ;;  %v766_v49 = vld [vmem:[%s8801_s6 + $0xda] sm:$0xff]  ;;  %v767_v50 = vld [vmem:[%s8801_s6 + $0xe2] sm:$0xff]  ;;  %v768_v55 = vld [vmem:[%s8801_s6 + $0xf2] sm:$0xff] }
  0x2d   : > { %7598 = vmatmul.mubr.msk.bf16.gmra.mrb[12].mxu0 %vm329_vm0, %v8855_v34  ;;  %v769_v56 = vld [vmem:[%s8801_s6 + $0xfa] sm:$0xff]  ;;  %v771_v62 = vld [vmem:[%s8801_s6 + $0x112] sm:$0xff]  ;;  %v772_v63 = vld [vmem:[%s8801_s6 + $0x122] sm:$0xff] }
  0x2e   : > { %7601 = vmatprep.mubr.msk.bf16.mxu0 %vm329_vm0, %v8857_v35  ;;  %v773_v0 = vld [vmem:[%s8801_s6 + $0x12a] sm:$0xff]  ;;  %v777_v14 = vld [vmem:[%s8801_s6 + $0x15a] sm:$0xff]  ;;  %v779_v27 = vld [vmem:[%s8801_s6 + $0x172] sm:$0xff] }
  0x2f   : > { %v6919_v37 = vld [vmem:[%s10354_s1 + $0x50] sm:$0xff]  ;;  %v6920_v38 = vld [vmem:[%s10354_s1 + $0x58] sm:$0xff] }
  0x30   : > { %v1679_v39 = vpack.c.bf16 %v6920_v38, %v6919_v37 }
  0x35   : > { %7602 = vmatmul.mubr.msk.bf16.gmra.mrb[16].mxu0 %vm329_vm0, %v8867_v40 }
  0x36   : > { %7605 = vmatprep.mubr.msk.bf16.mxu0 %vm329_vm0, %v8869_v41 }
  0x3d   : > { %7606 = vmatmul.mubr.msk.bf16.gmra.mrb[20].mxu0 %vm329_vm0, %v8879_v46 }
  0x3e   : > { %7609 = vmatprep.mubr.msk.bf16.mxu0 %vm329_vm0, %v8881_v47 }
  0x45   : > { %7610 = vmatmul.mubr.msk.bf16.gmra.mrb[24].mxu0 %vm329_vm0, %v8891_v52 }
  0x46   : > { %7613 = vmatprep.mubr.msk.bf16.mxu0 %vm329_vm0, %v8893_v53 }
  0x4d   : > { %7614 = vmatmul.mubr.msk.bf16.gmra.mrb[28].mxu0 %vm329_vm0, %v8903_v58 }
  0x4e   : > { %7619 = vmatprep.mubr.msk.bf16.mxu0 %vm329_vm0, %v258_v59  ;;  %v749_v59 = vld [vmem:[%s8801_s6 + $0xa] sm:$0xff] }
  0x4f   : > { %v780_v61 = vpack.c.bf16 %v749_v59, %v748_v57  ;;  %v9070_v57 = vpack.c.bf16 %v767_v50, %v766_v49  ;;  %v9072_v59 = vpack.c.bf16 %v769_v56, %v768_v55  ;;  %v6969_v49 = vld [vmem:[%s10354_s1 + $0x60] sm:$0xff]  ;;  %v6970_v50 = vld [vmem:[%s10354_s1 + $0x68] sm:$0xff] }
  0x50   : > { %v1973_v55 = vpack.c.bf16 %v6970_v50, %v6969_v49  ;;  %v6868_v56 = vld [vmem:[%s8801_s6 + $0x189] sm:$0xff] }
  0x55   : > { %7620 = vmatmul.mubr.msk.bf16.vlgmr.msra.gmra.mrb[0].mxu0 %vm329_vm0, %v8918_v2 }
  0x56   : > { %7652 = vmatpush3.bf16.msra.mxu0 %v8819_v17  ;;  %7623 = vmatprep.mubr.msk.bf16.mxu0 %vm329_vm0, %v8920_v3  ;;  %v8946_v17 = vpack.c.bf16 %v237_v12, %v236_v11  ;;  %v1386_v11 = vpack.c.bf16 %v6870_v6, %v6869_v5  ;;  %v754_v12 = vld [vmem:[%s8801_s6 + $0x4a] sm:$0xff]  ;;  %v9084_v5 = vpack.c.bf16 %v773_v0, %v772_v63  ;;  %v774_v6 = vld [vmem:[%s8801_s6 + $0x13a] sm:$0xff] }
  0x57   : > { %7685 = vmatprep.subr.bf16.mxu0 %v8922_v4  ;;  %v9034_v20 = vpack.c.bf16 %v755_v13, %v754_v12  ;;  %v775_v12 = vld [vmem:[%s8801_s6 + $0x142] sm:$0xff]  ;;  %v776_v13 = vld [vmem:[%s8801_s6 + $0x152] sm:$0xff] }
  0x58   : > { %v9094_v19 = vpack.c.bf16 %v775_v12, %v774_v6  ;;  %v7020_v63 = vld [vmem:[%s10354_s1 + $0x78] sm:$0xff]  ;;  %v6918_v6 = vld [vmem:[%s8801_s6 + $0x18a] sm:$0xff] }
  0x5d   : > { %7624 = vmatmul.mubr.msk.bf16.gmra.mrb[4].mxu0 %vm329_vm0, %v8934_v9 }
  0x5e   : > { %7627 = vmatprep.mubr.msk.bf16.mxu0 %vm329_vm0, %v8936_v10 }
  0x65   : > { %7628 = vmatmul.mubr.msk.bf16.gmra.mrb[8].mxu0 %vm329_vm0, %v8946_v17 }
  0x66   : > { %7631 = vmatprep.mubr.msk.bf16.mxu0 %vm329_vm0, %v8948_v18 }
  0x6d   : > { %7632 = vmatmul.mubr.msk.bf16.gmra.mrb[12].mxu0 %vm329_vm0, %v8958_v25 }
  0x6e   : > { %7635 = vmatprep.mubr.msk.bf16.mxu0 %vm329_vm0, %v8960_v26 }
  0x75   : > { %7636 = vmatmul.mubr.msk.bf16.gmra.mrb[16].mxu0 %vm329_vm0, %v8970_v33 }
  0x76   : > { %7639 = vmatprep.mubr.msk.bf16.mxu0 %vm329_vm0, %v8972_v36 }
  0x7d   : > { %7640 = vmatmul.mubr.msk.bf16.gmra.mrb[20].mxu0 %vm329_vm0, %v8982_v43 }
  0x7e   : > { %7643 = vmatprep.mubr.msk.bf16.mxu0 %vm329_vm0, %v8984_v44 }
  0x85   : > { %7644 = vmatmul.mubr.msk.bf16.gmra.mrb[24].mxu0 %vm329_vm0, %v8994_v51 }
  0x86   : > { %7647 = vmatprep.mubr.msk.bf16.mxu0 %vm329_vm0, %v8996_v54 }
  0x8d   : > { %7648 = vmatmul.mubr.msk.bf16.gmra.mrb[28].mxu0 %vm329_vm0, %v9006_v60 }
  0x8e   : > { %7653 = vmatprep.mubr.msk.bf16.mxu0 %vm329_vm0, %v780_v61  ;;  %v770_v61 = vld [vmem:[%s8801_s6 + $0x10a] sm:$0xff] }
  0x8f   : > { %v9082_v1 = vpack.c.bf16 %v771_v62, %v770_v61  ;;  %v7019_v62 = vld [vmem:[%s10354_s1 + $0x70] sm:$0xff] }
  0x90   : > { %v2266_v0 = vpack.c.bf16 %v7020_v63, %v7019_v62  ;;  %v3044_v62 = vld [vmem:[%s10356_s3 + $0x18] sm:$0xff] }
  0x95   : > { %7654 = vmatmul.mubr.msk.bf16.vlgmr.msra.gmra.mrb[0].mxu0 %vm329_vm0, %v9021_v7 }
  0x96   : > { %7686 = vmatpush3.bf16.msra.mxu0 %v8922_v4  ;;  %7657 = vmatprep.mubr.msk.bf16.mxu0 %vm329_vm0, %v9023_v8  ;;  %v758_v4 = vld [vmem:[%s8801_s6 + $0x7a] sm:$0xff] }
  0x97   : > { %7719 = vmatprep.subr.bf16.mxu0 %v1386_v11  ;;  %v9046_v31 = vpack.c.bf16 %v759_v24, %v758_v4  ;;  %v9096_v4 = vpack.c.bf16 %v777_v14, %v776_v13  ;;  %v778_v24 = vld [vmem:[%s8801_s6 + $0x16a] sm:$0xff]  ;;  %v7069_v13 = vld [vmem:[%s10354_s1 + $0x80] sm:$0xff] }
  0x98   : > { %v9104_v30 = vpack.c.bf16 %v779_v27, %v778_v24  ;;  %v7070_v14 = vld [vmem:[%s10354_s1 + $0x88] sm:$0xff] }
  0x99   : > { %v2559_v24 = vpack.c.bf16 %v7070_v14, %v7069_v13 }
  0x9d   : > { %7658 = vmatmul.mubr.msk.bf16.gmra.mrb[4].mxu0 %vm329_vm0, %v9034_v20 }
  0x9e   : > { %7661 = vmatprep.mubr.msk.bf16.mxu0 %vm329_vm0, %v9036_v21 }
  0xa5   : > { %7662 = vmatmul.mubr.msk.bf16.gmra.mrb[8].mxu0 %vm329_vm0, %v9046_v31 }
  0xa6   : > { %7665 = vmatprep.mubr.msk.bf16.mxu0 %vm329_vm0, %v9048_v32 }
  0xad   : > { %7666 = vmatmul.mubr.msk.bf16.gmra.mrb[12].mxu0 %vm329_vm0, %v9058_v45 }
  0xae   : > { %7669 = vmatprep.mubr.msk.bf16.mxu0 %vm329_vm0, %v9060_v48 }
  0xb5   : > { %7670 = vmatmul.mubr.msk.bf16.gmra.mrb[16].mxu0 %vm329_vm0, %v9070_v57 }
  0xb6   : > { %7673 = vmatprep.mubr.msk.bf16.mxu0 %vm329_vm0, %v9072_v59 }
  0xbd   : > { %7674 = vmatmul.mubr.msk.bf16.gmra.mrb[20].mxu0 %vm329_vm0, %v9082_v1 }
  0xbe   : > { %7677 = vmatprep.mubr.msk.bf16.mxu0 %vm329_vm0, %v9084_v5 }
  0xc5   : > { %7678 = vmatmul.mubr.msk.bf16.gmra.mrb[24].mxu0 %vm329_vm0, %v9094_v19 }
  0xc6   : > { %7681 = vmatprep.mubr.msk.bf16.mxu0 %vm329_vm0, %v9096_v4 }
  0xcd   : > { %7682 = vmatmul.mubr.msk.bf16.gmra.mrb[28].mxu0 %vm329_vm0, %v9104_v30 }
  0xce   : > { %7687 = vmatprep.mubr.msk.bf16.mxu0 %vm329_vm0, %v8918_v2  ;;  %v6817_v2 = vld [vmem:[%s8801_s6 + $0x180] sm:$0xff] }
  0xd5   : > { %7688 = vmatmul.mubr.msk.bf16.vlgmr.msra.gmra.mrb[0].mxu0 %vm329_vm0, %v8920_v3 }
  0xd6   : > { %7720 = vmatpush3.bf16.msra.mxu0 %v1386_v11  ;;  %7691 = vmatprep.mubr.msk.bf16.mxu0 %vm329_vm0, %v8934_v9  ;;  %v6818_v11 = vld [vmem:[%s8801_s6 + $0x188] sm:$0xff] }
  0xd7   : > { %7753 = vmatprep.subr.bf16.mxu0 %v1679_v39  ;;  %v9146_v42 = vpack.c.bf16 %v6818_v11, %v6817_v2 }
  0xdd   : > { %7692 = vmatmul.mubr.msk.bf16.gmra.mrb[4].mxu0 %vm329_vm0, %v8936_v10 }
  0xde   : > { %7695 = vmatprep.mubr.msk.bf16.mxu0 %vm329_vm0, %v8946_v17 }
  0xe5   : > { %7696 = vmatmul.mubr.msk.bf16.gmra.mrb[8].mxu0 %vm329_vm0, %v8948_v18 }
  0xe6   : > { %7699 = vmatprep.mubr.msk.bf16.mxu0 %vm329_vm0, %v8958_v25 }
  0xed   : > { %7700 = vmatmul.mubr.msk.bf16.gmra.mrb[12].mxu0 %vm329_vm0, %v8960_v26 }
  0xee   : > { %7703 = vmatprep.mubr.msk.bf16.mxu0 %vm329_vm0, %v8970_v33 }
  0xf5   : > { %7704 = vmatmul.mubr.msk.bf16.gmra.mrb[16].mxu0 %vm329_vm0, %v8972_v36 }
  0xf6   : > { %7707 = vmatprep.mubr.msk.bf16.mxu0 %vm329_vm0, %v8982_v43 }
  0xfd   : > { %7708 = vmatmul.mubr.msk.bf16.gmra.mrb[20].mxu0 %vm329_vm0, %v8984_v44 }
  0xfe   : > { %7711 = vmatprep.mubr.msk.bf16.mxu0 %vm329_vm0, %v8994_v51 }
 0x105   : > { %7712 = vmatmul.mubr.msk.bf16.gmra.mrb[24].mxu0 %vm329_vm0, %v8996_v54 }
 0x106   : > { %7715 = vmatprep.mubr.msk.bf16.mxu0 %vm329_vm0, %v9006_v60 }
 0x10d   : > { %7716 = vmatmul.mubr.msk.bf16.gmra.mrb[28].mxu0 %vm329_vm0, %v9146_v42 }
 0x10e   : > { %7721 = vmatprep.mubr.msk.bf16.mxu0 %vm329_vm0, %v8815_v15  ;;  %v6867_v15 = vld [vmem:[%s8801_s6 + $0x181] sm:$0xff] }
 0x10f   : > { %v9188_v61 = vpack.c.bf16 %v6868_v56, %v6867_v15 }
 0x115   : > { %7722 = vmatmul.mubr.msk.bf16.vlgmr.msra.gmra.mrb[0].mxu0 %vm329_vm0, %v8817_v16 }
 0x116   : > { %7754 = vmatpush3.bf16.msra.mxu0 %v1679_v39  ;;  %7725 = vmatprep.mubr.msk.bf16.mxu0 %vm329_vm0, %v8831_v22 }
 0x117   : > { %7787 = vmatprep.subr.bf16.mxu0 %v1973_v55 }
 0x11d   : > { %7726 = vmatmul.mubr.msk.bf16.gmra.mrb[4].mxu0 %vm329_vm0, %v8833_v23 }
 0x11e   : > { %7729 = vmatprep.mubr.msk.bf16.mxu0 %vm329_vm0, %v8843_v28 }
 0x125   : > { %7730 = vmatmul.mubr.msk.bf16.gmra.mrb[8].mxu0 %vm329_vm0, %v8845_v29 }
 0x126   : > { %7733 = vmatprep.mubr.msk.bf16.mxu0 %vm329_vm0, %v8855_v34 }
 0x12d   : > { %7734 = vmatmul.mubr.msk.bf16.gmra.mrb[12].mxu0 %vm329_vm0, %v8857_v35 }
 0x12e   : > { %7737 = vmatprep.mubr.msk.bf16.mxu0 %vm329_vm0, %v8867_v40 }
 0x135   : > { %7738 = vmatmul.mubr.msk.bf16.gmra.mrb[16].mxu0 %vm329_vm0, %v8869_v41 }
 0x136   : > { %7741 = vmatprep.mubr.msk.bf16.mxu0 %vm329_vm0, %v8879_v46 }
 0x13d   : > { %7742 = vmatmul.mubr.msk.bf16.gmra.mrb[20].mxu0 %vm329_vm0, %v8881_v47 }
 0x13e   : > { %7745 = vmatprep.mubr.msk.bf16.mxu0 %vm329_vm0, %v8891_v52 }
 0x145   : > { %7746 = vmatmul.mubr.msk.bf16.gmra.mrb[24].mxu0 %vm329_vm0, %v8893_v53 }
 0x146   : > { %7749 = vmatprep.mubr.msk.bf16.mxu0 %vm329_vm0, %v8903_v58 }
 0x14d   : > { %7750 = vmatmul.mubr.msk.bf16.gmra.mrb[28].mxu0 %vm329_vm0, %v9188_v61 }
 0x14e   : > { %7755 = vmatprep.mubr.msk.bf16.mxu0 %vm329_vm0, %v9021_v7  ;;  %v6917_v7 = vld [vmem:[%s8801_s6 + $0x182] sm:$0xff] }
 0x14f   : > { %v1675_v12 = vpack.c.bf16 %v6918_v6, %v6917_v7 }
 0x155   : > { %7756 = vmatmul.mubr.msk.bf16.vlgmr.msra.gmra.mrb[0].mxu0 %vm329_vm0, %v9023_v8 }
 0x156   : > { %7788 = vmatpush3.bf16.msra.mxu0 %v1973_v55  ;;  %7759 = vmatprep.mubr.msk.bf16.mxu0 %vm329_vm0, %v9034_v20 }
 0x157   : > { %7821 = vmatprep.subr.bf16.mxu0 %v2266_v0 }
 0x15d   : > { %7760 = vmatmul.mubr.msk.bf16.gmra.mrb[4].mxu0 %vm329_vm0, %v9036_v21 }
 0x15e   : > { %7763 = vmatprep.mubr.msk.bf16.mxu0 %vm329_vm0, %v9046_v31 }
 0x165   : > { %7764 = vmatmul.mubr.msk.bf16.gmra.mrb[8].mxu0 %vm329_vm0, %v9048_v32 }
 0x166   : > { %7767 = vmatprep.mubr.msk.bf16.mxu0 %vm329_vm0, %v9058_v45 }
 0x16d   : > { %7768 = vmatmul.mubr.msk.bf16.gmra.mrb[12].mxu0 %vm329_vm0, %v9060_v48 }
 0x16e   : > { %7771 = vmatprep.mubr.msk.bf16.mxu0 %vm329_vm0, %v9070_v57 }
 0x175   : > { %7772 = vmatmul.mubr.msk.bf16.gmra.mrb[16].mxu0 %vm329_vm0, %v9072_v59 }
 0x176   : > { %7775 = vmatprep.mubr.msk.bf16.mxu0 %vm329_vm0, %v9082_v1 }
 0x17d   : > { %7776 = vmatmul.mubr.msk.bf16.gmra.mrb[20].mxu0 %vm329_vm0, %v9084_v5 }
 0x17e   : > { %7779 = vmatprep.mubr.msk.bf16.mxu0 %vm329_vm0, %v9094_v19 }
 0x185   : > { %7780 = vmatmul.mubr.msk.bf16.gmra.mrb[24].mxu0 %vm329_vm0, %v9096_v4 }
 0x186   : > { %7783 = vmatprep.mubr.msk.bf16.mxu0 %vm329_vm0, %v9104_v30 }
 0x18d   : > { %7784 = vmatmul.mubr.msk.bf16.gmra.mrb[28].mxu0 %vm329_vm0, %v1675_v12 }
 0x18e   : > { %7789 = vmatprep.mubr.msk.bf16.mxu0 %vm329_vm0, %v8920_v3  ;;  %v6967_v3 = vld [vmem:[%s8801_s6 + $0x198] sm:$0xff] }
 0x195   : > { %7790 = vmatmul.mubr.msk.bf16.vlgmr.msra.gmra.mrb[0].mxu0 %vm329_vm0, %v8934_v9  ;;  %v6968_v9 = vld [vmem:[%s8801_s6 + $0x1a0] sm:$0xff] }
 0x196   : > { %7822 = vmatpush3.bf16.msra.mxu0 %v2266_v0  ;;  %7793 = vmatprep.mubr.msk.bf16.mxu0 %vm329_vm0, %v8936_v10  ;;  %v1969_v10 = vpack.c.bf16 %v6968_v9, %v6967_v3 }
 0x197   : > { %7855 = vmatprep.subr.bf16.mxu0 %v2559_v24 }
 0x19d   : > { %7794 = vmatmul.mubr.msk.bf16.gmra.mrb[4].mxu0 %vm329_vm0, %v8946_v17 }
 0x19e   : > { %7797 = vmatprep.mubr.msk.bf16.mxu0 %vm329_vm0, %v8948_v18 }
 0x1a5   : > { %7798 = vmatmul.mubr.msk.bf16.gmra.mrb[8].mxu0 %vm329_vm0, %v8958_v25  ;;  %v3041_v25 = vld [vmem:[%s10356_s3] sm:$0xff] }
 0x1a6   : > { %7801 = vmatprep.mubr.msk.bf16.mxu0 %vm329_vm0, %v8960_v26  ;;  %v3042_v26 = vld [vmem:[%s10356_s3 + $0x8] sm:$0xff] }
 0x1ad   : > { %7802 = vmatmul.mubr.msk.bf16.gmra.mrb[12].mxu0 %vm329_vm0, %v8970_v33  ;;  %v9408_v33 = vpack.c.bf16 %v3042_v26, %v3041_v25 }
 0x1ae   : > { %7805 = vmatprep.mubr.msk.bf16.mxu0 %vm329_vm0, %v8972_v36  ;;  %v9414_v36 = vld [vmem:[%s10355_s2] ss:$0 sm:$0xff] }
 0x1b5   : > { %7806 = vmatmul.mubr.msk.bf16.gmra.mrb[16].mxu0 %vm329_vm0, %v8982_v43 }
 0x1b6   : > { %7809 = vmatprep.mubr.msk.bf16.mxu0 %vm329_vm0, %v8984_v44 }
 0x1bd   : > { %7810 = vmatmul.mubr.msk.bf16.gmra.mrb[20].mxu0 %vm329_vm0, %v8994_v51 }
 0x1be   : > { %7813 = vmatprep.mubr.msk.bf16.mxu0 %vm329_vm0, %v8996_v54 }
 0x1c5   : > { %7814 = vmatmul.mubr.msk.bf16.gmra.mrb[24].mxu0 %vm329_vm0, %v9006_v60 }
 0x1c6   : > { %7817 = vmatprep.mubr.msk.bf16.mxu0 %vm329_vm0, %v9146_v42 }
 0x1cd   : > { %7818 = vmatmul.mubr.msk.bf16.gmra.mrb[28].mxu0 %vm329_vm0, %v1969_v10 }
 0x1ce   : > { %7823 = vmatprep.mubr.msk.bf16.mxu0 %vm329_vm0, %v8817_v16  ;;  %v7017_v16 = vld [vmem:[%s8801_s6 + $0x199] sm:$0xff] }
 0x1d5   : > { %7824 = vmatmul.mubr.msk.bf16.vlgmr.msra.gmra.mrb[0].mxu0 %vm329_vm0, %v8831_v22  ;;  %v7018_v22 = vld [vmem:[%s8801_s6 + $0x1a1] sm:$0xff] }
 0x1d6   : > { %7856 = vmatpush3.bf16.msra.mxu0 %v2559_v24  ;;  %7827 = vmatprep.mubr.msk.bf16.mxu0 %vm329_vm0, %v8833_v23  ;;  %v2262_v23 = vpack.c.bf16 %v7018_v22, %v7017_v16 }
 0x1dd   : > { %7828 = vmatmul.mubr.msk.bf16.gmra.mrb[4].mxu0 %vm329_vm0, %v8843_v28  ;;  %v7067_v28 = vld [vmem:[%s8801_s6 + $0x19a] sm:$0xff] }
 0x1de   : > { %7831 = vmatprep.mubr.msk.bf16.mxu0 %vm329_vm0, %v8845_v29  ;;  %v7068_v29 = vld [vmem:[%s8801_s6 + $0x1a2] sm:$0xff] }
 0x1e5   : > { %7832 = vmatmul.mubr.msk.bf16.gmra.mrb[8].mxu0 %vm329_vm0, %v8855_v34  ;;  %v2555_v34 = vpack.c.bf16 %v7068_v29, %v7067_v28 }
 0x1e6   : > { %7835 = vmatprep.mubr.msk.bf16.mxu0 %vm329_vm0, %v8857_v35  ;;  %v8744_v35 = vmov 0.0  }
 0x1e7   : > { %2912 = vst.msk [vmem:[#allocation2 + $0x30] sm:$0xff] %vm2904_vm1, %v8744_v35  ;;  %2913 = vst.msk [vmem:[#allocation2 + $0x38] sm:$0xff] %vm2904_vm1, %v8744_v35 }
 0x1e8   : > { %2905 = vst.msk [vmem:[#allocation2] sm:$0xff] %vm2904_vm1, %v8744_v35  ;;  %2906 = vst.msk [vmem:[#allocation2 + $0x8] sm:$0xff] %vm2904_vm1, %v8744_v35 }
 0x1e9   : > { %2909 = vst.msk [vmem:[#allocation2 + $0x18] sm:$0xff] %vm2904_vm1, %v8744_v35  ;;  %2910 = vst.msk [vmem:[#allocation2 + $0x20] sm:$0xff] %vm2904_vm1, %v8744_v35 }
 0x1ea   : > { %2915 = vst.msk [vmem:[#allocation2 + $0x48] sm:$0xff] %vm2904_vm1, %v8744_v35  ;;  %2916 = vst.msk [vmem:[#allocation2 + $0x50] sm:$0xff] %vm2904_vm1, %v8744_v35 }
 0x1eb   : > { %2918 = vst.msk [vmem:[#allocation2 + $0x60] sm:$0xff] %vm2904_vm1, %v8744_v35  ;;  %2919 = vst.msk [vmem:[#allocation2 + $0x68] sm:$0xff] %vm2904_vm1, %v8744_v35 }
 0x1ec   : > { %2921 = vst.msk [vmem:[#allocation2 + $0x78] sm:$0xff] %vm2904_vm1, %v8744_v35  ;;  %2922 = vst.msk [vmem:[#allocation2 + $0x80] sm:$0xff] %vm2904_vm1, %v8744_v35 }
 0x1ed   : > { %7836 = vmatmul.mubr.msk.bf16.gmra.mrb[12].mxu0 %vm329_vm0, %v8867_v40  ;;  %2924 = vst.msk [vmem:[#allocation2 + $0x90] sm:$0xff] %vm2904_vm1, %v8744_v35  ;;  %2925 = vst.msk [vmem:[#allocation2 + $0x98] sm:$0xff] %vm2904_vm1, %v8744_v35  ;;  %v7088_v40 = vld [vmem:[%s10356_s3 + $0x20] sm:$0xff] }
 0x1ee   : > { %7839 = vmatprep.mubr.msk.bf16.mxu0 %vm329_vm0, %v8869_v41  ;;  %2927 = vst.msk [vmem:[#allocation2 + $0xa8] sm:$0xff] %vm2904_vm1, %v8744_v35  ;;  %2928 = vst.msk [vmem:[#allocation2 + $0xb0] sm:$0xff] %vm2904_vm1, %v8744_v35  ;;  %v7089_v41 = vld [vmem:[%s10356_s3 + $0x28] sm:$0xff] }
 0x1ef   : > { %2930 = vst.msk [vmem:[#allocation2 + $0xc0] sm:$0xff] %vm2904_vm1, %v8744_v35  ;;  %2931 = vst.msk [vmem:[#allocation2 + $0xc8] sm:$0xff] %vm2904_vm1, %v8744_v35 }
 0x1f0   : > { %2933 = vst.msk [vmem:[#allocation2 + $0xd8] sm:$0xff] %vm2904_vm1, %v8744_v35  ;;  %2934 = vst.msk [vmem:[#allocation2 + $0xe0] sm:$0xff] %vm2904_vm1, %v8744_v35 }
 0x1f1   : > { %2936 = vst.msk [vmem:[#allocation2 + $0xf0] sm:$0xff] %vm2904_vm1, %v8744_v35  ;;  %2937 = vst.msk [vmem:[#allocation2 + $0xf8] sm:$0xff] %vm2904_vm1, %v8744_v35 }
 0x1f2   : > { %2939 = vst.msk [vmem:[#allocation2 + $0x108] sm:$0xff] %vm2904_vm1, %v8744_v35  ;;  %2940 = vst.msk [vmem:[#allocation2 + $0x110] sm:$0xff] %vm2904_vm1, %v8744_v35 }
 0x1f3   : > { %2942 = vst.msk [vmem:[#allocation2 + $0x120] sm:$0xff] %vm2904_vm1, %v8744_v35  ;;  %2943 = vst.msk [vmem:[#allocation2 + $0x128] sm:$0xff] %vm2904_vm1, %v8744_v35 }
 0x1f4   : > { %2945 = vst.msk [vmem:[#allocation2 + $0x138] sm:$0xff] %vm2904_vm1, %v8744_v35  ;;  %2946 = vst.msk [vmem:[#allocation2 + $0x140] sm:$0xff] %vm2904_vm1, %v8744_v35 }
 0x1f5   : > { %7840 = vmatmul.mubr.msk.bf16.gmra.mrb[16].mxu0 %vm329_vm0, %v8879_v46  ;;  %2948 = vst.msk [vmem:[#allocation2 + $0x150] sm:$0xff] %vm2904_vm1, %v8744_v35  ;;  %2949 = vst.msk [vmem:[#allocation2 + $0x158] sm:$0xff] %vm2904_vm1, %v8744_v35  ;;  %v3100_v46 = vpack.c.bf16 %v7089_v41, %v7088_v40 }
 0x1f6   : > { %7843 = vmatprep.mubr.msk.bf16.mxu0 %vm329_vm0, %v8881_v47  ;;  %2951 = vst.msk [vmem:[#allocation2 + $0x168] sm:$0xff] %vm2904_vm1, %v8744_v35  ;;  %2952 = vst.msk [vmem:[#allocation2 + $0x170] sm:$0xff] %vm2904_vm1, %v8744_v35  ;;  %v7090_v47 = vld [vmem:[%s10356_s3 + $0x30] sm:$0xff] }
 0x1f7   : > { %2954 = vst.msk [vmem:[#allocation2 + $0x180] sm:$0xff] %vm2904_vm1, %v8744_v35  ;;  %2955 = vst.msk [vmem:[#allocation2 + $0x188] sm:$0xff] %vm2904_vm1, %v8744_v35  ;;  %7889 = vmatprep.subr.bf16.mxu1 %v3100_v46 }
 0x1f8   : > { %2957 = vst.msk [vmem:[#allocation2 + $0x198] sm:$0xff] %vm2904_vm1, %v8744_v35  ;;  %2958 = vst.msk [vmem:[#allocation2 + $0x1a0] sm:$0xff] %vm2904_vm1, %v8744_v35  ;;  %7890 = vmatpush3.bf16.msra.mxu1 %v3100_v46 }
 0x1f9   : > { %2914 = vst.msk [vmem:[#allocation2 + $0x40] sm:$0x3] %vm2907_vm2, %v8744_v35  ;;  %2908 = vst.msk [vmem:[#allocation2 + $0x10] sm:$0x3] %vm2907_vm2, %v8744_v35 }
 0x1fa   : > { %2911 = vst.msk [vmem:[#allocation2 + $0x28] sm:$0x3] %vm2907_vm2, %v8744_v35  ;;  %2917 = vst.msk [vmem:[#allocation2 + $0x58] sm:$0x3] %vm2907_vm2, %v8744_v35 }
 0x1fb   : > { %2920 = vst.msk [vmem:[#allocation2 + $0x70] sm:$0x3] %vm2907_vm2, %v8744_v35  ;;  %2923 = vst.msk [vmem:[#allocation2 + $0x88] sm:$0x3] %vm2907_vm2, %v8744_v35 }
 0x1fc   : > { %2926 = vst.msk [vmem:[#allocation2 + $0xa0] sm:$0x3] %vm2907_vm2, %v8744_v35  ;;  %2929 = vst.msk [vmem:[#allocation2 + $0xb8] sm:$0x3] %vm2907_vm2, %v8744_v35 }
 0x1fd   : > { %7844 = vmatmul.mubr.msk.bf16.gmra.mrb[20].mxu0 %vm329_vm0, %v8891_v52  ;;  %2932 = vst.msk [vmem:[#allocation2 + $0xd0] sm:$0x3] %vm2907_vm2, %v8744_v35  ;;  %2935 = vst.msk [vmem:[#allocation2 + $0xe8] sm:$0x3] %vm2907_vm2, %v8744_v35  ;;  %v7091_v52 = vld [vmem:[%s10356_s3 + $0x38] sm:$0xff] }
 0x1fe   : > { %7847 = vmatprep.mubr.msk.bf16.mxu0 %vm329_vm0, %v8893_v53  ;;  %2938 = vst.msk [vmem:[#allocation2 + $0x100] sm:$0x3] %vm2907_vm2, %v8744_v35  ;;  %2941 = vst.msk [vmem:[#allocation2 + $0x118] sm:$0x3] %vm2907_vm2, %v8744_v35  ;;  %v3101_v53 = vpack.c.bf16 %v7091_v52, %v7090_v47 }
 0x1ff   : > { %2944 = vst.msk [vmem:[#allocation2 + $0x130] sm:$0x3] %vm2907_vm2, %v8744_v35  ;;  %2947 = vst.msk [vmem:[#allocation2 + $0x148] sm:$0x3] %vm2907_vm2, %v8744_v35 }
 0x200   : > { %2950 = vst.msk [vmem:[#allocation2 + $0x160] sm:$0x3] %vm2907_vm2, %v8744_v35  ;;  %2953 = vst.msk [vmem:[#allocation2 + $0x178] sm:$0x3] %vm2907_vm2, %v8744_v35  ;;  %7891 = vmatprep.subr.bf16.mxu1 %v3101_v53  ;;  %v3048_v17 = vld [vmem:[#allocation2 + $0x9] sm:$0xff] }
 0x201   : > { %2956 = vst.msk [vmem:[#allocation2 + $0x190] sm:$0x3] %vm2907_vm2, %v8744_v35  ;;  %2959 = vst.msk [vmem:[#allocation2 + $0x1a8] sm:$0x3] %vm2907_vm2, %v8744_v35  ;;  %7892 = vmatpush3.bf16.msra.mxu1 %v3101_v53  ;;  %v7125_v35 = vld [vmem:[%s10356_s3 + $0x48] sm:$0xff] }
 0x202   : > { %7925 = vmatprep.subr.bf16.mxu1 %v9408_v33 }
 0x205   : > { %7848 = vmatmul.mubr.msk.bf16.gmra.mrb[24].mxu0 %vm329_vm0, %v8903_v58  ;;  %v3047_v58 = vld [vmem:[#allocation2 + $0x1] sm:$0xff] }
 0x206   : > { %7851 = vmatprep.mubr.msk.bf16.mxu0 %vm329_vm0, %v9188_v61  ;;  %v3079_v18 = vpack.c.bf16 %v3048_v17, %v3047_v58  ;;  %v3043_v61 = vld [vmem:[%s10356_s3 + $0x10] sm:$0xff] }
 0x207   : > { %v3046_v16 = vpack.c.bf16 %v3044_v62, %v3043_v61 }
 0x208   : > { %7893 = vmatprep.mubr.msk.bf16.mxu1 %vm2904_vm1, %v3079_v18 }
 0x20d   : > { %7852 = vmatmul.mubr.msk.bf16.gmra.mrb[28].mxu0 %vm329_vm0, %v2262_v23 }
 0x20e   : > { %7857 = vmatprep.mubr.msk.bf16.mxu0 %vm329_vm0, %v9023_v8 }
 0x215   : > { %7858 = vmatmul.mubr.msk.bf16.vlgmr.msra.gmra.mrb[0].mxu0 %vm329_vm0, %v9034_v20 }
 0x216   : > { %7861 = vmatprep.mubr.msk.bf16.mxu0 %vm329_vm0, %v9036_v21 }
 0x21d   : > { %7862 = vmatmul.mubr.msk.bf16.gmra.mrb[4].mxu0 %vm329_vm0, %v9046_v31 }
 0x21e   : > { %7865 = vmatprep.mubr.msk.bf16.mxu0 %vm329_vm0, %v9048_v32 }
 0x225   : > { %7866 = vmatmul.mubr.msk.bf16.gmra.mrb[8].mxu0 %vm329_vm0, %v9058_v45 }
 0x226   : > { %7869 = vmatprep.mubr.msk.bf16.mxu0 %vm329_vm0, %v9060_v48 }
 0x22d   : > { %7870 = vmatmul.mubr.msk.bf16.gmra.mrb[12].mxu0 %vm329_vm0, %v9070_v57 }
 0x22e   : > { %7873 = vmatprep.mubr.msk.bf16.mxu0 %vm329_vm0, %v9072_v59 }
 0x235   : > { %7874 = vmatmul.mubr.msk.bf16.gmra.mrb[16].mxu0 %vm329_vm0, %v9082_v1 }
 0x236   : > { %7877 = vmatprep.mubr.msk.bf16.mxu0 %vm329_vm0, %v9084_v5 }
 0x23d   : > { %7878 = vmatmul.mubr.msk.bf16.gmra.mrb[20].mxu0 %vm329_vm0, %v9094_v19 }
 0x23e   : > { %7881 = vmatprep.mubr.msk.bf16.mxu0 %vm329_vm0, %v9096_v4 }
 0x245   : > { %7882 = vmatmul.mubr.msk.bf16.gmra.mrb[24].mxu0 %vm329_vm0, %v9104_v30 }
 0x246   : > { %7885 = vmatprep.mubr.msk.bf16.mxu0 %vm329_vm0, %v1675_v12 }
 0x24d   : > { %7886 = vmatmul.mubr.msk.bf16.gmra.mrb[28].mxu0 %vm329_vm0, %v2555_v34  ;;  %v7124_v34 = vld [vmem:[%s10356_s3 + $0x40] sm:$0xff] }
 0x24e   : > { %v9457_v58 = vpack.c.bf16 %v7125_v35, %v7124_v34 }
 0x2e8   : > { %v7859_v43 = vpop.f32.mrb[0].mxu0 }
 0x2e9   : > { %v2810_v44 = vadd.f32 %v7859_v43, %v9414_v36  ;;  %v2642_v51 = vpop.f32.mrb[1].mxu0 }
 0x2ea   : > { %v2808_v54 = vadd.f32 %v9414_v36, %v2642_v51  ;;  %v7860_v60 = vpop.f32.mrb[2].mxu0 }
 0x2eb   : > { %v2842_v8 = vmul.f32 0.2, %v2810_v44  ;;  %v2811_v20 = vadd.f32 %v7860_v60, %v9414_v36  ;;  %v2645_v21 = vpop.f32.mrb[3].mxu0 }
 0x2ec   : > { %v2840_v31 = vmul.f32 0.2, %v2808_v54  ;;  %v2809_v32 = vadd.f32 %v9414_v36, %v2645_v21 }
 0x2ed   : > { %v2874_v45 = vmax.f32 %v2810_v44, %v2842_v8  ;;  %v2843_v48 = vmul.f32 0.2, %v2811_v20 }
 0x2ee   : > { %v2872_v57 = vmax.f32 %v2808_v54, %v2840_v31  ;;  %v2841_v59 = vmul.f32 0.2, %v2809_v32 }
 0x2ef   : > { %2963 = vst.msk [vmem:[#allocation2 + $0x31] sm:$0xff] %vm2904_vm1, %v2874_v45  ;;  %v2875_v1 = vmax.f32 %v2811_v20, %v2843_v48 }
 0x2f0   : > { %2961 = vst.msk [vmem:[#allocation2 + $0x19] sm:$0xff] %vm2904_vm1, %v2872_v57  ;;  %v2873_v5 = vmax.f32 %v2809_v32, %v2841_v59  ;;  %v7863_v19 = vpop.f32.mrb[4].mxu0 }
 0x2f1   : > { %2964 = vst.msk [vmem:[#allocation2 + $0x39] sm:$0xff] %vm2904_vm1, %v2875_v1  ;;  %v2814_v4 = vadd.f32 %v7863_v19, %v9414_v36  ;;  %v2658_v27 = vpop.f32.mrb[5].mxu0 }
 0x2f2   : > { %2962 = vst.msk [vmem:[#allocation2 + $0x21] sm:$0xff] %vm2904_vm1, %v2873_v5  ;;  %v2812_v30 = vadd.f32 %v9414_v36, %v2658_v27  ;;  %v7864_v37 = vpop.f32.mrb[6].mxu0 }
 0x2f3   : > { %v2846_v38 = vmul.f32 0.2, %v2814_v4  ;;  %v2815_v39 = vadd.f32 %v7864_v37, %v9414_v36  ;;  %v2661_v2 = vpop.f32.mrb[7].mxu0 }
 0x2f4   : > { %v2844_v11 = vmul.f32 0.2, %v2812_v30  ;;  %v2813_v42 = vadd.f32 %v9414_v36, %v2661_v2 }
 0x2f5   : > { %v2878_v49 = vmax.f32 %v2814_v4, %v2846_v38  ;;  %v2847_v50 = vmul.f32 0.2, %v2815_v39 }
 0x2f6   : > { %v2876_v55 = vmax.f32 %v2812_v30, %v2844_v11  ;;  %v2845_v15 = vmul.f32 0.2, %v2813_v42  ;;  %v3051_v10 = vld [vmem:[#allocation2 + $0x31] sm:$0xff] }
 0x2f7   : > { %2967 = vst.msk [vmem:[#allocation2 + $0x61] sm:$0xff] %vm2904_vm1, %v2878_v49  ;;  %v2879_v56 = vmax.f32 %v2815_v39, %v2847_v50  ;;  %v3049_v13 = vld [vmem:[#allocation2 + $0x19] sm:$0xff] }
 0x2f8   : > { %2965 = vst.msk [vmem:[#allocation2 + $0x49] sm:$0xff] %vm2904_vm1, %v2876_v55  ;;  %v2877_v63 = vmax.f32 %v2813_v42, %v2845_v15  ;;  %v7867_v0 = vpop.f32.mrb[8].mxu0  ;;  %v3052_v7 = vld [vmem:[#allocation2 + $0x39] sm:$0xff] }
 0x2f9   : > { %2968 = vst.msk [vmem:[#allocation2 + $0x69] sm:$0xff] %vm2904_vm1, %v2879_v56  ;;  %v2818_v6 = vadd.f32 %v7867_v0, %v9414_v36  ;;  %v2674_v12 = vpop.f32.mrb[9].mxu0  ;;  %v3050_v14 = vld [vmem:[#allocation2 + $0x21] sm:$0xff]  ;;  %v9443_v29 = vpack.c.bf16 %v3052_v7, %v3051_v10 }
 0x2fa   : > { %2966 = vst.msk [vmem:[#allocation2 + $0x51] sm:$0xff] %vm2904_vm1, %v2877_v63  ;;  %v2816_v24 = vadd.f32 %v9414_v36, %v2674_v12  ;;  %v7868_v3 = vpop.f32.mrb[10].mxu0  ;;  %v9440_v9 = vpack.c.bf16 %v3050_v14, %v3049_v13 }
 0x2fb   : > { %v2850_v22 = vmul.f32 0.2, %v2818_v6  ;;  %v2819_v23 = vadd.f32 %v7868_v3, %v9414_v36  ;;  %v2677_v28 = vpop.f32.mrb[11].mxu0 }
 0x2fc   : > { %v2848_v40 = vmul.f32 0.2, %v2816_v24  ;;  %v2817_v41 = vadd.f32 %v9414_v36, %v2677_v28  ;;  %7894 = vmatmul.mubr.msk.bf16.vlgmr.msra.gmra.mrb[0].mxu1 %vm2904_vm1, %v9440_v9 }
 0x2fd   : > { %v2882_v46 = vmax.f32 %v2818_v6, %v2850_v22  ;;  %v2851_v47 = vmul.f32 0.2, %v2819_v23  ;;  %7926 = vmatpush3.bf16.msra.mxu1 %v9408_v33  ;;  %7897 = vmatprep.mubr.msk.bf16.mxu1 %vm2904_vm1, %v9443_v29 }
 0x2fe   : > { %v2880_v52 = vmax.f32 %v2816_v24, %v2848_v40  ;;  %v2849_v53 = vmul.f32 0.2, %v2817_v41  ;;  %7927 = vmatprep.subr.bf16.mxu1 %v3046_v16  ;;  %v3055_v20 = vld [vmem:[#allocation2 + $0x61] sm:$0xff] }
 0x2ff   : > { %2971 = vst.msk [vmem:[#allocation2 + $0x91] sm:$0xff] %vm2904_vm1, %v2882_v46  ;;  %v2883_v17 = vmax.f32 %v2819_v23, %v2851_v47  ;;  %v3053_v44 = vld [vmem:[#allocation2 + $0x49] sm:$0xff] }
 0x300   : > { %2969 = vst.msk [vmem:[#allocation2 + $0x79] sm:$0xff] %vm2904_vm1, %v2880_v52  ;;  %v2881_v18 = vmax.f32 %v2817_v41, %v2849_v53  ;;  %v7871_v25 = vpop.f32.mrb[12].mxu0  ;;  %v3056_v26 = vld [vmem:[#allocation2 + $0x69] sm:$0xff] }
 0x301   : > { %2972 = vst.msk [vmem:[#allocation2 + $0x99] sm:$0xff] %vm2904_vm1, %v2883_v17  ;;  %v2822_v33 = vadd.f32 %v7871_v25, %v9414_v36  ;;  %v2690_v43 = vpop.f32.mrb[13].mxu0  ;;  %v3054_v51 = vld [vmem:[#allocation2 + $0x51] sm:$0xff]  ;;  %7928 = vmatpush3.bf16.msra.mxu1 %v3046_v16  ;;  %v9469_v45 = vpack.c.bf16 %v3056_v26, %v3055_v20 }
 0x302   : > { %2970 = vst.msk [vmem:[#allocation2 + $0x81] sm:$0xff] %vm2904_vm1, %v2881_v18  ;;  %v2820_v54 = vadd.f32 %v9414_v36, %v2690_v43  ;;  %v7872_v60 = vpop.f32.mrb[14].mxu0  ;;  %v9465_v8 = vpack.c.bf16 %v3054_v51, %v3053_v44  ;;  %7961 = vmatprep.subr.bf16.mxu1 %v9457_v58 }
 0x303   : > { %v2854_v21 = vmul.f32 0.2, %v2822_v33  ;;  %v2823_v31 = vadd.f32 %v7872_v60, %v9414_v36  ;;  %v2693_v32 = vpop.f32.mrb[15].mxu0 }
 0x304   : > { %v2852_v48 = vmul.f32 0.2, %v2820_v54  ;;  %v2821_v57 = vadd.f32 %v9414_v36, %v2693_v32  ;;  %7898 = vmatmul.mubr.msk.bf16.gmra.mrb[4].mxu1 %vm2904_vm1, %v9465_v8 }
 0x305   : > { %v2886_v59 = vmax.f32 %v2822_v33, %v2854_v21  ;;  %v2855_v1 = vmul.f32 0.2, %v2823_v31  ;;  %7901 = vmatprep.mubr.msk.bf16.mxu1 %vm2904_vm1, %v9469_v45 }
 0x306   : > { %v2884_v5 = vmax.f32 %v2820_v54, %v2852_v48  ;;  %v2853_v19 = vmul.f32 0.2, %v2821_v57  ;;  %v3059_v55 = vld [vmem:[#allocation2 + $0x91] sm:$0xff] }
 0x307   : > { %2975 = vst.msk [vmem:[#allocation2 + $0xc1] sm:$0xff] %vm2904_vm1, %v2886_v59  ;;  %v2887_v4 = vmax.f32 %v2823_v31, %v2855_v1  ;;  %v3057_v2 = vld [vmem:[#allocation2 + $0x79] sm:$0xff] }
 0x308   : > { %2973 = vst.msk [vmem:[#allocation2 + $0xa9] sm:$0xff] %vm2904_vm1, %v2884_v5  ;;  %v2885_v27 = vmax.f32 %v2821_v57, %v2853_v19  ;;  %v7875_v30 = vpop.f32.mrb[16].mxu0  ;;  %v3060_v37 = vld [vmem:[#allocation2 + $0x99] sm:$0xff] }
 0x309   : > { %2976 = vst.msk [vmem:[#allocation2 + $0xc9] sm:$0xff] %vm2904_vm1, %v2887_v4  ;;  %v2826_v38 = vadd.f32 %v7875_v30, %v9414_v36  ;;  %v2706_v39 = vpop.f32.mrb[17].mxu0  ;;  %v3058_v11 = vld [vmem:[#allocation2 + $0x81] sm:$0xff]  ;;  %v9485_v62 = vpack.c.bf16 %v3060_v37, %v3059_v55 }
 0x30a   : > { %2974 = vst.msk [vmem:[#allocation2 + $0xb1] sm:$0xff] %vm2904_vm1, %v2885_v27  ;;  %v2824_v42 = vadd.f32 %v9414_v36, %v2706_v39  ;;  %v7876_v49 = vpop.f32.mrb[18].mxu0  ;;  %v9482_v50 = vpack.c.bf16 %v3058_v11, %v3057_v2 }
 0x30b   : > { %v2858_v15 = vmul.f32 0.2, %v2826_v38  ;;  %v2827_v56 = vadd.f32 %v7876_v49, %v9414_v36  ;;  %v2709_v61 = vpop.f32.mrb[19].mxu0 }
 0x30c   : > { %v2856_v63 = vmul.f32 0.2, %v2824_v42  ;;  %v2825_v0 = vadd.f32 %v9414_v36, %v2709_v61  ;;  %7902 = vmatmul.mubr.msk.bf16.gmra.mrb[8].mxu1 %vm2904_vm1, %v9482_v50 }
 0x30d   : > { %v2890_v7 = vmax.f32 %v2826_v38, %v2858_v15  ;;  %v2859_v6 = vmul.f32 0.2, %v2827_v56  ;;  %7905 = vmatprep.mubr.msk.bf16.mxu1 %vm2904_vm1, %v9485_v62 }
 0x30e   : > { %v2888_v12 = vmax.f32 %v2824_v42, %v2856_v63  ;;  %v2857_v13 = vmul.f32 0.2, %v2825_v0  ;;  %v3063_v41 = vld [vmem:[#allocation2 + $0xc1] sm:$0xff] }
 0x30f   : > { %2979 = vst.msk [vmem:[#allocation2 + $0xf1] sm:$0xff] %vm2904_vm1, %v2890_v7  ;;  %v2891_v14 = vmax.f32 %v2827_v56, %v2859_v6  ;;  %v3061_v23 = vld [vmem:[#allocation2 + $0xa9] sm:$0xff] }
 0x310   : > { %2977 = vst.msk [vmem:[#allocation2 + $0xd9] sm:$0xff] %vm2904_vm1, %v2888_v12  ;;  %v2889_v24 = vmax.f32 %v2825_v0, %v2857_v13  ;;  %v7879_v3 = vpop.f32.mrb[20].mxu0  ;;  %v3064_v10 = vld [vmem:[#allocation2 + $0xc9] sm:$0xff] }
 0x311   : > { %2980 = vst.msk [vmem:[#allocation2 + $0xf9] sm:$0xff] %vm2904_vm1, %v2891_v14  ;;  %v2830_v16 = vadd.f32 %v7879_v3, %v9414_v36  ;;  %v2722_v22 = vpop.f32.mrb[21].mxu0  ;;  %v3062_v28 = vld [vmem:[#allocation2 + $0xb1] sm:$0xff]  ;;  %v9501_v53 = vpack.c.bf16 %v3064_v10, %v3063_v41 }
 0x312   : > { %2978 = vst.msk [vmem:[#allocation2 + $0xe1] sm:$0xff] %vm2904_vm1, %v2889_v24  ;;  %v2828_v34 = vadd.f32 %v9414_v36, %v2722_v22  ;;  %v7880_v35 = vpop.f32.mrb[22].mxu0  ;;  %v9498_v40 = vpack.c.bf16 %v3062_v28, %v3061_v23 }
 0x313   : > { %v2862_v46 = vmul.f32 0.2, %v2830_v16  ;;  %v2831_v47 = vadd.f32 %v7880_v35, %v9414_v36  ;;  %v2725_v52 = vpop.f32.mrb[23].mxu0 }
 0x314   : > { %v2860_v17 = vmul.f32 0.2, %v2828_v34  ;;  %v2829_v18 = vadd.f32 %v9414_v36, %v2725_v52  ;;  %7906 = vmatmul.mubr.msk.bf16.gmra.mrb[12].mxu1 %vm2904_vm1, %v9498_v40 }
 0x315   : > { %v2894_v25 = vmax.f32 %v2830_v16, %v2862_v46  ;;  %v2863_v26 = vmul.f32 0.2, %v2831_v47  ;;  %7909 = vmatprep.mubr.msk.bf16.mxu1 %vm2904_vm1, %v9501_v53 }
 0x316   : > { %v2892_v33 = vmax.f32 %v2828_v34, %v2860_v17  ;;  %v2861_v43 = vmul.f32 0.2, %v2829_v18  ;;  %v3067_v1 = vld [vmem:[#allocation2 + $0xf1] sm:$0xff] }
 0x317   : > { %2983 = vst.msk [vmem:[#allocation2 + $0x121] sm:$0xff] %vm2904_vm1, %v2894_v25  ;;  %v2895_v44 = vmax.f32 %v2831_v47, %v2863_v26  ;;  %v3065_v31 = vld [vmem:[#allocation2 + $0xd9] sm:$0xff] }
 0x318   : > { %2981 = vst.msk [vmem:[#allocation2 + $0x109] sm:$0xff] %vm2904_vm1, %v2892_v33  ;;  %v2893_v51 = vmax.f32 %v2829_v18, %v2861_v43  ;;  %v7883_v54 = vpop.f32.mrb[24].mxu0  ;;  %v3068_v60 = vld [vmem:[#allocation2 + $0xf9] sm:$0xff]  ;;  %v2994_v33 = vld [vmem:[#allocation2 + $0x8] sm:$0xff] }
 0x319   : > { %2984 = vst.msk [vmem:[#allocation2 + $0x129] sm:$0xff] %vm2904_vm1, %v2895_v44  ;;  %v2834_v20 = vadd.f32 %v7883_v54, %v9414_v36  ;;  %v2738_v21 = vpop.f32.mrb[25].mxu0  ;;  %v3066_v32 = vld [vmem:[#allocation2 + $0xe1] sm:$0xff]  ;;  %v9517_v27 = vpack.c.bf16 %v3068_v60, %v3067_v1 }
 0x31a   : > { %2982 = vst.msk [vmem:[#allocation2 + $0x111] sm:$0xff] %vm2904_vm1, %v2893_v51  ;;  %v2832_v48 = vadd.f32 %v9414_v36, %v2738_v21  ;;  %v7884_v57 = vpop.f32.mrb[26].mxu0  ;;  %v9514_v59 = vpack.c.bf16 %v3066_v32, %v3065_v31  ;;  %v2993_v26 = vld [vmem:[#allocation2] sm:$0xff]  ;;  %v7127_v21 = vld [vmem:[%s10356_s3 + $0x58] sm:$0xff] }
 0x31b   : > { %v2866_v5 = vmul.f32 0.2, %v2834_v20  ;;  %v2835_v19 = vadd.f32 %v7884_v57, %v9414_v36  ;;  %v2741_v4 = vpop.f32.mrb[27].mxu0  ;;  %v3025_v51 = vpack.c.bf16 %v2994_v33, %v2993_v26  ;;  %v2996_v60 = vld [vmem:[#allocation2 + $0x20] sm:$0xff]  ;;  %v2998_v31 = vld [vmem:[#allocation2 + $0x38] sm:$0xff]  ;;  %v2997_v57 = vld [vmem:[#allocation2 + $0x30] sm:$0xff] }
 0x31c   : > { %v2864_v30 = vmul.f32 0.2, %v2832_v48  ;;  %v2833_v37 = vadd.f32 %v9414_v36, %v2741_v4  ;;  %7910 = vmatmul.mubr.msk.bf16.gmra.mrb[16].mxu1 %vm2904_vm1, %v9514_v59  ;;  %v2995_v32 = vld [vmem:[#allocation2 + $0x18] sm:$0xff]  ;;  %v7145_v4 = vld [vmem:[%s10356_s3 + $0x68] sm:$0xff] }
 0x31d   : > { %v2898_v38 = vmax.f32 %v2834_v20, %v2866_v5  ;;  %v2867_v39 = vmul.f32 0.2, %v2835_v19  ;;  %7913 = vmatprep.mubr.msk.bf16.mxu1 %vm2904_vm1, %v9517_v27  ;;  %v7126_v20 = vld [vmem:[%s10356_s3 + $0x50] sm:$0xff]  ;;  %v9565_v5 = vpack.c.bf16 %v2998_v31, %v2997_v57  ;;  %v3522_v57 = vld [vmem:[#allocation2 + $0x1a] sm:$0xff] }
 0x31e   : > { %v2896_v2 = vmax.f32 %v2832_v48, %v2864_v30  ;;  %v2865_v11 = vmul.f32 0.2, %v2833_v37  ;;  %v3071_v13 = vld [vmem:[#allocation2 + $0x121] sm:$0xff]  ;;  %v9563_v48 = vpack.c.bf16 %v2996_v60, %v2995_v32  ;;  %v3574_v1 = vpack.c.bf16 %v7127_v21, %v7126_v20  ;;  %v3521_v60 = vld [vmem:[#allocation2 + $0xa] sm:$0xff] }
 0x31f   : > { %2987 = vst.msk [vmem:[#allocation2 + $0x151] sm:$0xff] %vm2904_vm1, %v2898_v38  ;;  %v2899_v42 = vmax.f32 %v2835_v19, %v2867_v39  ;;  %v3069_v63 = vld [vmem:[#allocation2 + $0x109] sm:$0xff]  ;;  %v7144_v19 = vld [vmem:[%s10356_s3 + $0x60] sm:$0xff] }
 0x320   : > { %2985 = vst.msk [vmem:[#allocation2 + $0x139] sm:$0xff] %vm2904_vm1, %v2896_v2  ;;  %v2897_v49 = vmax.f32 %v2833_v37, %v2865_v11  ;;  %v7887_v55 = vpop.f32.mrb[28].mxu0  ;;  %v3072_v15 = vld [vmem:[#allocation2 + $0x129] sm:$0xff]  ;;  %v9578_v30 = vpack.c.bf16 %v7145_v4, %v7144_v19  ;;  %v3001_v11 = vld [vmem:[#allocation2 + $0x60] sm:$0xff]  ;;  %v7147_v4 = vld [vmem:[%s10356_s3 + $0x78] sm:$0xff] }
 0x321   : > { %2988 = vst.msk [vmem:[#allocation2 + $0x159] sm:$0xff] %vm2904_vm1, %v2899_v42  ;;  %v2838_v56 = vadd.f32 %v7887_v55, %v9414_v36  ;;  %v2754_v61 = vpop.f32.mrb[29].mxu0  ;;  %v3070_v0 = vld [vmem:[#allocation2 + $0x111] sm:$0xff]  ;;  %v9533_v10 = vpack.c.bf16 %v3072_v15, %v3071_v13  ;;  %v3002_v38 = vld [vmem:[#allocation2 + $0x68] sm:$0xff]  ;;  %v3009_v13 = vld [vmem:[#allocation2 + $0xc0] sm:$0xff] }
 0x322   : > { %2986 = vst.msk [vmem:[#allocation2 + $0x141] sm:$0xff] %vm2904_vm1, %v2897_v49  ;;  %v2836_v7 = vadd.f32 %v9414_v36, %v2754_v61  ;;  %v7888_v6 = vpop.f32.mrb[30].mxu0  ;;  %v9530_v12 = vpack.c.bf16 %v3070_v0, %v3069_v63  ;;  %v3000_v37 = vld [vmem:[#allocation2 + $0x50] sm:$0xff]  ;;  %v2999_v39 = vld [vmem:[#allocation2 + $0x48] sm:$0xff]  ;;  %v9583_v42 = vpack.c.bf16 %v3002_v38, %v3001_v11  ;;  %v3006_v49 = vld [vmem:[#allocation2 + $0x98] sm:$0xff] }
 0x323   : > { %v2870_v14 = vmul.f32 0.2, %v2838_v56  ;;  %v2839_v24 = vadd.f32 %v7888_v6, %v9414_v36  ;;  %v2757_v3 = vpop.f32.mrb[31].mxu0  ;;  %v9580_v2 = vpack.c.bf16 %v3000_v37, %v2999_v39  ;;  %v3003_v55 = vld [vmem:[#allocation2 + $0x78] sm:$0xff]  ;;  %v3008_v63 = vld [vmem:[#allocation2 + $0xb0] sm:$0xff]  ;;  %v3010_v0 = vld [vmem:[#allocation2 + $0xc8] sm:$0xff] }
 0x324   : > { %v2868_v16 = vmul.f32 0.2, %v2836_v7  ;;  %v2837_v22 = vadd.f32 %v9414_v36, %v2757_v3  ;;  %7914 = vmatmul.mubr.msk.bf16.gmra.mrb[20].mxu1 %vm2904_vm1, %v9530_v12  ;;  %v3014_v3 = vld [vmem:[#allocation2 + $0xf8] sm:$0xff]  ;;  %v7146_v19 = vld [vmem:[%s10356_s3 + $0x70] sm:$0xff] }
 0x325   : > { %v2902_v23 = vmax.f32 %v2838_v56, %v2870_v14  ;;  %v2871_v28 = vmul.f32 0.2, %v2839_v24  ;;  %7917 = vmatprep.mubr.msk.bf16.mxu1 %vm2904_vm1, %v9533_v10  ;;  %v3005_v56 = vld [vmem:[#allocation2 + $0x90] sm:$0xff]  ;;  %v9599_v14 = vpack.c.bf16 %v3010_v0, %v3009_v13  ;;  %v3525_v38 = vld [vmem:[#allocation2 + $0x3a] sm:$0xff]  ;;  %v3870_v11 = vpack.c.bf16 %v7147_v4, %v7146_v19 }
 0x326   : > { %v2900_v34 = vmax.f32 %v2836_v7, %v2868_v16  ;;  %v2869_v35 = vmul.f32 0.2, %v2837_v22  ;;  %v3075_v18 = vld [vmem:[#allocation2 + $0x151] sm:$0xff]  ;;  %v9591_v61 = vpack.c.bf16 %v3006_v49, %v3005_v56  ;;  %v3007_v7 = vld [vmem:[#allocation2 + $0xa8] sm:$0xff]  ;;  %v7164_v49 = vld [vmem:[%s10356_s3 + $0x80] sm:$0xff] }
 0x327   : > { %2991 = vst.msk [vmem:[#allocation2 + $0x181] sm:$0xff] %vm2904_vm1, %v2902_v23  ;;  %v2903_v41 = vmax.f32 %v2839_v24, %v2871_v28  ;;  %v3073_v36 = vld [vmem:[#allocation2 + $0x139] sm:$0xff]  ;;  %v9597_v6 = vpack.c.bf16 %v3008_v63, %v3007_v7  ;;  %v3013_v23 = vld [vmem:[#allocation2 + $0xf0] sm:$0xff]  ;;  %v3528_v7 = vld [vmem:[#allocation2 + $0x62] sm:$0xff] }
 0x328   : > { %2989 = vst.msk [vmem:[#allocation2 + $0x169] sm:$0xff] %vm2904_vm1, %v2900_v34  ;;  %v2901_v46 = vmax.f32 %v2837_v22, %v2869_v35  ;;  %v3076_v47 = vld [vmem:[#allocation2 + $0x159] sm:$0xff]  ;;  %v9607_v28 = vpack.c.bf16 %v3014_v3, %v3013_v23  ;;  %v3016_v34 = vld [vmem:[#allocation2 + $0x110] sm:$0xff]  ;;  %v3018_v35 = vld [vmem:[#allocation2 + $0x128] sm:$0xff] }
 0x329   : > { %2992 = vst.msk [vmem:[#allocation2 + $0x189] sm:$0xff] %vm2904_vm1, %v2903_v41  ;;  %v3074_v52 = vld [vmem:[#allocation2 + $0x141] sm:$0xff]  ;;  %v9546_v25 = vpack.c.bf16 %v3076_v47, %v3075_v18  ;;  %v3011_v16 = vld [vmem:[#allocation2 + $0xd8] sm:$0xff]  ;;  %v3526_v63 = vld [vmem:[#allocation2 + $0x4a] sm:$0xff] }
 0x32a   : > { %2990 = vst.msk [vmem:[#allocation2 + $0x171] sm:$0xff] %vm2904_vm1, %v2901_v46  ;;  %v9544_v17 = vpack.c.bf16 %v3074_v52, %v3073_v36  ;;  %v3012_v24 = vld [vmem:[#allocation2 + $0xe0] sm:$0xff]  ;;  %v3015_v41 = vld [vmem:[#allocation2 + $0x108] sm:$0xff]  ;;  %v3022_v18 = vld [vmem:[#allocation2 + $0x158] sm:$0xff] }
 0x32b   : > { %v9605_v22 = vpack.c.bf16 %v3012_v24, %v3011_v16  ;;  %v9613_v46 = vpack.c.bf16 %v3016_v34, %v3015_v41  ;;  %v3017_v47 = vld [vmem:[#allocation2 + $0x120] sm:$0xff]  ;;  %v3019_v26 = vld [vmem:[#allocation2 + $0x138] sm:$0xff]  ;;  %v3529_v13 = vld [vmem:[#allocation2 + $0x6a] sm:$0xff] }
 0x32c   : > { %7918 = vmatmul.mubr.msk.bf16.gmra.mrb[24].mxu1 %vm2904_vm1, %v9544_v17  ;;  %v9615_v36 = vpack.c.bf16 %v3018_v35, %v3017_v47  ;;  %v3020_v52 = vld [vmem:[#allocation2 + $0x140] sm:$0xff]  ;;  %v3524_v37 = vld [vmem:[#allocation2 + $0x32] sm:$0xff]  ;;  %v9657_v3 = vpack.c.bf16 %v3529_v13, %v3528_v7  ;;  %v3534_v47 = vld [vmem:[#allocation2 + $0xaa] sm:$0xff] }
 0x32d   : > { %7921 = vmatprep.mubr.msk.bf16.mxu1 %vm2904_vm1, %v9546_v25  ;;  %v9621_v33 = vpack.c.bf16 %v3020_v52, %v3019_v26  ;;  %v3527_v0 = vld [vmem:[#allocation2 + $0x52] sm:$0xff]  ;;  %v3531_v16 = vld [vmem:[#allocation2 + $0x82] sm:$0xff]  ;;  %v3533_v34 = vld [vmem:[#allocation2 + $0x9a] sm:$0xff] }
 0x32e   : > { %v9655_v24 = vpack.c.bf16 %v3527_v0, %v3526_v63  ;;  %v3532_v23 = vld [vmem:[#allocation2 + $0x92] sm:$0xff]  ;;  %v3537_v26 = vld [vmem:[#allocation2 + $0xca] sm:$0xff]  ;;  %v3547_v63 = vld [vmem:[#allocation2 + $0x142] sm:$0xff] }
 0x32f   : > { %v3077_v43 = vld [vmem:[#allocation2 + $0x169] sm:$0xff]  ;;  %v9665_v41 = vpack.c.bf16 %v3533_v34, %v3532_v23  ;;  %v3535_v52 = vld [vmem:[#allocation2 + $0xb2] sm:$0xff]  ;;  %v3549_v7 = vld [vmem:[#allocation2 + $0x15a] sm:$0xff] }
 0x330   : > { %v3023_v21 = vld [vmem:[#allocation2 + $0x168] sm:$0xff]  ;;  %v3543_v4 = vld [vmem:[#allocation2 + $0x112] sm:$0xff] }
 0x331   : > { %v3078_v44 = vld [vmem:[#allocation2 + $0x171] sm:$0xff] }
 0x332   : > { %v9552_v54 = vpack.c.bf16 %v3078_v44, %v3077_v43  ;;  %v3021_v43 = vld [vmem:[#allocation2 + $0x150] sm:$0xff] }
 0x333   : > { %v9623_v44 = vpack.c.bf16 %v3022_v18, %v3021_v43  ;;  %v3024_v20 = vld [vmem:[#allocation2 + $0x170] sm:$0xff]  ;;  %v3536_v18 = vld [vmem:[#allocation2 + $0xc2] sm:$0xff]  ;;  %v9671_v43 = vpack.c.bf16 %v3535_v52, %v3534_v47  ;;  %v7167_v52 = vld [vmem:[%s10356_s3 + $0x98] sm:$0xff] }
 0x334   : > { %7922 = vmatmul.mubr.msk.bf16.gmra.mrb[28].mxu1 %vm2904_vm1, %v9552_v54  ;;  %v9629_v32 = vpack.c.bf16 %v3024_v20, %v3023_v21  ;;  %v3539_v20 = vld [vmem:[#allocation2 + $0xe2] sm:$0xff]  ;;  %v3540_v21 = vld [vmem:[#allocation2 + $0xf2] sm:$0xff]  ;;  %v3542_v19 = vld [vmem:[#allocation2 + $0x10a] sm:$0xff] }
 0x335   : > { %7929 = vmatprep.mubr.msk.bf16.mxu1 %vm2904_vm1, %v3025_v51  ;;  %v3520_v51 = vld [vmem:[#allocation2 + $0x2] sm:$0xff]  ;;  %v3548_v0 = vld [vmem:[#allocation2 + $0x152] sm:$0xff] }
 0x336   : > { %v3552_v31 = vpack.c.bf16 %v3521_v60, %v3520_v51  ;;  %v9673_v51 = vpack.c.bf16 %v3537_v26, %v3536_v18  ;;  %v3538_v60 = vld [vmem:[#allocation2 + $0xda] sm:$0xff]  ;;  %v3551_v23 = vld [vmem:[#allocation2 + $0x172] sm:$0xff] }
 0x337   : > { %v7166_v47 = vld [vmem:[%s10356_s3 + $0x90] sm:$0xff]  ;;  %v7184_v26 = vld [vmem:[%s10356_s3 + $0xa0] sm:$0xff] }
 0x338   : > { %v4166_v18 = vpack.c.bf16 %v7167_v52, %v7166_v47  ;;  %v7245_v47 = vld [vmem:[%s10356_s3 + $0x108] sm:$0xff] }
 0x33c   : > { %7930 = vmatmul.mubr.msk.bf16.vlgmr.msra.gmra.mrb[0].mxu1 %vm2904_vm1, %v9563_v48 }
 0x33d   : > { %7962 = vmatpush3.bf16.msra.mxu1 %v9457_v58  ;;  %7933 = vmatprep.mubr.msk.bf16.mxu1 %vm2904_vm1, %v9565_v5  ;;  %v3004_v58 = vld [vmem:[#allocation2 + $0x80] sm:$0xff] }
 0x33e   : > { %7963 = vmatprep.subr.bf16.mxu1 %v3574_v1  ;;  %v9589_v15 = vpack.c.bf16 %v3004_v58, %v3003_v55  ;;  %v9642_v58 = vpack.c.bf16 %v3525_v38, %v3524_v37  ;;  %v7165_v55 = vld [vmem:[%s10356_s3 + $0x88] sm:$0xff] }
 0x33f   : > { %v4165_v56 = vpack.c.bf16 %v7165_v55, %v7164_v49  ;;  %v3544_v37 = vld [vmem:[#allocation2 + $0x122] sm:$0xff]  ;;  %v3545_v38 = vld [vmem:[#allocation2 + $0x12a] sm:$0xff]  ;;  %v3546_v55 = vld [vmem:[#allocation2 + $0x13a] sm:$0xff] }
 0x340   : > { %v9689_v49 = vpack.c.bf16 %v3545_v38, %v3544_v37  ;;  %v9695_v13 = vpack.c.bf16 %v3547_v63, %v3546_v55  ;;  %v7204_v37 = vld [vmem:[%s10356_s3 + $0xc0] sm:$0xff]  ;;  %v7205_v38 = vld [vmem:[%s10356_s3 + $0xc8] sm:$0xff] }
 0x341   : > { %7964 = vmatpush3.bf16.msra.mxu1 %v3574_v1  ;;  %v3523_v1 = vld [vmem:[#allocation2 + $0x22] sm:$0xff]  ;;  %v4439_v55 = vld [vmem:[#allocation2 + $0x18a] sm:$0xff] }
 0x342   : > { %7997 = vmatprep.subr.bf16.mxu1 %v9578_v30  ;;  %v9640_v39 = vpack.c.bf16 %v3523_v1, %v3522_v57  ;;  %v9679_v57 = vpack.c.bf16 %v3539_v20, %v3538_v60  ;;  %v7185_v60 = vld [vmem:[%s10356_s3 + $0xa8] sm:$0xff]  ;;  %v3846_v20 = vld [vmem:[#allocation2 + $0x180] sm:$0xff] }
 0x344   : > { %7934 = vmatmul.mubr.msk.bf16.gmra.mrb[4].mxu1 %vm2904_vm1, %v9580_v2 }
 0x345   : > { %7937 = vmatprep.mubr.msk.bf16.mxu1 %vm2904_vm1, %v9583_v42 }
 0x34c   : > { %7938 = vmatmul.mubr.msk.bf16.gmra.mrb[8].mxu1 %vm2904_vm1, %v9589_v15 }
 0x34d   : > { %7941 = vmatprep.mubr.msk.bf16.mxu1 %vm2904_vm1, %v9591_v61 }
 0x354   : > { %7942 = vmatmul.mubr.msk.bf16.gmra.mrb[12].mxu1 %vm2904_vm1, %v9597_v6 }
 0x355   : > { %7945 = vmatprep.mubr.msk.bf16.mxu1 %vm2904_vm1, %v9599_v14 }
 0x35c   : > { %7946 = vmatmul.mubr.msk.bf16.gmra.mrb[16].mxu1 %vm2904_vm1, %v9605_v22 }
 0x35d   : > { %7949 = vmatprep.mubr.msk.bf16.mxu1 %vm2904_vm1, %v9607_v28 }
 0x364   : > { %7950 = vmatmul.mubr.msk.bf16.gmra.mrb[20].mxu1 %vm2904_vm1, %v9613_v46 }
 0x365   : > { %7953 = vmatprep.mubr.msk.bf16.mxu1 %vm2904_vm1, %v9615_v36 }
 0x36c   : > { %7954 = vmatmul.mubr.msk.bf16.gmra.mrb[24].mxu1 %vm2904_vm1, %v9621_v33 }
 0x36d   : > { %7957 = vmatprep.mubr.msk.bf16.mxu1 %vm2904_vm1, %v9623_v44 }
 0x374   : > { %7958 = vmatmul.mubr.msk.bf16.gmra.mrb[28].mxu1 %vm2904_vm1, %v9629_v32 }
 0x375   : > { %7965 = vmatprep.mubr.msk.bf16.mxu1 %vm2904_vm1, %v3552_v31  ;;  %v3541_v31 = vld [vmem:[#allocation2 + $0xfa] sm:$0xff] }
 0x376   : > { %v9681_v1 = vpack.c.bf16 %v3541_v31, %v3540_v21  ;;  %v7186_v31 = vld [vmem:[%s10356_s3 + $0xb0] sm:$0xff] }
 0x37c   : > { %7966 = vmatmul.mubr.msk.bf16.vlgmr.msra.gmra.mrb[0].mxu1 %vm2904_vm1, %v9640_v39 }
 0x37d   : > { %7998 = vmatpush3.bf16.msra.mxu1 %v9578_v30  ;;  %7969 = vmatprep.mubr.msk.bf16.mxu1 %vm2904_vm1, %v9642_v58  ;;  %v3530_v30 = vld [vmem:[#allocation2 + $0x7a] sm:$0xff] }
 0x37e   : > { %7999 = vmatprep.subr.bf16.mxu1 %v3870_v11  ;;  %v9663_v35 = vpack.c.bf16 %v3531_v16, %v3530_v30  ;;  %v9697_v30 = vpack.c.bf16 %v3549_v7, %v3548_v0  ;;  %v3550_v16 = vld [vmem:[#allocation2 + $0x16a] sm:$0xff]  ;;  %v7227_v7 = vld [vmem:[%s10356_s3 + $0xf8] sm:$0xff] }
 0x37f   : > { %v9703_v34 = vpack.c.bf16 %v3551_v23, %v3550_v16  ;;  %v7226_v0 = vld [vmem:[%s10356_s3 + $0xf0] sm:$0xff]  ;;  %v7244_v23 = vld [vmem:[%s10356_s3 + $0x100] sm:$0xff] }
 0x380   : > { %v5055_v16 = vpack.c.bf16 %v7227_v7, %v7226_v0 }
 0x381   : > { %8000 = vmatpush3.bf16.msra.mxu1 %v3870_v11  ;;  %v9687_v11 = vpack.c.bf16 %v3543_v4, %v3542_v19  ;;  %v7187_v19 = vld [vmem:[%s10356_s3 + $0xb8] sm:$0xff] }
 0x382   : > { %8033 = vmatprep.subr.bf16.mxu1 %v4165_v56  ;;  %v4462_v4 = vpack.c.bf16 %v7187_v19, %v7186_v31  ;;  %v5012_v31 = vld [vmem:[#allocation2 + $0xb1] sm:$0xff]  ;;  %v5014_v19 = vld [vmem:[#allocation2 + $0xc9] sm:$0xff] }
 0x384   : > { %7970 = vmatmul.mubr.msk.bf16.gmra.mrb[4].mxu1 %vm2904_vm1, %v9655_v24 }
 0x385   : > { %7973 = vmatprep.mubr.msk.bf16.mxu1 %vm2904_vm1, %v9657_v3 }
 0x38c   : > { %7974 = vmatmul.mubr.msk.bf16.gmra.mrb[8].mxu1 %vm2904_vm1, %v9663_v35 }
 0x38d   : > { %7977 = vmatprep.mubr.msk.bf16.mxu1 %vm2904_vm1, %v9665_v41 }
 0x394   : > { %7978 = vmatmul.mubr.msk.bf16.gmra.mrb[12].mxu1 %vm2904_vm1, %v9671_v43 }
 0x395   : > { %7981 = vmatprep.mubr.msk.bf16.mxu1 %vm2904_vm1, %v9673_v51 }
 0x39c   : > { %7982 = vmatmul.mubr.msk.bf16.gmra.mrb[16].mxu1 %vm2904_vm1, %v9679_v57 }
 0x39d   : > { %7985 = vmatprep.mubr.msk.bf16.mxu1 %vm2904_vm1, %v9681_v1 }
 0x3a4   : > { %7986 = vmatmul.mubr.msk.bf16.gmra.mrb[20].mxu1 %vm2904_vm1, %v9687_v11 }
 0x3a5   : > { %7989 = vmatprep.mubr.msk.bf16.mxu1 %vm2904_vm1, %v9689_v49 }
 0x3ac   : > { %7990 = vmatmul.mubr.msk.bf16.gmra.mrb[24].mxu1 %vm2904_vm1, %v9695_v13 }
 0x3ad   : > { %7993 = vmatprep.mubr.msk.bf16.mxu1 %vm2904_vm1, %v9697_v30 }
 0x3b4   : > { %7994 = vmatmul.mubr.msk.bf16.gmra.mrb[28].mxu1 %vm2904_vm1, %v9703_v34 }
 0x3b5   : > { %8001 = vmatprep.mubr.msk.bf16.mxu1 %vm2904_vm1, %v9563_v48  ;;  %v4461_v48 = vpack.c.bf16 %v7185_v60, %v7184_v26  ;;  %v5008_v26 = vld [vmem:[#allocation2 + $0x81] sm:$0xff]  ;;  %v5010_v60 = vld [vmem:[#allocation2 + $0x99] sm:$0xff] }
 0x3bc   : > { %8002 = vmatmul.mubr.msk.bf16.vlgmr.msra.gmra.mrb[0].mxu1 %vm2904_vm1, %v9565_v5 }
 0x3bd   : > { %8034 = vmatpush3.bf16.msra.mxu1 %v4165_v56  ;;  %8005 = vmatprep.mubr.msk.bf16.mxu1 %vm2904_vm1, %v9580_v2  ;;  %v3847_v56 = vld [vmem:[#allocation2 + $0x188] sm:$0xff] }
 0x3be   : > { %8035 = vmatprep.subr.bf16.mxu1 %v4166_v18  ;;  %v9749_v21 = vpack.c.bf16 %v3847_v56, %v3846_v20  ;;  %v5009_v20 = vld [vmem:[#allocation2 + $0x91] sm:$0xff] }
 0x3c1   : > { %8036 = vmatpush3.bf16.msra.mxu1 %v4166_v18 }
 0x3c2   : > { %8069 = vmatprep.subr.bf16.mxu1 %v4461_v48 }
 0x3c4   : > { %8006 = vmatmul.mubr.msk.bf16.gmra.mrb[4].mxu1 %vm2904_vm1, %v9583_v42 }
 0x3c5   : > { %8009 = vmatprep.mubr.msk.bf16.mxu1 %vm2904_vm1, %v9589_v15 }
 0x3cc   : > { %8010 = vmatmul.mubr.msk.bf16.gmra.mrb[8].mxu1 %vm2904_vm1, %v9591_v61 }
 0x3cd   : > { %8013 = vmatprep.mubr.msk.bf16.mxu1 %vm2904_vm1, %v9597_v6 }
 0x3d4   : > { %8014 = vmatmul.mubr.msk.bf16.gmra.mrb[12].mxu1 %vm2904_vm1, %v9599_v14 }
 0x3d5   : > { %8017 = vmatprep.mubr.msk.bf16.mxu1 %vm2904_vm1, %v9605_v22 }
 0x3dc   : > { %8018 = vmatmul.mubr.msk.bf16.gmra.mrb[16].mxu1 %vm2904_vm1, %v9607_v28 }
 0x3dd   : > { %8021 = vmatprep.mubr.msk.bf16.mxu1 %vm2904_vm1, %v9613_v46 }
 0x3e4   : > { %8022 = vmatmul.mubr.msk.bf16.gmra.mrb[20].mxu1 %vm2904_vm1, %v9615_v36 }
 0x3e5   : > { %8025 = vmatprep.mubr.msk.bf16.mxu1 %vm2904_vm1, %v9621_v33 }
 0x3ec   : > { %8026 = vmatmul.mubr.msk.bf16.gmra.mrb[24].mxu1 %vm2904_vm1, %v9623_v44 }
 0x3ed   : > { %8029 = vmatprep.mubr.msk.bf16.mxu1 %vm2904_vm1, %v9629_v32 }
 0x3f4   : > { %8030 = vmatmul.mubr.msk.bf16.gmra.mrb[28].mxu1 %vm2904_vm1, %v9749_v21 }
 0x3f5   : > { %8037 = vmatprep.mubr.msk.bf16.mxu1 %vm2904_vm1, %v9440_v9  ;;  %v4758_v9 = vpack.c.bf16 %v7205_v38, %v7204_v37  ;;  %v5013_v38 = vld [vmem:[#allocation2 + $0xc1] sm:$0xff] }
 0x3fc   : > { %8038 = vmatmul.mubr.msk.bf16.vlgmr.msra.gmra.mrb[0].mxu1 %vm2904_vm1, %v9443_v29  ;;  %v4143_v29 = vld [vmem:[#allocation2 + $0x189] sm:$0xff] }
 0x3fd   : > { %8070 = vmatpush3.bf16.msra.mxu1 %v4461_v48  ;;  %8041 = vmatprep.mubr.msk.bf16.mxu1 %vm2904_vm1, %v9465_v8  ;;  %v4142_v8 = vld [vmem:[#allocation2 + $0x181] sm:$0xff]  ;;  %v5007_v48 = vld [vmem:[#allocation2 + $0x79] sm:$0xff] }
 0x3fe   : > { %8071 = vmatprep.subr.bf16.mxu1 %v4462_v4  ;;  %v5036_v56 = vpack.c.bf16 %v5008_v26, %v5007_v48 }
 0x401   : > { %8072 = vmatpush3.bf16.msra.mxu1 %v4462_v4  ;;  %v5011_v4 = vld [vmem:[#allocation2 + $0xa9] sm:$0xff] }
 0x402   : > { %8105 = vmatprep.subr.bf16.mxu1 %v4758_v9  ;;  %v5038_v37 = vpack.c.bf16 %v5012_v31, %v5011_v4 }
 0x404   : > { %8042 = vmatmul.mubr.msk.bf16.gmra.mrb[4].mxu1 %vm2904_vm1, %v9469_v45  ;;  %v9795_v45 = vpack.c.bf16 %v4143_v29, %v4142_v8  ;;  %v5016_v29 = vld [vmem:[#allocation2 + $0xe1] sm:$0xff]  ;;  %v5018_v8 = vld [vmem:[#allocation2 + $0xf9] sm:$0xff] }
 0x405   : > { %8045 = vmatprep.mubr.msk.bf16.mxu1 %vm2904_vm1, %v9482_v50  ;;  %v7206_v50 = vld [vmem:[%s10356_s3 + $0xd0] sm:$0xff] }
 0x40c   : > { %8046 = vmatmul.mubr.msk.bf16.gmra.mrb[8].mxu1 %vm2904_vm1, %v9485_v62  ;;  %v7207_v62 = vld [vmem:[%s10356_s3 + $0xd8] sm:$0xff] }
 0x40d   : > { %8049 = vmatprep.mubr.msk.bf16.mxu1 %vm2904_vm1, %v9498_v40  ;;  %v4759_v40 = vpack.c.bf16 %v7207_v62, %v7206_v50  ;;  %v5015_v50 = vld [vmem:[#allocation2 + $0xd9] sm:$0xff] }
 0x40e   : > { %v5040_v62 = vpack.c.bf16 %v5016_v29, %v5015_v50 }
 0x414   : > { %8050 = vmatmul.mubr.msk.bf16.gmra.mrb[12].mxu1 %vm2904_vm1, %v9501_v53  ;;  %v7224_v53 = vld [vmem:[%s10356_s3 + $0xe0] sm:$0xff] }
 0x415   : > { %8053 = vmatprep.mubr.msk.bf16.mxu1 %vm2904_vm1, %v9514_v59  ;;  %v7225_v59 = vld [vmem:[%s10356_s3 + $0xe8] sm:$0xff] }
 0x41c   : > { %8054 = vmatmul.mubr.msk.bf16.gmra.mrb[16].mxu1 %vm2904_vm1, %v9517_v27  ;;  %v5054_v27 = vpack.c.bf16 %v7225_v59, %v7224_v53  ;;  %v5031_v59 = vld [vmem:[#allocation2 + $0x199] sm:$0xff] }
 0x41d   : > { %8057 = vmatprep.mubr.msk.bf16.mxu1 %vm2904_vm1, %v9530_v12 }
 0x424   : > { %8058 = vmatmul.mubr.msk.bf16.gmra.mrb[20].mxu1 %vm2904_vm1, %v9533_v10 }
 0x425   : > { %8061 = vmatprep.mubr.msk.bf16.mxu1 %vm2904_vm1, %v9544_v17 }
 0x42c   : > { %8062 = vmatmul.mubr.msk.bf16.gmra.mrb[24].mxu1 %vm2904_vm1, %v9546_v25 }
 0x42d   : > { %8065 = vmatprep.mubr.msk.bf16.mxu1 %vm2904_vm1, %v9552_v54 }
 0x434   : > { %8066 = vmatmul.mubr.msk.bf16.gmra.mrb[28].mxu1 %vm2904_vm1, %v9795_v45 }
 0x435   : > { %8073 = vmatprep.mubr.msk.bf16.mxu1 %vm2904_vm1, %v9640_v39  ;;  %v4438_v39 = vld [vmem:[#allocation2 + $0x182] sm:$0xff] }
 0x436   : > { %v9841_v63 = vpack.c.bf16 %v4439_v55, %v4438_v39 }
 0x43c   : > { %8074 = vmatmul.mubr.msk.bf16.vlgmr.msra.gmra.mrb[0].mxu1 %vm2904_vm1, %v9642_v58 }
 0x43d   : > { %8106 = vmatpush3.bf16.msra.mxu1 %v4758_v9  ;;  %8077 = vmatprep.mubr.msk.bf16.mxu1 %vm2904_vm1, %v9655_v24  ;;  %v5039_v9 = vpack.c.bf16 %v5014_v19, %v5013_v38 }
 0x43e   : > { %8107 = vmatprep.subr.bf16.mxu1 %v4759_v40 }
 0x441   : > { %8108 = vmatpush3.bf16.msra.mxu1 %v4759_v40  ;;  %v5017_v40 = vld [vmem:[#allocation2 + $0xf1] sm:$0xff] }
 0x442   : > { %8141 = vmatprep.subr.bf16.mxu1 %v5054_v27  ;;  %v5041_v53 = vpack.c.bf16 %v5018_v8, %v5017_v40 }
 0x444   : > { %8078 = vmatmul.mubr.msk.bf16.gmra.mrb[4].mxu1 %vm2904_vm1, %v9657_v3 }
 0x445   : > { %8081 = vmatprep.mubr.msk.bf16.mxu1 %vm2904_vm1, %v9663_v35 }
 0x44c   : > { %8082 = vmatmul.mubr.msk.bf16.gmra.mrb[8].mxu1 %vm2904_vm1, %v9665_v41 }
 0x44d   : > { %8085 = vmatprep.mubr.msk.bf16.mxu1 %vm2904_vm1, %v9671_v43 }
 0x454   : > { %8086 = vmatmul.mubr.msk.bf16.gmra.mrb[12].mxu1 %vm2904_vm1, %v9673_v51 }
 0x455   : > { %8089 = vmatprep.mubr.msk.bf16.mxu1 %vm2904_vm1, %v9679_v57 }
 0x45c   : > { %8090 = vmatmul.mubr.msk.bf16.gmra.mrb[16].mxu1 %vm2904_vm1, %v9681_v1 }
 0x45d   : > { %8093 = vmatprep.mubr.msk.bf16.mxu1 %vm2904_vm1, %v9687_v11 }
 0x464   : > { %8094 = vmatmul.mubr.msk.bf16.gmra.mrb[20].mxu1 %vm2904_vm1, %v9689_v49 }
 0x465   : > { %8097 = vmatprep.mubr.msk.bf16.mxu1 %vm2904_vm1, %v9695_v13 }
 0x46c   : > { %8098 = vmatmul.mubr.msk.bf16.gmra.mrb[24].mxu1 %vm2904_vm1, %v9697_v30 }
 0x46d   : > { %8101 = vmatprep.mubr.msk.bf16.mxu1 %vm2904_vm1, %v9703_v34 }
 0x474   : > { %8102 = vmatmul.mubr.msk.bf16.gmra.mrb[28].mxu1 %vm2904_vm1, %v9841_v63 }
 0x475   : > { %8109 = vmatprep.mubr.msk.bf16.mxu1 %vm2904_vm1, %v9565_v5  ;;  %v5350_v5 = vpack.c.bf16 %v7245_v47, %v7244_v23 }
 0x47c   : > { %8110 = vmatmul.mubr.msk.bf16.vlgmr.msra.gmra.mrb[0].mxu1 %vm2904_vm1, %v9580_v2  ;;  %v4735_v2 = vld [vmem:[#allocation2 + $0x198] sm:$0xff] }
 0x47d   : > { %8142 = vmatpush3.bf16.msra.mxu1 %v5054_v27  ;;  %8113 = vmatprep.mubr.msk.bf16.mxu1 %vm2904_vm1, %v9583_v42  ;;  %v4736_v42 = vld [vmem:[#allocation2 + $0x1a0] sm:$0xff] }
 0x47e   : > { %8143 = vmatprep.subr.bf16.mxu1 %v5055_v16  ;;  %v5032_v27 = vld [vmem:[#allocation2 + $0x1a1] sm:$0xff] }
 0x47f   : > { %v5048_v39 = vpack.c.bf16 %v5032_v27, %v5031_v59 }
 0x481   : > { %8144 = vmatpush3.bf16.msra.mxu1 %v5055_v16 }
 0x482   : > { %8177 = vmatprep.subr.bf16.mxu1 %v5350_v5 }
 0x484   : > { %8114 = vmatmul.mubr.msk.bf16.gmra.mrb[4].mxu1 %vm2904_vm1, %v9589_v15  ;;  %v4752_v15 = vpack.c.bf16 %v4736_v42, %v4735_v2 }
 0x485   : > { %8117 = vmatprep.mubr.msk.bf16.mxu1 %vm2904_vm1, %v9591_v61  ;;  %v5002_v61 = vld [vmem:[#allocation2 + $0x39] sm:$0xff] }
 0x48c   : > { %8118 = vmatmul.mubr.msk.bf16.gmra.mrb[8].mxu1 %vm2904_vm1, %v9597_v6  ;;  %v5001_v6 = vld [vmem:[#allocation2 + $0x31] sm:$0xff] }
 0x48d   : > { %8121 = vmatprep.mubr.msk.bf16.mxu1 %vm2904_vm1, %v9599_v14  ;;  %v5033_v14 = vpack.c.bf16 %v5002_v61, %v5001_v6 }
 0x494   : > { %8122 = vmatmul.mubr.msk.bf16.gmra.mrb[12].mxu1 %vm2904_vm1, %v9605_v22  ;;  %v5004_v22 = vld [vmem:[#allocation2 + $0x51] sm:$0xff] }
 0x495   : > { %8125 = vmatprep.mubr.msk.bf16.mxu1 %vm2904_vm1, %v9607_v28  ;;  %v7246_v28 = vld [vmem:[%s10356_s3 + $0x110] sm:$0xff] }
 0x49c   : > { %8126 = vmatmul.mubr.msk.bf16.gmra.mrb[16].mxu1 %vm2904_vm1, %v9613_v46  ;;  %v7247_v46 = vld [vmem:[%s10356_s3 + $0x118] sm:$0xff] }
 0x49d   : > { %8129 = vmatprep.mubr.msk.bf16.mxu1 %vm2904_vm1, %v9615_v36  ;;  %v5006_v36 = vld [vmem:[#allocation2 + $0x69] sm:$0xff]  ;;  %v5351_v52 = vpack.c.bf16 %v7247_v46, %v7246_v28 }
 0x4a4   : > { %8130 = vmatmul.mubr.msk.bf16.gmra.mrb[20].mxu1 %vm2904_vm1, %v9621_v33  ;;  %v5003_v33 = vld [vmem:[#allocation2 + $0x49] sm:$0xff] }
 0x4a5   : > { %8133 = vmatprep.mubr.msk.bf16.mxu1 %vm2904_vm1, %v9623_v44  ;;  %v5034_v44 = vpack.c.bf16 %v5004_v22, %v5003_v33 }
 0x4ac   : > { %8134 = vmatmul.mubr.msk.bf16.gmra.mrb[24].mxu1 %vm2904_vm1, %v9629_v32  ;;  %v5005_v32 = vld [vmem:[#allocation2 + $0x61] sm:$0xff] }
 0x4ad   : > { %8137 = vmatprep.mubr.msk.bf16.mxu1 %vm2904_vm1, %v9749_v21  ;;  %v5035_v18 = vpack.c.bf16 %v5006_v36, %v5005_v32  ;;  %v5037_v21 = vpack.c.bf16 %v5010_v60, %v5009_v20 }
 0x4b4   : > { %8138 = vmatmul.mubr.msk.bf16.gmra.mrb[28].mxu1 %vm2904_vm1, %v4752_v15 }
 0x4b5   : > { %8145 = vmatprep.mubr.msk.bf16.mxu1 %vm2904_vm1, %v5033_v14 }
 0x4bc   : > { %8146 = vmatmul.mubr.msk.bf16.vlgmr.msra.gmra.mrb[0].mxu1 %vm2904_vm1, %v5034_v44 }
 0x4bd   : > { %8178 = vmatpush3.bf16.msra.mxu1 %v5350_v5  ;;  %8149 = vmatprep.mubr.msk.bf16.mxu1 %vm2904_vm1, %v5035_v18 }
 0x4be   : > { %8179 = vmatprep.subr.bf16.mxu1 %v5351_v52 }
 0x4c1   : > { %8180 = vmatpush3.bf16.msra.mxu1 %v5351_v52 }
 0x4c4   : > { %8150 = vmatmul.mubr.msk.bf16.gmra.mrb[4].mxu1 %vm2904_vm1, %v5036_v56 }
 0x4c5   : > { %8153 = vmatprep.mubr.msk.bf16.mxu1 %vm2904_vm1, %v5037_v21 }
 0x4cc   : > { %8154 = vmatmul.mubr.msk.bf16.gmra.mrb[8].mxu1 %vm2904_vm1, %v5038_v37 }
 0x4cd   : > { %8157 = vmatprep.mubr.msk.bf16.mxu1 %vm2904_vm1, %v5039_v9 }
 0x4d4   : > { %8158 = vmatmul.mubr.msk.bf16.gmra.mrb[12].mxu1 %vm2904_vm1, %v5040_v62 }
 0x4d5   : > { %8161 = vmatprep.mubr.msk.bf16.mxu1 %vm2904_vm1, %v5041_v53 }
 0x4dc   : > { %8162 = vmatmul.mubr.msk.bf16.gmra.mrb[16].mxu1 %vm2904_vm1, %v9530_v12  ;;  %v5327_v12 = vld [vmem:[#allocation2 + $0x19a] sm:$0xff] }
 0x4dd   : > { %8165 = vmatprep.mubr.msk.bf16.mxu1 %vm2904_vm1, %v9533_v10  ;;  %v5328_v10 = vld [vmem:[#allocation2 + $0x1a2] sm:$0xff] }
 0x4e4   : > { %8166 = vmatmul.mubr.msk.bf16.gmra.mrb[20].mxu1 %vm2904_vm1, %v9544_v17  ;;  %v5344_v17 = vpack.c.bf16 %v5328_v10, %v5327_v12 }
 0x4e5   : > { %8169 = vmatprep.mubr.msk.bf16.mxu1 %vm2904_vm1, %v9546_v25  ;;  %v9950_v25 = vld [vmem:[%s10357_s4] ss:$0 sm:$0xff] }
 0x4ec   : > { %8170 = vmatmul.mubr.msk.bf16.gmra.mrb[24].mxu1 %vm2904_vm1, %v9552_v54 }
 0x4ed   : > { %8173 = vmatprep.mubr.msk.bf16.mxu1 %vm2904_vm1, %v9795_v45 }
 0x4f4   : > { %8174 = vmatmul.mubr.msk.bf16.gmra.mrb[28].mxu1 %vm2904_vm1, %v5048_v39 }
 0x4f5   : > { %8181 = vmatprep.mubr.msk.bf16.mxu1 %vm2904_vm1, %v9642_v58 }
 0x4fc   : > { %8182 = vmatmul.mubr.msk.bf16.vlgmr.msra.gmra.mrb[0].mxu1 %vm2904_vm1, %v9655_v24 }
 0x4fd   : > { %8185 = vmatprep.mubr.msk.bf16.mxu1 %vm2904_vm1, %v9657_v3 }
 0x504   : > { %8186 = vmatmul.mubr.msk.bf16.gmra.mrb[4].mxu1 %vm2904_vm1, %v9663_v35 }
 0x505   : > { %8189 = vmatprep.mubr.msk.bf16.mxu1 %vm2904_vm1, %v9665_v41 }
 0x50c   : > { %8190 = vmatmul.mubr.msk.bf16.gmra.mrb[8].mxu1 %vm2904_vm1, %v9671_v43 }
 0x50d   : > { %8193 = vmatprep.mubr.msk.bf16.mxu1 %vm2904_vm1, %v9673_v51 }
 0x514   : > { %8194 = vmatmul.mubr.msk.bf16.gmra.mrb[12].mxu1 %vm2904_vm1, %v9679_v57 }
 0x515   : > { %8197 = vmatprep.mubr.msk.bf16.mxu1 %vm2904_vm1, %v9681_v1 }
 0x51c   : > { %8198 = vmatmul.mubr.msk.bf16.gmra.mrb[16].mxu1 %vm2904_vm1, %v9687_v11 }
 0x51d   : > { %8201 = vmatprep.mubr.msk.bf16.mxu1 %vm2904_vm1, %v9689_v49 }
 0x524   : > { %8202 = vmatmul.mubr.msk.bf16.gmra.mrb[20].mxu1 %vm2904_vm1, %v9695_v13 }
 0x525   : > { %8205 = vmatprep.mubr.msk.bf16.mxu1 %vm2904_vm1, %v9697_v30 }
 0x52c   : > { %8206 = vmatmul.mubr.msk.bf16.gmra.mrb[24].mxu1 %vm2904_vm1, %v9703_v34 }
 0x52d   : > { %8209 = vmatprep.mubr.msk.bf16.mxu1 %vm2904_vm1, %v9841_v63 }
 0x534   : > { %8210 = vmatmul.mubr.msk.bf16.gmra.mrb[28].mxu1 %vm2904_vm1, %v5344_v17 }
 0x5cf   : > { %v8183_v54 = vpop.f32.mrb[0].mxu1 }
 0x5d0   : > { %v5602_v58 = vadd.f32 %v8183_v54, %v9950_v25  ;;  %v5434_v24 = vpop.f32.mrb[1].mxu1 }
 0x5d1   : > { %v5600_v3 = vadd.f32 %v9950_v25, %v5434_v24  ;;  %v8184_v35 = vpop.f32.mrb[2].mxu1 }
 0x5d2   : > { %v5634_v41 = vmul.f32 0.2, %v5602_v58  ;;  %v5603_v43 = vadd.f32 %v8184_v35, %v9950_v25  ;;  %v5437_v51 = vpop.f32.mrb[3].mxu1 }
 0x5d3   : > { %v5632_v57 = vmul.f32 0.2, %v5600_v3  ;;  %v5601_v1 = vadd.f32 %v9950_v25, %v5437_v51 }
 0x5d4   : > { %v5666_v11 = vmax.f32 %v5602_v58, %v5634_v41  ;;  %v5635_v49 = vmul.f32 0.2, %v5603_v43 }
 0x5d5   : > { %v5664_v13 = vmax.f32 %v5600_v3, %v5632_v57  ;;  %v5633_v30 = vmul.f32 0.2, %v5601_v1 }
 0x5d6   : > { %5698 = vst.msk [vmem:[#allocation2 + $0x31] sm:$0xff] %vm2904_vm1, %v5666_v11  ;;  %v5667_v34 = vmax.f32 %v5603_v43, %v5635_v49 }
 0x5d7   : > { %5730 = vst.msk [vmem:[#allocation2 + $0x2f] sm:$0x2] %vm5728_vm3, %v5666_v11  ;;  %5729 = vst.msk [vmem:[#allocation2 + $0x17] sm:$0x2] %vm5728_vm3, %v5664_v13  ;;  %v5665_v45 = vmax.f32 %v5601_v1, %v5633_v30  ;;  %v8187_v55 = vpop.f32.mrb[4].mxu1 }
 0x5d8   : > { %5696 = vst.msk [vmem:[#allocation2 + $0x19] sm:$0xff] %vm2904_vm1, %v5664_v13  ;;  %5699 = vst.msk [vmem:[#allocation2 + $0x39] sm:$0xff] %vm2904_vm1, %v5667_v34  ;;  %v5606_v63 = vadd.f32 %v8187_v55, %v9950_v25  ;;  %v5450_v0 = vpop.f32.mrb[5].mxu1 }
 0x5d9   : > { %5747 = vst.msk [vmem:[#allocation2 + $0x3b] sm:$0x40] %vm5745_vm4, %v5667_v34  ;;  %5746 = vst.msk [vmem:[#allocation2 + $0x23] sm:$0x40] %vm5745_vm4, %v5665_v45  ;;  %v5604_v7 = vadd.f32 %v9950_v25, %v5450_v0  ;;  %v8188_v16 = vpop.f32.mrb[6].mxu1 }
 0x5da   : > { %5697 = vst.msk [vmem:[#allocation2 + $0x21] sm:$0xff] %vm2904_vm1, %v5665_v45  ;;  %v5638_v23 = vmul.f32 0.2, %v5606_v63  ;;  %v5607_v47 = vadd.f32 %v8188_v16, %v9950_v25  ;;  %v5453_v5 = vpop.f32.mrb[7].mxu1 }
 0x5db   : > { %v5636_v2 = vmul.f32 0.2, %v5604_v7  ;;  %v5605_v42 = vadd.f32 %v9950_v25, %v5453_v5 }
 0x5dc   : > { %v5670_v15 = vmax.f32 %v5606_v63, %v5638_v23  ;;  %v5639_v61 = vmul.f32 0.2, %v5607_v47 }
 0x5dd   : > { %v5668_v14 = vmax.f32 %v5604_v7, %v5636_v2  ;;  %v5637_v22 = vmul.f32 0.2, %v5605_v42  ;;  %v5876_v28 = vld [vmem:[#allocation2 + $0x31] sm:$0xff] }
 0x5de   : > { %v5762_v6 = vld [vmem:[#allocation2 + $0x30] sm:$0xff]  ;;  %5702 = vst.msk [vmem:[#allocation2 + $0x61] sm:$0xff] %vm2904_vm1, %v5670_v15  ;;  %v5671_v60 = vmax.f32 %v5607_v47, %v5639_v61  ;;  %v9978_v21 = vmul.f32 0.125, %v5876_v28  ;;  %v6194_v50 = vmul.f32 0.25, %v5876_v28 }
 0x5df   : > { %5765 = vst.msk [vmem:[#allocation2] sm:$0xff] %vm2904_vm1, %v5762_v6  ;;  %v5778_v46 = vld [vmem:[#allocation2 + $0x18] sm:$0xff]  ;;  %5700 = vst.msk [vmem:[#allocation2 + $0x49] sm:$0xff] %vm2904_vm1, %v5668_v14  ;;  %v5669_v48 = vmax.f32 %v5605_v42, %v5637_v22  ;;  %v9974_v56 = vpop.f32.mrb[8].mxu1  ;;  %v9976_v20 = vmul.f32 0.0625, %v5762_v6  ;;  %v6098_v31 = vmul.f32 0.125, %v5762_v6 }
 0x5e0   : > { %v5874_v36 = vld [vmem:[#allocation2 + $0x19] sm:$0xff]  ;;  %5732 = vst.msk [vmem:[#allocation2 + $0x5f] sm:$0x2] %vm5728_vm3, %v5670_v15  ;;  %v5810_v33 = vmul.f32 0.0625, %v5778_v46  ;;  %5731 = vst.msk [vmem:[#allocation2 + $0x47] sm:$0x2] %vm5728_vm3, %v5668_v14 }
 0x5e1   : > { %v5906_v44 = vmul.f32 0.125, %v5874_v36  ;;  %v5764_v32 = vld [vmem:[#allocation2 + $0x40] sm:$0x3]  ;;  %v5781_v52 = vld [vmem:[#allocation2 + $0x38] sm:$0xff]  ;;  %v5971_v37 = vld [vmem:[#allocation2 + $0x22] sm:$0xff]  ;;  %v9981_v38 = vmul.f32 0.125, %v5778_v46  ;;  %v5940_v3 = vadd.f32 %v9978_v21, %v9976_v20 }
 0x5e2   : > { %5767 = vst.msk [vmem:[#allocation2 + $0x10] sm:$0x3] %vm2907_vm2, %v5764_v32  ;;  %v5877_v18 = vld [vmem:[#allocation2 + $0x39] sm:$0xff]  ;;  %v5875_v4 = vld [vmem:[#allocation2 + $0x21] sm:$0xff]  ;;  %v9987_v40 = vmul.f32 0.25, %v5874_v36  ;;  %v9989_v53 = vmul.f32 0.0625, %v5781_v52 }
 0x5e3   : > { %v5973_v26 = vld [vmem:[#allocation2 + $0x3a] sm:$0xff]  ;;  %5766 = vst.msk [vmem:[#allocation2 + $0x8] sm:$0xff] %vm2904_vm1, %v5781_v52  ;;  %v5907_v29 = vmul.f32 0.125, %v5875_v4  ;;  %5703 = vst.msk [vmem:[#allocation2 + $0x69] sm:$0xff] %vm2904_vm1, %v5671_v60  ;;  %v5938_v62 = vadd.f32 %v5906_v44, %v5810_v33  ;;  %v9991_v59 = vmul.f32 0.125, %v5877_v18  ;;  %v6544_v27 = vld [vmem:[#allocation2 + $0x32] sm:$0xff] }
 0x5e4   : > { %v5779_v19 = vld [vmem:[#allocation2 + $0x20] sm:$0xff]  ;;  %5749 = vst.msk [vmem:[#allocation2 + $0x6b] sm:$0x40] %vm5745_vm4, %v5671_v60  ;;  %5748 = vst.msk [vmem:[#allocation2 + $0x53] sm:$0x40] %vm5745_vm4, %v5669_v48  ;;  %v9993_v39 = vpop.f32.mrb[9].mxu1 }
 0x5e5   : > { %v5811_v9 = vmul.f32 0.0625, %v5779_v19  ;;  %v6256_v8 = vld [vmem:[#allocation2 + $0x1a] sm:$0xff]  ;;  %5701 = vst.msk [vmem:[#allocation2 + $0x51] sm:$0xff] %vm2904_vm1, %v5669_v48  ;;  %v9995_v12 = vmul.f32 0.0625, %v5973_v26  ;;  %v9997_v10 = vmul.f32 0.125, %v5973_v26  ;;  %v6003_v54 = vmul.f32 0.0625, %v5971_v37 }
 0x5e6   : > { %v9999_v58 = vpop.f32.mrb[10].mxu1  ;;  %v5776_v24 = vld [vmem:[#allocation2] sm:$0xff]  ;;  %v6097_v35 = vmul.f32 0.125, %v5779_v19  ;;  %v6099_v41 = vmul.f32 0.125, %v5781_v52  ;;  %v6002_v57 = vmul.f32 0.0625, %v6256_v8  ;;  %v10005_v11 = vmul.f32 0.25, %v5875_v4 }
 0x5e7   : > { %v5939_v17 = vadd.f32 %v5907_v29, %v5811_v9  ;;  %v5784_v43 = vld [vmem:[#allocation2 + $0x60] sm:$0xff]  ;;  %v6195_v49 = vmul.f32 0.25, %v5877_v18  ;;  %v10007_v13 = vmul.f32 0.0625, %v6544_v27  ;;  %v5782_v30 = vld [vmem:[#allocation2 + $0x48] sm:$0xff]  ;;  %v10009_v34 = vpop.f32.mrb[11].mxu1  ;;  %v5808_v45 = vmul.f32 0.0625, %v5776_v24 }
 0x5e8   : > { %v10003_v51 = vld [vmem:[#allocation2 + $0x61] sm:$0xff]  ;;  %v10011_v55 = vmul.f32 0.125, %v6256_v8  ;;  %v10013_v63 = vmul.f32 0.125, %v5971_v37  ;;  %v5878_v0 = vld [vmem:[#allocation2 + $0x49] sm:$0xff]  ;;  %v6034_v7 = vadd.f32 %v6002_v57, %v5938_v62  ;;  %v10015_v16 = vpop.f32.mrb[12].mxu1  ;;  %v5941_v23 = vadd.f32 %v9991_v59, %v9989_v53 }
 0x5e9   : > { %v6035_v1 = vadd.f32 %v6003_v54, %v5939_v17  ;;  %v10019_v15 = vmul.f32 0.0625, %v5784_v43  ;;  %v10022_v61 = vmul.f32 0.125, %v10003_v51  ;;  %v10024_v6 = vpop.f32.mrb[13].mxu1  ;;  %v6100_v33 = vmul.f32 0.125, %v5782_v30 }
 0x5ea   : > { %v5777_v47 = vld [vmem:[#allocation2 + $0x8] sm:$0xff]  ;;  %v5814_v44 = vmul.f32 0.0625, %v5782_v30  ;;  %v5910_v32 = vmul.f32 0.125, %v5878_v0  ;;  %v6036_v52 = vadd.f32 %v10007_v13, %v5940_v3  ;;  %v6130_v18 = vadd.f32 %v6098_v31, %v6034_v7  ;;  %v10027_v26 = vpop.f32.mrb[14].mxu1 }
 0x5eb   : > { %v5872_v5 = vld [vmem:[#allocation2 + $0x1] sm:$0xff]  ;;  %v5873_v2 = vld [vmem:[#allocation2 + $0x9] sm:$0xff]  ;;  %v6131_v42 = vadd.f32 %v6099_v41, %v6035_v1  ;;  %v5809_v14 = vmul.f32 0.0625, %v5777_v47  ;;  %v10029_v37 = vpop.f32.mrb[15].mxu1  ;;  %v6037_v9 = vadd.f32 %v9995_v12, %v5941_v23  ;;  %v6290_v62 = vmul.f32 0.125, %v6544_v27 }
 0x5ec   : > { %v5904_v22 = vmul.f32 0.125, %v5872_v5  ;;  %v5905_v28 = vmul.f32 0.125, %v5873_v2  ;;  %v5968_v46 = vld [vmem:[#allocation2 + $0x2] sm:$0xff]  ;;  %v5969_v36 = vld [vmem:[#allocation2 + $0xa] sm:$0xff]  ;;  %v6226_v8 = vadd.f32 %v6194_v50, %v6130_v18  ;;  %v10032_v57 = vmul.f32 0.125, %v5784_v43 }
 0x5ed   : > { %v6000_v19 = vmul.f32 0.0625, %v5968_v46  ;;  %v6001_v4 = vmul.f32 0.0625, %v5969_v36  ;;  %v6227_v29 = vadd.f32 %v6195_v49, %v6131_v42  ;;  %v5783_v17 = vld [vmem:[#allocation2 + $0x50] sm:$0xff]  ;;  %v6132_v31 = vadd.f32 %v6100_v33, %v6036_v52  ;;  %v10034_v3 = vld [vmem:[#allocation2 + $0x68] sm:$0xff] }
 0x5ee   : > { %v5936_v60 = vadd.f32 %v5904_v22, %v5808_v45  ;;  %v5937_v48 = vadd.f32 %v5905_v28, %v5809_v14  ;;  %v5879_v54 = vld [vmem:[#allocation2 + $0x51] sm:$0xff]  ;;  %v10038_v1 = vadd.f32 %v10022_v61, %v10019_v15  ;;  %v5942_v30 = vadd.f32 %v5910_v32, %v5814_v44  ;;  %v10040_v23 = vld [vmem:[#allocation2 + $0x69] sm:$0xff] }
 0x5ef   : > { %v6196_v45 = vmul.f32 0.25, %v5878_v0  ;;  %v6322_v7 = vadd.f32 %v6290_v62, %v6226_v8  ;;  %v10043_v49 = vld [vmem:[#allocation2 + $0x62] sm:$0xff]  ;;  %v5815_v43 = vmul.f32 0.0625, %v5783_v17  ;;  %v5911_v47 = vmul.f32 0.125, %v5879_v54  ;;  %v10045_v5 = vpop.f32.mrb[16].mxu1  ;;  %v6260_v22 = vld [vmem:[#allocation2 + $0x4a] sm:$0xff] }
 0x5f0   : > { %v6032_v24 = vadd.f32 %v6000_v19, %v5936_v60  ;;  %v6033_v41 = vadd.f32 %v6001_v4, %v5937_v48  ;;  %v6323_v2 = vadd.f32 %v9997_v10, %v6227_v29  ;;  %v10049_v14 = vmul.f32 0.0625, %v10034_v3  ;;  %v10051_v28 = vpop.f32.mrb[17].mxu1  ;;  %v5975_v33 = vld [vmem:[#allocation2 + $0x52] sm:$0xff] }
 0x5f1   : > { %v6418_v42 = vadd.f32 %v6322_v7, %v5814_v44  ;;  %v6101_v0 = vmul.f32 0.125, %v5783_v17  ;;  %v6228_v46 = vadd.f32 %v6196_v45, %v6132_v31  ;;  %v10056_v36 = vmul.f32 0.125, %v10040_v23  ;;  %v10058_v52 = vpop.f32.mrb[18].mxu1 }
 0x5f2   : > { %v6128_v50 = vadd.f32 %v9981_v38, %v6032_v24  ;;  %v6129_v27 = vadd.f32 %v6097_v35, %v6033_v41  ;;  %v10062_v44 = vmul.f32 0.0625, %v10043_v49  ;;  %v6197_v60 = vmul.f32 0.25, %v5879_v54  ;;  %v10064_v48 = vpop.f32.mrb[19].mxu1 }
 0x5f3   : > { %v6514_v10 = vadd.f32 %v6418_v42, %v5910_v32  ;;  %v6133_v18 = vadd.f32 %v6101_v0, %v6037_v9  ;;  %v5943_v19 = vadd.f32 %v5911_v47, %v5815_v43  ;;  %v6292_v4 = vmul.f32 0.125, %v6260_v22 }
 0x5f4   : > { %v6224_v38 = vadd.f32 %v9987_v40, %v6128_v50  ;;  %v6225_v35 = vadd.f32 %v10005_v11, %v6129_v27  ;;  %v6293_v8 = vmul.f32 0.125, %v5975_v33  ;;  %v6419_v62 = vadd.f32 %v6323_v2, %v5815_v43  ;;  %v10079_v50 = vld [vmem:[#allocation2 + $0x6a] sm:$0xff] }
 0x5f5   : > { %v6229_v29 = vadd.f32 %v6197_v60, %v6133_v18  ;;  %v6578_v17 = vmul.f32 0.0625, %v6260_v22  ;;  %v6007_v54 = vmul.f32 0.0625, %v5975_v33  ;;  %v5610_v31 = vadd.f32 %v9974_v56, %v9950_v25 }
 0x5f6   : > { %v6320_v40 = vadd.f32 %v10011_v55, %v6224_v38  ;;  %v6321_v11 = vadd.f32 %v10013_v63, %v6225_v35  ;;  %v6324_v55 = vadd.f32 %v6292_v4, %v6228_v46  ;;  %v6515_v63 = vadd.f32 %v6419_v62, %v5911_v47 }
 0x5f7   : > { %v6325_v24 = vadd.f32 %v6293_v8, %v6229_v29  ;;  %v6610_v41 = vadd.f32 %v6578_v17, %v6514_v10  ;;  %v6039_v27 = vadd.f32 %v6007_v54, %v5943_v19  ;;  %v10082_v43 = vpop.f32.mrb[20].mxu1  ;;  %v5642_v56 = vmul.f32 0.2, %v5610_v31 }
 0x5f8   : > { %v6416_v32 = vadd.f32 %v6320_v40, %v9976_v20  ;;  %v6417_v9 = vadd.f32 %v6321_v11, %v9989_v53  ;;  %v6420_v20 = vadd.f32 %v6324_v55, %v10019_v15  ;;  %v6611_v2 = vadd.f32 %v6515_v63, %v6007_v54 }
 0x5f9   : > { %v6421_v53 = vadd.f32 %v6325_v24, %v10049_v14  ;;  %6642 = vst.msk [vmem:[%s10071_s23 + $0x10] sm:$0xff] %vm2904_vm1, %v6610_v41  ;;  %v6038_v0 = vadd.f32 %v6578_v17, %v5942_v30  ;;  %v10097_v38 = vmul.f32 0.0625, %v10079_v50  ;;  %v5674_v46 = vmax.f32 %v5610_v31, %v5642_v56 }
 0x5fa   : > { %v6512_v45 = vadd.f32 %v6416_v32, %v9978_v21  ;;  %v6513_v7 = vadd.f32 %v6417_v9, %v9991_v59  ;;  %v5608_v21 = vadd.f32 %v9950_v25, %v9993_v39  ;;  %v10089_v59 = vpop.f32.mrb[21].mxu1  ;;  %v6516_v15 = vadd.f32 %v6420_v20, %v10022_v61  ;;  %6643 = vst.msk [vmem:[%s10071_s23 + $0x18] sm:$0xff] %vm2904_vm1, %v6611_v2 }
 0x5fb   : > { %v10094_v22 = vpop.f32.mrb[22].mxu1  ;;  %v6517_v35 = vadd.f32 %v6421_v53, %v10056_v36  ;;  %v6134_v30 = vadd.f32 %v10032_v57, %v6038_v0  ;;  %5706 = vst.msk [vmem:[#allocation2 + $0x91] sm:$0xff] %vm2904_vm1, %v5674_v46  ;;  %v5611_v60 = vadd.f32 %v9999_v58, %v9950_v25  ;;  %v5609_v40 = vadd.f32 %v9950_v25, %v10009_v34 }
 0x5fc   : > { %v6608_v47 = vadd.f32 %v10007_v13, %v6512_v45  ;;  %v6609_v42 = vadd.f32 %v6513_v7, %v9995_v12  ;;  %v5640_v39 = vmul.f32 0.2, %v5608_v21  ;;  %v10102_v33 = vpop.f32.mrb[23].mxu1  ;;  %v6103_v12 = vmul.f32 0.125, %v10034_v3  ;;  %5734 = vst.msk [vmem:[#allocation2 + $0x8f] sm:$0x2] %vm5728_vm3, %v5674_v46 }
 0x5fd   : > { %v6199_v13 = vmul.f32 0.25, %v10040_v23  ;;  %v6612_v61 = vadd.f32 %v10062_v44, %v6516_v15  ;;  %v6613_v10 = vadd.f32 %v6517_v35, %v10097_v38  ;;  %v6198_v23 = vmul.f32 0.25, %v10003_v51 }
 0x5fe   : > { %6640 = vst.msk [vmem:[%s10071_s23] sm:$0xff] %vm2904_vm1, %v6608_v47  ;;  %6641 = vst.msk [vmem:[%s10071_s23 + $0x8] sm:$0xff] %vm2904_vm1, %v6609_v42  ;;  %v5672_v18 = vmax.f32 %v5608_v21, %v5640_v39  ;;  %v6135_v3 = vadd.f32 %v6103_v12, %v6039_v27  ;;  %v5614_v57 = vadd.f32 %v10015_v16, %v9950_v25  ;;  %v5643_v58 = vmul.f32 0.2, %v5611_v60 }
 0x5ff   : > { %6644 = vst.msk [vmem:[%s10071_s23 + $0x20] sm:$0xff] %vm2904_vm1, %v6612_v61  ;;  %v5612_v11 = vadd.f32 %v9950_v25, %v10024_v6  ;;  %6645 = vst.msk [vmem:[%s10071_s23 + $0x28] sm:$0xff] %vm2904_vm1, %v6613_v10  ;;  %v5641_v19 = vmul.f32 0.2, %v5609_v40  ;;  %v5615_v34 = vadd.f32 %v10027_v26, %v9950_v25  ;;  %v5613_v51 = vadd.f32 %v9950_v25, %v10029_v37  ;;  %v10136_v8 = vpop.f32.mrb[24].mxu1 }
 0x600   : > { %5704 = vst.msk [vmem:[#allocation2 + $0x79] sm:$0xff] %vm2904_vm1, %v5672_v18  ;;  %v6230_v4 = vadd.f32 %v6198_v23, %v6134_v30  ;;  %v5646_v29 = vmul.f32 0.2, %v5614_v57  ;;  %v5618_v6 = vadd.f32 %v10045_v5, %v9950_v25  ;;  %v5675_v62 = vmax.f32 %v5611_v60, %v5643_v58  ;;  %v10138_v54 = vpop.f32.mrb[25].mxu1 }
 0x601   : > { %5733 = vst.msk [vmem:[#allocation2 + $0x77] sm:$0x2] %vm5728_vm3, %v5672_v18  ;;  %v5644_v16 = vmul.f32 0.2, %v5612_v11  ;;  %v5673_v17 = vmax.f32 %v5609_v40, %v5641_v19  ;;  %v5647_v32 = vmul.f32 0.2, %v5615_v34  ;;  %v5616_v37 = vadd.f32 %v9950_v25, %v10051_v28 }
 0x602   : > { %v5645_v9 = vmul.f32 0.2, %v5613_v51  ;;  %v5678_v55 = vmax.f32 %v5614_v57, %v5646_v29  ;;  %v5650_v26 = vmul.f32 0.2, %v5618_v6  ;;  %v10142_v63 = vpop.f32.mrb[26].mxu1  ;;  %5707 = vst.msk [vmem:[#allocation2 + $0x99] sm:$0xff] %vm2904_vm1, %v5675_v62  ;;  %v5619_v31 = vadd.f32 %v10058_v52, %v9950_v25 }
 0x603   : > { %v5676_v24 = vmax.f32 %v5612_v11, %v5644_v16  ;;  %5751 = vst.msk [vmem:[#allocation2 + $0x9b] sm:$0x40] %vm5745_vm4, %v5675_v62  ;;  %5750 = vst.msk [vmem:[#allocation2 + $0x83] sm:$0x40] %vm5745_vm4, %v5673_v17  ;;  %v5679_v5 = vmax.f32 %v5615_v34, %v5647_v32  ;;  %v5617_v45 = vadd.f32 %v9950_v25, %v10064_v48  ;;  %v10152_v7 = vpop.f32.mrb[27].mxu1  ;;  %v5788_v28 = vld [vmem:[#allocation2 + $0x90] sm:$0xff] }
 0x604   : > { %5705 = vst.msk [vmem:[#allocation2 + $0x81] sm:$0xff] %vm2904_vm1, %v5673_v17  ;;  %v5677_v41 = vmax.f32 %v5613_v51, %v5645_v9  ;;  %v5884_v27 = vld [vmem:[#allocation2 + $0x91] sm:$0xff]  ;;  %v6294_v20 = vmul.f32 0.125, %v10043_v49  ;;  %5710 = vst.msk [vmem:[#allocation2 + $0xc1] sm:$0xff] %vm2904_vm1, %v5678_v55  ;;  %v5682_v53 = vmax.f32 %v5618_v6, %v5650_v26  ;;  %v5648_v2 = vmul.f32 0.2, %v5616_v37 }
 0x605   : > { %5736 = vst.msk [vmem:[#allocation2 + $0xbf] sm:$0x2] %vm5728_vm3, %v5678_v55  ;;  %5735 = vst.msk [vmem:[#allocation2 + $0xa7] sm:$0x2] %vm5728_vm3, %v5676_v24  ;;  %v5622_v52 = vadd.f32 %v10082_v43, %v9950_v25  ;;  %v5945_v48 = vadd.f32 %v10056_v36, %v10049_v14  ;;  %v6231_v56 = vadd.f32 %v6199_v13, %v6135_v3  ;;  %v5651_v42 = vmul.f32 0.2, %v5619_v31 }
 0x606   : > { %5708 = vst.msk [vmem:[#allocation2 + $0xa9] sm:$0xff] %vm2904_vm1, %v5676_v24  ;;  %5711 = vst.msk [vmem:[#allocation2 + $0xc9] sm:$0xff] %vm2904_vm1, %v5679_v5  ;;  %v6326_v47 = vadd.f32 %v6294_v20, %v6230_v4  ;;  %v5680_v43 = vmax.f32 %v5616_v37, %v5648_v2  ;;  %v5649_v15 = vmul.f32 0.2, %v5617_v45  ;;  %v10169_v14 = vmul.f32 0.0625, %v5788_v28 }
 0x607   : > { %5753 = vst.msk [vmem:[#allocation2 + $0xcb] sm:$0x40] %vm5745_vm4, %v5679_v5  ;;  %5752 = vst.msk [vmem:[#allocation2 + $0xb3] sm:$0x40] %vm5745_vm4, %v5677_v41  ;;  %v5882_v21 = vld [vmem:[#allocation2 + $0x79] sm:$0xff]  ;;  %v10171_v36 = vmul.f32 0.125, %v5884_v27  ;;  %v6040_v0 = vadd.f32 %v10062_v44, %v10038_v1  ;;  %v5683_v39 = vmax.f32 %v5619_v31, %v5651_v42  ;;  %v10182_v60 = vadd.f32 %v9950_v25, %v10089_v59 }
 0x608   : > { %5709 = vst.msk [vmem:[#allocation2 + $0xb1] sm:$0xff] %vm2904_vm1, %v5677_v41  ;;  %v5786_v49 = vld [vmem:[#allocation2 + $0x78] sm:$0xff]  ;;  %5714 = vst.msk [vmem:[#allocation2 + $0xf1] sm:$0xff] %vm2904_vm1, %v5682_v53  ;;  %v5681_v12 = vmax.f32 %v5617_v45, %v5649_v15  ;;  %v5654_v13 = vmul.f32 0.2, %v5622_v52  ;;  %v10177_v61 = vpop.f32.mrb[28].mxu1  ;;  %v6041_v57 = vadd.f32 %v10097_v38, %v5945_v48  ;;  %v10203_v38 = vadd.f32 %v10094_v22, %v9950_v25 }
 0x609   : > { %5738 = vst.msk [vmem:[#allocation2 + $0xef] sm:$0x2] %vm5728_vm3, %v5682_v53  ;;  %v6104_v35 = vmul.f32 0.125, %v5786_v49  ;;  %v5818_v46 = vmul.f32 0.0625, %v5786_v49  ;;  %5737 = vst.msk [vmem:[#allocation2 + $0xd7] sm:$0x2] %vm5728_vm3, %v5680_v43  ;;  %v5948_v29 = vadd.f32 %v10171_v36, %v10169_v14 }
 0x60a   : > { %5712 = vst.msk [vmem:[#allocation2 + $0xd9] sm:$0xff] %vm2904_vm1, %v5680_v43  ;;  %v6295_v30 = vmul.f32 0.125, %v10079_v50  ;;  %v5914_v10 = vmul.f32 0.125, %v5882_v21  ;;  %v10184_v1 = vpop.f32.mrb[29].mxu1  ;;  %v6200_v44 = vmul.f32 0.25, %v5882_v21  ;;  %v5789_v3 = vld [vmem:[#allocation2 + $0x98] sm:$0xff]  ;;  %v5686_v50 = vmax.f32 %v5622_v52, %v5654_v13 }
 0x60b   : > { %v6136_v18 = vadd.f32 %v6104_v35, %v6040_v0  ;;  %v6422_v40 = vadd.f32 %v6326_v47, %v5818_v46  ;;  %5715 = vst.msk [vmem:[#allocation2 + $0xf9] sm:$0xff] %vm2904_vm1, %v5683_v39  ;;  %5713 = vst.msk [vmem:[#allocation2 + $0xe1] sm:$0xff] %vm2904_vm1, %v5681_v12  ;;  %v10190_v23 = vpop.f32.mrb[30].mxu1  ;;  %v6106_v59 = vmul.f32 0.125, %v5788_v28  ;;  %v5885_v11 = vld [vmem:[#allocation2 + $0x99] sm:$0xff]  ;;  %v5883_v19 = vld [vmem:[#allocation2 + $0x81] sm:$0xff]  ;;  %v10214_v13 = vadd.f32 %v9950_v25, %v10102_v33 }
 0x60c   : > { %5755 = vst.msk [vmem:[#allocation2 + $0xfb] sm:$0x40] %vm5745_vm4, %v5683_v39  ;;  %5754 = vst.msk [vmem:[#allocation2 + $0xe3] sm:$0x40] %vm5745_vm4, %v5681_v12  ;;  %v5787_v58 = vld [vmem:[#allocation2 + $0x80] sm:$0xff]  ;;  %v6327_v34 = vadd.f32 %v6295_v30, %v6231_v56  ;;  %v10193_v51 = vmul.f32 0.25, %v5884_v27  ;;  %v5946_v32 = vadd.f32 %v5914_v10, %v5818_v46 }
 0x60d   : > { %v10195_v4 = vpop.f32.mrb[31].mxu1  ;;  %v6232_v16 = vadd.f32 %v6200_v44, %v6136_v18  ;;  %v5819_v6 = vmul.f32 0.0625, %v5787_v58  ;;  %v5979_v62 = vld [vmem:[#allocation2 + $0x82] sm:$0xff]  ;;  %v6264_v17 = vld [vmem:[#allocation2 + $0x7a] sm:$0xff]  ;;  %5718 = vst.msk [vmem:[#allocation2 + $0x121] sm:$0xff] %vm2904_vm1, %v5686_v50  ;;  %v5915_v9 = vmul.f32 0.125, %v5883_v19  ;;  %v6518_v26 = vadd.f32 %v6422_v40, %v5914_v10 }
 0x60e   : > { %5740 = vst.msk [vmem:[#allocation2 + $0x11f] sm:$0x2] %vm5728_vm3, %v5686_v50  ;;  %v6105_v55 = vmul.f32 0.125, %v5787_v58  ;;  %v10206_v24 = vmul.f32 0.2, %v10182_v60  ;;  %v5821_v37 = vmul.f32 0.0625, %v5789_v3 }
 0x60f   : > { %v5917_v5 = vmul.f32 0.125, %v5885_v11  ;;  %v6552_v41 = vld [vmem:[#allocation2 + $0x92] sm:$0xff]  ;;  %v6296_v31 = vmul.f32 0.125, %v6264_v17  ;;  %v5947_v45 = vadd.f32 %v5915_v9, %v5819_v6  ;;  %v6011_v28 = vmul.f32 0.0625, %v5979_v62  ;;  %v5981_v53 = vld [vmem:[#allocation2 + $0x9a] sm:$0xff]  ;;  %v5790_v35 = vld [vmem:[#allocation2 + $0xa8] sm:$0xff] }
 0x610   : > { %v6137_v27 = vadd.f32 %v6105_v55, %v6041_v57  ;;  %v6201_v20 = vmul.f32 0.25, %v5883_v19  ;;  %v6423_v52 = vadd.f32 %v6327_v34, %v5819_v6  ;;  %v6582_v22 = vmul.f32 0.0625, %v6264_v17  ;;  %v5886_v44 = vld [vmem:[#allocation2 + $0xa9] sm:$0xff]  ;;  %v5792_v57 = vld [vmem:[#allocation2 + $0xc0] sm:$0xff] }
 0x611   : > { %v6328_v2 = vadd.f32 %v6296_v31, %v6232_v16  ;;  %v10209_v48 = vmul.f32 0.2, %v10203_v38  ;;  %v6584_v56 = vmul.f32 0.0625, %v6552_v41  ;;  %v6043_v49 = vadd.f32 %v6011_v28, %v5947_v45  ;;  %v10221_v33 = vld [vmem:[#allocation2 + $0xc1] sm:$0xff]  ;;  %v5983_v45 = vld [vmem:[#allocation2 + $0xb2] sm:$0xff] }
 0x612   : > { %v6233_v21 = vadd.f32 %v6201_v20, %v6137_v27  ;;  %v6297_v47 = vmul.f32 0.125, %v5979_v62  ;;  %v5949_v43 = vadd.f32 %v5917_v5, %v5821_v37  ;;  %v6519_v15 = vadd.f32 %v6423_v52, %v5915_v9  ;;  %v5793_v31 = vld [vmem:[#allocation2 + $0xc8] sm:$0xff] }
 0x613   : > { %v6424_v42 = vadd.f32 %v6328_v2, %v10169_v14  ;;  %v6614_v0 = vadd.f32 %v6582_v22, %v6518_v26  ;;  %v6013_v46 = vmul.f32 0.0625, %v5981_v53  ;;  %v6107_v39 = vmul.f32 0.125, %v5789_v3  ;;  %v5889_v52 = vld [vmem:[#allocation2 + $0xc9] sm:$0xff] }
 0x614   : > { %v6329_v12 = vadd.f32 %v6297_v47, %v6233_v21  ;;  %v6299_v30 = vmul.f32 0.125, %v5981_v53  ;;  %v6615_v18 = vadd.f32 %v6519_v15, %v6011_v28  ;;  %v6042_v40 = vadd.f32 %v6582_v22, %v5946_v32  ;;  %v5887_v32 = vld [vmem:[#allocation2 + $0xb1] sm:$0xff] }
 0x615   : > { %v6520_v10 = vadd.f32 %v6424_v42, %v10171_v36  ;;  %6646 = vst.msk [vmem:[%s10071_s23 + $0x30] sm:$0xff] %vm2904_vm1, %v6614_v0  ;;  %v6139_v14 = vadd.f32 %v6107_v39, %v6043_v49  ;;  %v6044_v58 = vadd.f32 %v6584_v56, %v5948_v29  ;;  %v6108_v3 = vmul.f32 0.125, %v5790_v35  ;;  %v5791_v36 = vld [vmem:[#allocation2 + $0xb0] sm:$0xff] }
 0x616   : > { %v6425_v50 = vadd.f32 %v6329_v12, %v5821_v37  ;;  %v6045_v19 = vadd.f32 %v6013_v46, %v5949_v43  ;;  %v6203_v34 = vmul.f32 0.25, %v5885_v11  ;;  %6647 = vst.msk [vmem:[%s10071_s23 + $0x38] sm:$0xff] %vm2904_vm1, %v6615_v18  ;;  %v6138_v6 = vadd.f32 %v6106_v59, %v6042_v40  ;;  %v6556_v43 = vld [vmem:[#allocation2 + $0xc2] sm:$0xff]  ;;  %v5985_v18 = vld [vmem:[#allocation2 + $0xca] sm:$0xff] }
 0x617   : > { %v6616_v16 = vadd.f32 %v6584_v56, %v6520_v10  ;;  %v5822_v17 = vmul.f32 0.0625, %v5790_v35  ;;  %v5918_v9 = vmul.f32 0.125, %v5886_v44  ;;  %v6140_v55 = vadd.f32 %v6108_v3, %v6044_v58 }
 0x618   : > { %v6521_v62 = vadd.f32 %v6425_v50, %v5917_v5  ;;  %v5824_v26 = vmul.f32 0.0625, %v5792_v57  ;;  %v6204_v29 = vmul.f32 0.25, %v5886_v44  ;;  %v6234_v37 = vadd.f32 %v10193_v51, %v6138_v6  ;;  %v6268_v5 = vld [vmem:[#allocation2 + $0xaa] sm:$0xff] }
 0x619   : > { %6648 = vst.msk [vmem:[%s10071_s23 + $0x40] sm:$0xff] %vm2904_vm1, %v6616_v16  ;;  %v6298_v11 = vmul.f32 0.125, %v6552_v41  ;;  %v6235_v28 = vadd.f32 %v6203_v34, %v6139_v14  ;;  %v5920_v59 = vmul.f32 0.125, %v10221_v33  ;;  %v5823_v20 = vmul.f32 0.0625, %v5791_v36 }
 0x61a   : > { %v6617_v27 = vadd.f32 %v6521_v62, %v6013_v46  ;;  %v6236_v53 = vadd.f32 %v6204_v29, %v6140_v55  ;;  %v5919_v22 = vmul.f32 0.125, %v5887_v32  ;;  %v6109_v56 = vmul.f32 0.125, %v5791_v36  ;;  %v5794_v62 = vld [vmem:[#allocation2 + $0xd8] sm:$0xff] }
 0x61b   : > { %v6330_v2 = vadd.f32 %v6298_v11, %v6234_v37  ;;  %v5950_v49 = vadd.f32 %v5918_v9, %v5822_v17  ;;  %v5825_v21 = vmul.f32 0.0625, %v5793_v31  ;;  %v6015_v47 = vmul.f32 0.0625, %v5983_v45 }
 0x61c   : > { %6649 = vst.msk [vmem:[%s10071_s23 + $0x48] sm:$0xff] %vm2904_vm1, %v6617_v27  ;;  %v6205_v51 = vmul.f32 0.25, %v5887_v32  ;;  %v5951_v42 = vadd.f32 %v5919_v22, %v5823_v20  ;;  %v6141_v15 = vadd.f32 %v6109_v56, %v6045_v19  ;;  %v6300_v0 = vmul.f32 0.125, %v6268_v5 }
 0x61d   : > { %v6426_v41 = vadd.f32 %v6330_v2, %v5822_v17  ;;  %v5921_v35 = vmul.f32 0.125, %v5889_v52  ;;  %v6301_v46 = vmul.f32 0.125, %v5983_v45  ;;  %v6331_v39 = vadd.f32 %v6299_v30, %v6235_v28  ;;  %v5890_v45 = vld [vmem:[#allocation2 + $0xd9] sm:$0xff] }
 0x61e   : > { %v6586_v12 = vmul.f32 0.0625, %v6268_v5  ;;  %v6047_v44 = vadd.f32 %v6015_v47, %v5951_v42  ;;  %v6237_v40 = vadd.f32 %v6205_v51, %v6141_v15  ;;  %v6332_v14 = vadd.f32 %v6300_v0, %v6236_v53  ;;  %v5795_v53 = vld [vmem:[#allocation2 + $0xe0] sm:$0xff]  ;;  %v5797_v15 = vld [vmem:[#allocation2 + $0xf8] sm:$0xff] }
 0x61f   : > { %v6522_v10 = vadd.f32 %v6426_v41, %v5918_v9  ;;  %v5952_v50 = vadd.f32 %v5920_v59, %v5824_v26  ;;  %v6588_v58 = vmul.f32 0.0625, %v6556_v43  ;;  %v6427_v3 = vadd.f32 %v6331_v39, %v5823_v20 }
 0x620   : > { %v10231_v34 = vadd.f32 %v10136_v8, %v9950_v25  ;;  %v6111_v16 = vmul.f32 0.125, %v5793_v31  ;;  %v6333_v19 = vadd.f32 %v6301_v46, %v6237_v40  ;;  %v6428_v6 = vadd.f32 %v6332_v14, %v5824_v26 }
 0x621   : > { %v6618_v36 = vadd.f32 %v6586_v12, %v6522_v10  ;;  %v6110_v30 = vmul.f32 0.125, %v5792_v57  ;;  %v6017_v17 = vmul.f32 0.0625, %v5985_v18  ;;  %v6523_v9 = vadd.f32 %v6427_v3, %v5919_v22  ;;  %v5796_v57 = vld [vmem:[#allocation2 + $0xf0] sm:$0xff]  ;;  %v5893_v10 = vld [vmem:[#allocation2 + $0xf9] sm:$0xff] }
 0x622   : > { %v6046_v55 = vadd.f32 %v6586_v12, %v5950_v49  ;;  %v5953_v32 = vadd.f32 %v5921_v35, %v5825_v21  ;;  %v6143_v29 = vadd.f32 %v6111_v16, %v6047_v44  ;;  %v6429_v37 = vadd.f32 %v6333_v19, %v5825_v21  ;;  %v5891_v49 = vld [vmem:[#allocation2 + $0xe1] sm:$0xff] }
 0x623   : > { %v6524_v11 = vadd.f32 %v6428_v6, %v5920_v59  ;;  %6650 = vst.msk [vmem:[%s10071_s23 + $0x50] sm:$0xff] %vm2904_vm1, %v6618_v36  ;;  %v6619_v28 = vadd.f32 %v6523_v9, %v6015_v47  ;;  %v6048_v25 = vadd.f32 %v6588_v58, %v5952_v50  ;;  %v6112_v8 = vmul.f32 0.125, %v5794_v62  ;;  %v5892_v47 = vld [vmem:[#allocation2 + $0xf1] sm:$0xff]  ;;  %v5987_v44 = vld [vmem:[#allocation2 + $0xe2] sm:$0xff] }
 0x624   : > { %v6142_v31 = vadd.f32 %v6110_v30, %v6046_v55  ;;  %v6303_v26 = vmul.f32 0.125, %v5985_v18  ;;  %v6525_v27 = vadd.f32 %v6429_v37, %v5921_v35  ;;  %v6206_v5 = vmul.f32 0.25, %v10221_v33  ;;  %v10242_v55 = vld [vmem:[#allocation2 + $0xfa] sm:$0xff] }
 0x625   : > { %v6620_v20 = vadd.f32 %v6588_v58, %v6524_v11  ;;  %v6207_v2 = vmul.f32 0.25, %v5889_v52  ;;  %6651 = vst.msk [vmem:[%s10071_s23 + $0x58] sm:$0xff] %vm2904_vm1, %v6619_v28  ;;  %v5826_v22 = vmul.f32 0.0625, %v5794_v62  ;;  %v5922_v59 = vmul.f32 0.125, %v5890_v45  ;;  %v6272_v52 = vld [vmem:[#allocation2 + $0xda] sm:$0xff]  ;;  %v6560_v28 = vld [vmem:[#allocation2 + $0xf2] sm:$0xff] }
 0x626   : > { %v6144_v56 = vadd.f32 %v6112_v8, %v6048_v25  ;;  %v6621_v21 = vadd.f32 %v6525_v27, %v6017_v17  ;;  %v6208_v51 = vmul.f32 0.25, %v5890_v45  ;;  %v6238_v41 = vadd.f32 %v6206_v5, %v6142_v31 }
 0x627   : > { %6652 = vst.msk [vmem:[%s10071_s23 + $0x60] sm:$0xff] %vm2904_vm1, %v6620_v20  ;;  %v6302_v42 = vmul.f32 0.125, %v6556_v43  ;;  %v6049_v0 = vadd.f32 %v6017_v17, %v5953_v32  ;;  %v6239_v35 = vadd.f32 %v6207_v2, %v6143_v29  ;;  %v5828_v33 = vmul.f32 0.0625, %v5796_v57 }
 0x628   : > { %v5827_v46 = vmul.f32 0.0625, %v5795_v53  ;;  %6653 = vst.msk [vmem:[%s10071_s23 + $0x68] sm:$0xff] %vm2904_vm1, %v6621_v21  ;;  %v6240_v39 = vadd.f32 %v6208_v51, %v6144_v56  ;;  %v5923_v18 = vmul.f32 0.125, %v5891_v49  ;;  %v6113_v40 = vmul.f32 0.125, %v5795_v53 }
 0x629   : > { %v6334_v12 = vadd.f32 %v6302_v42, %v6238_v41  ;;  %v5924_v14 = vmul.f32 0.125, %v5892_v47  ;;  %v5954_v50 = vadd.f32 %v5922_v59, %v5826_v22  ;;  %v5829_v58 = vmul.f32 0.0625, %v5797_v15 }
 0x62a   : > { %v6209_v3 = vmul.f32 0.25, %v5891_v49  ;;  %v5955_v43 = vadd.f32 %v5923_v18, %v5827_v46  ;;  %v6145_v19 = vadd.f32 %v6113_v40, %v6049_v0  ;;  %v6304_v6 = vmul.f32 0.125, %v6272_v52 }
 0x62b   : > { %v6430_v16 = vadd.f32 %v6334_v12, %v5826_v22  ;;  %v5925_v36 = vmul.f32 0.125, %v5893_v10  ;;  %v6019_v62 = vmul.f32 0.0625, %v5987_v44  ;;  %v6335_v30 = vadd.f32 %v6303_v26, %v6239_v35 }
 0x62c   : > { %v6590_v17 = vmul.f32 0.0625, %v6272_v52  ;;  %v6241_v32 = vadd.f32 %v6209_v3, %v6145_v19  ;;  %v6305_v29 = vmul.f32 0.125, %v5987_v44  ;;  %v6336_v37 = vadd.f32 %v6304_v6, %v6240_v39 }
 0x62d   : > { %v6526_v9 = vadd.f32 %v6430_v16, %v5922_v59  ;;  %v5956_v11 = vadd.f32 %v5924_v14, %v5828_v33  ;;  %v6114_v45 = vmul.f32 0.125, %v5796_v57  ;;  %v6431_v25 = vadd.f32 %v6335_v30, %v5827_v46 }
 0x62e   : > { %v5684_v8 = vmax.f32 %v10182_v60, %v10206_v24  ;;  %v6051_v31 = vadd.f32 %v6019_v62, %v5955_v43  ;;  %v6337_v27 = vadd.f32 %v6305_v29, %v6241_v32  ;;  %v6432_v20 = vadd.f32 %v6336_v37, %v5828_v33 }
 0x62f   : > { %v6622_v5 = vadd.f32 %v6590_v17, %v6526_v9  ;;  %v10246_v26 = vadd.f32 %v5925_v36, %v5829_v58  ;;  %v10249_v53 = vmul.f32 0.0625, %v10242_v55  ;;  %v6527_v2 = vadd.f32 %v6431_v25, %v5923_v18  ;;  %v5896_v9 = vld [vmem:[#allocation2 + $0x121] sm:$0xff] }
 0x630   : > { %5716 = vst.msk [vmem:[#allocation2 + $0x109] sm:$0xff] %vm2904_vm1, %v5684_v8  ;;  %v6050_v57 = vadd.f32 %v6590_v17, %v5954_v50  ;;  %v6592_v22 = vmul.f32 0.0625, %v6560_v28  ;;  %v6115_v59 = vmul.f32 0.125, %v5797_v15  ;;  %v6433_v56 = vadd.f32 %v6337_v27, %v5829_v58 }
 0x631   : > { %5739 = vst.msk [vmem:[#allocation2 + $0x107] sm:$0x2] %vm5728_vm3, %v5684_v8  ;;  %v6528_v60 = vadd.f32 %v6432_v20, %v5924_v14  ;;  %v6623_v24 = vadd.f32 %v6527_v2, %v6019_v62  ;;  %v6210_v21 = vmul.f32 0.25, %v5892_v47  ;;  %v5687_v51 = vmax.f32 %v10203_v38, %v10209_v48  ;;  %v10266_v38 = vld [vmem:[%s10357_s4] ss:$0 sm:$0xff] }
 0x632   : > { %6654 = vst.msk [vmem:[%s10071_s23 + $0x70] sm:$0xff] %vm2904_vm1, %v6622_v5  ;;  %v6146_v49 = vadd.f32 %v6114_v45, %v6050_v57  ;;  %v6147_v41 = vadd.f32 %v6115_v59, %v6051_v31  ;;  %v6529_v42 = vadd.f32 %v6433_v56, %v5925_v36  ;;  %v5653_v35 = vmul.f32 0.2, %v10214_v13  ;;  %v5800_v36 = vld [vmem:[#allocation2 + $0x120] sm:$0xff] }
 0x633   : > { %v6624_v0 = vadd.f32 %v6592_v22, %v6528_v60  ;;  %6655 = vst.msk [vmem:[%s10071_s23 + $0x78] sm:$0xff] %vm2904_vm1, %v6623_v24  ;;  %v6306_v15 = vmul.f32 0.125, %v6560_v28  ;;  %5719 = vst.msk [vmem:[#allocation2 + $0x129] sm:$0xff] %vm2904_vm1, %v5687_v51  ;;  %v5658_v46 = vmul.f32 0.2, %v10231_v34  ;;  %v5624_v48 = vadd.f32 %v10266_v38, %v10138_v54 }
 0x634   : > { %v6242_v33 = vadd.f32 %v6210_v21, %v6146_v49  ;;  %5757 = vst.msk [vmem:[#allocation2 + $0x12b] sm:$0x40] %vm5745_vm4, %v5687_v51  ;;  %v6625_v47 = vadd.f32 %v6529_v42, %v10249_v53  ;;  %v5685_v52 = vmax.f32 %v10214_v13, %v5653_v35  ;;  %v5627_v39 = vadd.f32 %v10266_v38, %v10142_v63 }
 0x635   : > { %6656 = vst.msk [vmem:[%s10071_s23 + $0x80] sm:$0xff] %vm2904_vm1, %v6624_v0  ;;  %v5625_v12 = vadd.f32 %v10266_v38, %v10152_v7  ;;  %v6211_v18 = vmul.f32 0.25, %v5893_v10  ;;  %v5690_v44 = vmax.f32 %v10231_v34, %v5658_v46  ;;  %v5656_v40 = vmul.f32 0.2, %v5624_v48 }
 0x636   : > { %v5630_v14 = vadd.f32 %v10266_v38, %v10177_v61  ;;  %6657 = vst.msk [vmem:[%s10071_s23 + $0x88] sm:$0xff] %vm2904_vm1, %v6625_v47  ;;  %v6338_v50 = vadd.f32 %v6306_v15, %v6242_v33  ;;  %5717 = vst.msk [vmem:[#allocation2 + $0x111] sm:$0xff] %vm2904_vm1, %v5685_v52  ;;  %v5659_v13 = vmul.f32 0.2, %v5627_v39  ;;  %v5628_v7 = vadd.f32 %v10266_v38, %v10184_v1 }
 0x637   : > { %5756 = vst.msk [vmem:[#allocation2 + $0x113] sm:$0x40] %vm5745_vm4, %v5685_v52  ;;  %v5657_v63 = vmul.f32 0.2, %v5625_v12  ;;  %v6243_v10 = vadd.f32 %v6211_v18, %v6147_v41  ;;  %v6052_v34 = vadd.f32 %v6592_v22, %v5956_v11  ;;  %v5894_v61 = vld [vmem:[#allocation2 + $0x109] sm:$0xff]  ;;  %v5688_v16 = vmax.f32 %v5624_v48, %v5656_v40 }
 0x638   : > { %v5798_v54 = vld [vmem:[#allocation2 + $0x108] sm:$0xff]  ;;  %5722 = vst.msk [vmem:[#allocation2 + $0x151] sm:$0xff] %vm2904_vm1, %v5690_v44  ;;  %v5691_v43 = vmax.f32 %v5627_v39, %v5659_v13  ;;  %v5662_v6 = vmul.f32 0.2, %v5630_v14  ;;  %v5660_v30 = vmul.f32 0.2, %v5628_v7 }
 0x639   : > { %v5830_v58 = vmul.f32 0.0625, %v5798_v54  ;;  %v6116_v3 = vmul.f32 0.125, %v5798_v54  ;;  %5742 = vst.msk [vmem:[#allocation2 + $0x14f] sm:$0x2] %vm5728_vm3, %v5690_v44  ;;  %v5689_v19 = vmax.f32 %v5625_v12, %v5657_v63  ;;  %v6307_v17 = vmul.f32 0.125, %v10242_v55 }
 0x63a   : > { %5720 = vst.msk [vmem:[#allocation2 + $0x139] sm:$0xff] %vm2904_vm1, %v5688_v16  ;;  %5723 = vst.msk [vmem:[#allocation2 + $0x159] sm:$0xff] %vm2904_vm1, %v5691_v43  ;;  %v5694_v32 = vmax.f32 %v5630_v14, %v5662_v6  ;;  %v5926_v29 = vmul.f32 0.125, %v5894_v61  ;;  %v6212_v37 = vmul.f32 0.25, %v5894_v61  ;;  %v6053_v55 = vadd.f32 %v10249_v53, %v10246_v26  ;;  %v6564_v57 = vld [vmem:[#allocation2 + $0x122] sm:$0xff] }
 0x63b   : > { %v6148_v62 = vadd.f32 %v6116_v3, %v6052_v34  ;;  %v6434_v1 = vadd.f32 %v6338_v50, %v5830_v58  ;;  %5741 = vst.msk [vmem:[#allocation2 + $0x137] sm:$0x2] %vm5728_vm3, %v5688_v16  ;;  %v5832_v11 = vmul.f32 0.0625, %v5800_v36  ;;  %v6339_v45 = vadd.f32 %v6307_v17, %v6243_v10  ;;  %v5801_v21 = vld [vmem:[#allocation2 + $0x128] sm:$0xff] }
 0x63c   : > { %5759 = vst.msk [vmem:[#allocation2 + $0x15b] sm:$0x40] %vm5745_vm4, %v5691_v43  ;;  %5758 = vst.msk [vmem:[#allocation2 + $0x143] sm:$0x40] %vm5745_vm4, %v5689_v19  ;;  %v5928_v28 = vmul.f32 0.125, %v5896_v9  ;;  %v6118_v25 = vmul.f32 0.125, %v5800_v36  ;;  %v5692_v5 = vmax.f32 %v5628_v7, %v5660_v30  ;;  %v5958_v26 = vadd.f32 %v5926_v29, %v5830_v58 }
 0x63d   : > { %5721 = vst.msk [vmem:[#allocation2 + $0x141] sm:$0xff] %vm2904_vm1, %v5689_v19  ;;  %5726 = vst.msk [vmem:[#allocation2 + $0x181] sm:$0xff] %vm2904_vm1, %v5694_v32  ;;  %v6244_v8 = vadd.f32 %v6212_v37, %v6148_v62  ;;  %v5799_v31 = vld [vmem:[#allocation2 + $0x110] sm:$0xff]  ;;  %v6530_v2 = vadd.f32 %v6434_v1, %v5926_v29  ;;  %v6596_v15 = vmul.f32 0.0625, %v6564_v57  ;;  %v5833_v44 = vmul.f32 0.0625, %v5801_v21 }
 0x63e   : > { %5744 = vst.msk [vmem:[#allocation2 + $0x17f] sm:$0x2] %vm5728_vm3, %v5694_v32  ;;  %v5895_v27 = vld [vmem:[#allocation2 + $0x111] sm:$0xff]  ;;  %v5831_v22 = vmul.f32 0.0625, %v5799_v31  ;;  %v6117_v56 = vmul.f32 0.125, %v5799_v31  ;;  %v5897_v51 = vld [vmem:[#allocation2 + $0x129] sm:$0xff]  ;;  %v5960_v33 = vadd.f32 %v5928_v28, %v5832_v11  ;;  %v10310_v62 = vadd.f32 %v10266_v38, %v10190_v23 }
 0x63f   : > { %v5991_v20 = vld [vmem:[#allocation2 + $0x112] sm:$0xff]  ;;  %v5927_v59 = vmul.f32 0.125, %v5895_v27  ;;  %v6276_v60 = vld [vmem:[#allocation2 + $0x10a] sm:$0xff]  ;;  %v6213_v24 = vmul.f32 0.25, %v5895_v27  ;;  %5724 = vst.msk [vmem:[#allocation2 + $0x169] sm:$0xff] %vm2904_vm1, %v5692_v5  ;;  %v5929_v40 = vmul.f32 0.125, %v5897_v51 }
 0x640   : > { %v6023_v53 = vmul.f32 0.0625, %v5991_v20  ;;  %v6308_v49 = vmul.f32 0.125, %v6276_v60  ;;  %5743 = vst.msk [vmem:[#allocation2 + $0x167] sm:$0x2] %vm5728_vm3, %v5692_v5  ;;  %v6149_v42 = vadd.f32 %v6117_v56, %v6053_v55  ;;  %v6435_v0 = vadd.f32 %v6339_v45, %v5831_v22  ;;  %v5993_v14 = vld [vmem:[#allocation2 + $0x12a] sm:$0xff] }
 0x641   : > { %v5959_v41 = vadd.f32 %v5927_v59, %v5831_v22  ;;  %v6594_v35 = vmul.f32 0.0625, %v6276_v60  ;;  %v6309_v46 = vmul.f32 0.125, %v5991_v20  ;;  %v6119_v54 = vmul.f32 0.125, %v5801_v21  ;;  %v5898_v3 = vld [vmem:[#allocation2 + $0x139] sm:$0xff]  ;;  %v5804_v31 = vld [vmem:[#allocation2 + $0x150] sm:$0xff] }
 0x642   : > { %v6340_v48 = vadd.f32 %v6308_v49, %v6244_v8  ;;  %v6245_v52 = vadd.f32 %v6213_v24, %v6149_v42  ;;  %v6531_v39 = vadd.f32 %v6435_v0, %v5927_v59  ;;  %v5802_v18 = vld [vmem:[#allocation2 + $0x138] sm:$0xff]  ;;  %v6214_v10 = vmul.f32 0.25, %v5896_v9 }
 0x643   : > { %v6055_v47 = vadd.f32 %v6023_v53, %v5959_v41  ;;  %v6626_v12 = vadd.f32 %v6594_v35, %v6530_v2  ;;  %v6054_v7 = vadd.f32 %v6594_v35, %v5958_v26  ;;  %v6056_v61 = vadd.f32 %v6596_v15, %v5960_v33  ;;  %v5900_v21 = vld [vmem:[#allocation2 + $0x151] sm:$0xff] }
 0x644   : > { %v6436_v50 = vadd.f32 %v6340_v48, %v5832_v11  ;;  %v6341_v13 = vadd.f32 %v6309_v46, %v6245_v52  ;;  %v6627_v63 = vadd.f32 %v6531_v39, %v6023_v53  ;;  %v6120_v16 = vmul.f32 0.125, %v5802_v18  ;;  %v5803_v11 = vld [vmem:[#allocation2 + $0x140] sm:$0xff]  ;;  %v5805_v33 = vld [vmem:[#allocation2 + $0x158] sm:$0xff] }
 0x645   : > { %6658 = vst.msk [vmem:[%s10071_s23 + $0x90] sm:$0xff] %vm2904_vm1, %v6626_v12  ;;  %v6151_v58 = vadd.f32 %v6119_v54, %v6055_v47  ;;  %v6025_v43 = vmul.f32 0.0625, %v5993_v14  ;;  %v6150_v6 = vadd.f32 %v6118_v25, %v6054_v7  ;;  %v5961_v30 = vadd.f32 %v5929_v40, %v5833_v44  ;;  %v5899_v25 = vld [vmem:[#allocation2 + $0x141] sm:$0xff]  ;;  %v6568_v48 = vld [vmem:[#allocation2 + $0x152] sm:$0xff] }
 0x646   : > { %v6532_v34 = vadd.f32 %v6436_v50, %v5928_v28  ;;  %v6437_v19 = vadd.f32 %v6341_v13, %v5833_v44  ;;  %6659 = vst.msk [vmem:[%s10071_s23 + $0x98] sm:$0xff] %vm2904_vm1, %v6627_v63  ;;  %v6215_v17 = vmul.f32 0.25, %v5897_v51  ;;  %v6152_v1 = vadd.f32 %v6120_v16, %v6056_v61  ;;  %v6280_v23 = vld [vmem:[#allocation2 + $0x13a] sm:$0xff]  ;;  %v5995_v53 = vld [vmem:[#allocation2 + $0x142] sm:$0xff] }
 0x647   : > { %v10306_v36 = vld [vmem:[#allocation2 + $0x168] sm:$0xff]  ;;  %v6216_v29 = vmul.f32 0.25, %v5898_v3  ;;  %v6246_v37 = vadd.f32 %v6214_v10, %v6150_v6  ;;  %v6310_v55 = vmul.f32 0.125, %v6564_v57  ;;  %v5834_v28 = vmul.f32 0.0625, %v5802_v18  ;;  %v5901_v44 = vld [vmem:[#allocation2 + $0x159] sm:$0xff] }
 0x648   : > { %v6628_v9 = vadd.f32 %v6596_v15, %v6532_v34  ;;  %5773 = vst.msk [vmem:[#allocation2 + $0x198] sm:$0xff] %vm2904_vm1, %v10306_v36  ;;  %v6533_v32 = vadd.f32 %v6437_v19, %v5929_v40  ;;  %v6247_v45 = vadd.f32 %v6215_v17, %v6151_v58  ;;  %v5930_v27 = vmul.f32 0.125, %v5898_v3  ;;  %v5997_v58 = vld [vmem:[#allocation2 + $0x15a] sm:$0xff] }
 0x649   : > { %v6248_v20 = vadd.f32 %v6216_v29, %v6152_v1  ;;  %v6342_v5 = vadd.f32 %v6310_v55, %v6246_v37  ;;  %v6057_v2 = vadd.f32 %v6025_v43, %v5961_v30  ;;  %v6311_v22 = vmul.f32 0.125, %v5993_v14 }
 0x64a   : > { %6660 = vst.msk [vmem:[%s10071_s23 + $0xa0] sm:$0xff] %vm2904_vm1, %v6628_v9  ;;  %v6629_v8 = vadd.f32 %v6533_v32, %v6025_v43  ;;  %v6121_v59 = vmul.f32 0.125, %v5803_v11  ;;  %v5663_v56 = vmul.f32 0.2, %v10310_v62  ;;  %v5835_v60 = vmul.f32 0.0625, %v5803_v11 }
 0x64b   : > { %v6438_v57 = vadd.f32 %v6342_v5, %v5834_v28  ;;  %v5931_v26 = vmul.f32 0.125, %v5899_v25  ;;  %v6312_v24 = vmul.f32 0.125, %v6280_v23  ;;  %v5836_v49 = vmul.f32 0.0625, %v5804_v31 }
 0x64c   : > { %6661 = vst.msk [vmem:[%s10071_s23 + $0xa8] sm:$0xff] %vm2904_vm1, %v6629_v8  ;;  %v6153_v51 = vadd.f32 %v6121_v59, %v6057_v2  ;;  %v6217_v41 = vmul.f32 0.25, %v5899_v25  ;;  %v6343_v42 = vadd.f32 %v6311_v22, %v6247_v45  ;;  %v5962_v0 = vadd.f32 %v5930_v27, %v5834_v28  ;;  %v6094_v2 = vld [vmem:[#allocation2 + $0x180] sm:$0xff] }
 0x64d   : > { %v6534_v35 = vadd.f32 %v6438_v57, %v5930_v27  ;;  %v6344_v15 = vadd.f32 %v6312_v24, %v6248_v20  ;;  %v6598_v46 = vmul.f32 0.0625, %v6280_v23  ;;  %v6313_v52 = vmul.f32 0.125, %v5995_v53  ;;  %v5902_v27 = vld [vmem:[#allocation2 + $0x169] sm:$0xff] }
 0x64e   : > { %v6249_v47 = vadd.f32 %v6217_v41, %v6153_v51  ;;  %v6439_v39 = vadd.f32 %v6343_v42, %v5835_v60  ;;  %v5629_v12 = vadd.f32 %v10266_v38, %v10195_v4  ;;  %v5932_v18 = vmul.f32 0.125, %v5900_v21 }
 0x64f   : > { %v5963_v40 = vadd.f32 %v5931_v26, %v5835_v60  ;;  %v6440_v14 = vadd.f32 %v6344_v15, %v5836_v49  ;;  %v6630_v54 = vadd.f32 %v6598_v46, %v6534_v35  ;;  %v5837_v50 = vmul.f32 0.0625, %v5805_v33 }
 0x650   : > { %v6027_v13 = vmul.f32 0.0625, %v5995_v53  ;;  %v6345_v63 = vadd.f32 %v6313_v52, %v6249_v47  ;;  %v6535_v7 = vadd.f32 %v6439_v39, %v5931_v26  ;;  %v6122_v10 = vmul.f32 0.125, %v5804_v31  ;;  %v6190_v26 = vld [vmem:[#allocation2 + $0x181] sm:$0xff] }
 0x651   : > { %v6600_v34 = vmul.f32 0.0625, %v6568_v48  ;;  %v6536_v3 = vadd.f32 %v6440_v14, %v5932_v18  ;;  %6662 = vst.msk [vmem:[%s10071_s23 + $0xb0] sm:$0xff] %vm2904_vm1, %v6630_v54  ;;  %v6058_v61 = vadd.f32 %v6598_v46, %v5962_v0  ;;  %v5933_v16 = vmul.f32 0.125, %v5901_v44 }
 0x652   : > { %v6441_v4 = vadd.f32 %v6345_v63, %v5837_v50  ;;  %v6631_v38 = vadd.f32 %v6535_v7, %v6027_v13  ;;  %v6059_v43 = vadd.f32 %v6027_v13, %v5963_v40  ;;  %v6218_v30 = vmul.f32 0.25, %v5900_v21 }
 0x653   : > { %v6632_v19 = vadd.f32 %v6600_v34, %v6536_v3  ;;  %v6154_v6 = vadd.f32 %v6122_v10, %v6058_v61  ;;  %v6029_v17 = vmul.f32 0.0625, %v5997_v58  ;;  %v6123_v1 = vmul.f32 0.125, %v5805_v33 }
 0x654   : > { %v6537_v9 = vadd.f32 %v6441_v4, %v5933_v16  ;;  %6663 = vst.msk [vmem:[%s10071_s23 + $0xb8] sm:$0xff] %vm2904_vm1, %v6631_v38  ;;  %v5695_v29 = vmax.f32 %v10310_v62, %v5663_v56  ;;  %v5661_v37 = vmul.f32 0.2, %v5629_v12  ;;  %v5964_v55 = vadd.f32 %v5932_v18, %v5836_v49 }
 0x655   : > { %6664 = vst.msk [vmem:[%s10071_s23 + $0xc0] sm:$0xff] %vm2904_vm1, %v6632_v19  ;;  %v6250_v32 = vadd.f32 %v6218_v30, %v6154_v6  ;;  %v6314_v45 = vmul.f32 0.125, %v6568_v48  ;;  %v6155_v28 = vadd.f32 %v6123_v1, %v6059_v43  ;;  %v6124_v23 = vmul.f32 0.125, %v10306_v36 }
 0x656   : > { %v6633_v11 = vadd.f32 %v6537_v9, %v6029_v17  ;;  %5727 = vst.msk [vmem:[#allocation2 + $0x189] sm:$0xff] %vm2904_vm1, %v5695_v29  ;;  %v5693_v25 = vmax.f32 %v5629_v12, %v5661_v37  ;;  %v6219_v31 = vmul.f32 0.25, %v5901_v44  ;;  %v5838_v62 = vmul.f32 0.0625, %v10306_v36  ;;  %v6382_v9 = vld [vmem:[#allocation2 + $0x198] sm:$0xff] }
 0x657   : > { %5761 = vst.msk [vmem:[#allocation2 + $0x18b] sm:$0x40] %vm5745_vm4, %v5695_v29  ;;  %v6346_v8 = vadd.f32 %v6314_v45, %v6250_v32  ;;  %v6060_v20 = vadd.f32 %v6600_v34, %v5964_v55  ;;  %v5934_v22 = vmul.f32 0.125, %v5902_v27  ;;  %v5965_v57 = vadd.f32 %v5933_v16, %v5837_v50 }
 0x658   : > { %6665 = vst.msk [vmem:[%s10071_s23 + $0xc8] sm:$0xff] %vm2904_vm1, %v6633_v11  ;;  %5725 = vst.msk [vmem:[#allocation2 + $0x171] sm:$0xff] %vm2904_vm1, %v5693_v25  ;;  %v6251_v5 = vadd.f32 %v6219_v31, %v6155_v28  ;;  %v6315_v60 = vmul.f32 0.125, %v5997_v58  ;;  %v6220_v53 = vmul.f32 0.25, %v5902_v27  ;;  %v6126_v24 = vmul.f32 0.125, %v6094_v2 }
 0x659   : > { %5760 = vst.msk [vmem:[#allocation2 + $0x173] sm:$0x40] %vm5745_vm4, %v5693_v25  ;;  %v6156_v59 = vadd.f32 %v6124_v23, %v6060_v20  ;;  %v6442_v56 = vadd.f32 %v6346_v8, %v5838_v62  ;;  %v6222_v21 = vmul.f32 0.25, %v6190_v26  ;;  %v5966_v51 = vadd.f32 %v5934_v22, %v5838_v62 }
 0x65a   : > { %v6347_v49 = vadd.f32 %v6315_v60, %v6251_v5  ;;  %v6061_v36 = vadd.f32 %v6029_v17, %v5965_v57  ;;  %v6412_v12 = vmul.f32 0.0625, %v6094_v2  ;;  %v6508_v19 = vmul.f32 0.125, %v6190_v26 }
 0x65b   : > { %v6252_v41 = vadd.f32 %v6220_v53, %v6156_v59  ;;  %v6538_v42 = vadd.f32 %v6442_v56, %v5934_v22  ;;  %v6414_v20 = vmul.f32 0.0625, %v6382_v9 }
 0x65d   : > { %v6095_v52 = vld [vmem:[#allocation2 + $0x188] sm:$0xff] }
 0x65e   : > { %v6191_v13 = vld [vmem:[#allocation2 + $0x189] sm:$0xff]  ;;  %v6127_v10 = vmul.f32 0.125, %v6095_v52  ;;  %v6413_v29 = vmul.f32 0.0625, %v6095_v52 }
 0x65f   : > { %v5770_v0 = vld [vmem:[#allocation2 + $0x170] sm:$0xff]  ;;  %v6286_v3 = vld [vmem:[#allocation2 + $0x182] sm:$0xff]  ;;  %v6223_v30 = vmul.f32 0.25, %v6191_v13  ;;  %v6509_v62 = vmul.f32 0.125, %v6191_v13 }
 0x660   : > { %v5771_v35 = vld [vmem:[#allocation2 + $0x178] sm:$0x3]  ;;  %5774 = vst.msk [vmem:[#allocation2 + $0x1a0] sm:$0xff] %vm2904_vm1, %v5770_v0  ;;  %v5839_v15 = vmul.f32 0.0625, %v5770_v0  ;;  %v5998_v48 = vld [vmem:[#allocation2 + $0x16a] sm:$0xff]  ;;  %v6125_v39 = vmul.f32 0.125, %v5770_v0 }
 0x661   : > { %v5903_v33 = vld [vmem:[#allocation2 + $0x171] sm:$0xff]  ;;  %5775 = vst.msk [vmem:[#allocation2 + $0x1a8] sm:$0x3] %vm2907_vm2, %v5771_v35  ;;  %v6030_v18 = vmul.f32 0.0625, %v5998_v48  ;;  %v6316_v40 = vmul.f32 0.125, %v5998_v48  ;;  %v6318_v55 = vmul.f32 0.125, %v6286_v3 }
 0x662   : > { %v5935_v46 = vmul.f32 0.125, %v5903_v33  ;;  %v5999_v47 = vld [vmem:[#allocation2 + $0x172] sm:$0xff]  ;;  %v6221_v44 = vmul.f32 0.25, %v5903_v33  ;;  %v6157_v50 = vadd.f32 %v6125_v39, %v6061_v36  ;;  %v6443_v63 = vadd.f32 %v6347_v49, %v5839_v15  ;;  %v6287_v61 = vld [vmem:[#allocation2 + $0x18a] sm:$0xff] }
 0x663   : > { %v6031_v54 = vmul.f32 0.0625, %v5999_v47  ;;  %v6062_v7 = vadd.f32 %v6030_v18, %v5966_v51  ;;  %v6348_v58 = vadd.f32 %v6316_v40, %v6252_v41  ;;  %v6634_v34 = vadd.f32 %v6538_v42, %v6030_v18 }
 0x664   : > { %v5967_v14 = vadd.f32 %v5935_v46, %v5839_v15  ;;  %v6253_v4 = vadd.f32 %v6221_v44, %v6157_v50  ;;  %v6317_v38 = vmul.f32 0.125, %v5999_v47  ;;  %v6539_v43 = vadd.f32 %v6443_v63, %v5935_v46 }
 0x665   : > { %v6158_v6 = vadd.f32 %v6126_v24, %v6062_v7  ;;  %v6444_v17 = vadd.f32 %v6412_v12, %v6348_v58  ;;  %6666 = vst.msk [vmem:[%s10071_s23 + $0xd0] sm:$0xff] %vm2904_vm1, %v6634_v34  ;;  %v6319_v11 = vmul.f32 0.125, %v6287_v61  ;;  %v6604_v23 = vmul.f32 0.0625, %v6286_v3 }
 0x666   : > { %v6063_v16 = vadd.f32 %v6031_v54, %v5967_v14  ;;  %v6349_v32 = vadd.f32 %v6317_v38, %v6253_v4  ;;  %v6635_v37 = vadd.f32 %v6539_v43, %v6031_v54  ;;  %v6605_v5 = vmul.f32 0.0625, %v6287_v61 }
 0x667   : > { %v6254_v45 = vadd.f32 %v6222_v21, %v6158_v6  ;;  %v6383_v28 = vld [vmem:[#allocation2 + $0x1a0] sm:$0xff]  ;;  %v6540_v25 = vadd.f32 %v6508_v19, %v6444_v17 }
 0x668   : > { %v6159_v1 = vadd.f32 %v6127_v10, %v6063_v16  ;;  %v6445_v31 = vadd.f32 %v6413_v29, %v6349_v32  ;;  %v6478_v27 = vld [vmem:[#allocation2 + $0x199] sm:$0xff]  ;;  %6667 = vst.msk [vmem:[%s10071_s23 + $0xd8] sm:$0xff] %vm2904_vm1, %v6635_v37  ;;  %v6479_v22 = vld [vmem:[#allocation2 + $0x1a1] sm:$0xff]  ;;  %v6415_v56 = vmul.f32 0.0625, %v6383_v28 }
 0x669   : > { %v6350_v2 = vadd.f32 %v6318_v55, %v6254_v45  ;;  %v6574_v60 = vld [vmem:[#allocation2 + $0x19a] sm:$0xff]  ;;  %v6636_v26 = vadd.f32 %v6604_v23, %v6540_v25  ;;  %v6510_v24 = vmul.f32 0.125, %v6478_v27  ;;  %v6575_v49 = vld [vmem:[#allocation2 + $0x1a2] sm:$0xff]  ;;  %v6511_v51 = vmul.f32 0.125, %v6479_v22 }
 0x66a   : > { %v6255_v8 = vadd.f32 %v6223_v30, %v6159_v1  ;;  %v6541_v57 = vadd.f32 %v6509_v62, %v6445_v31  ;;  %v6606_v0 = vmul.f32 0.0625, %v6574_v60  ;;  %v6607_v33 = vmul.f32 0.0625, %v6575_v49 }
 0x66b   : > { %v6446_v53 = vadd.f32 %v6414_v20, %v6350_v2  ;;  %6668 = vst.msk [vmem:[%s10071_s23 + $0xe0] sm:$0xff] %vm2904_vm1, %v6636_v26 }
 0x66c   : > { %v6351_v59 = vadd.f32 %v6319_v11, %v6255_v8  ;;  %v6637_v41 = vadd.f32 %v6605_v5, %v6541_v57 }
 0x66d   : > { %v6542_v42 = vadd.f32 %v6510_v24, %v6446_v53 }
 0x66e   : > { %v6447_v21 = vadd.f32 %v6415_v56, %v6351_v59  ;;  %6669 = vst.msk [vmem:[%s10071_s23 + $0xe8] sm:$0xff] %vm2904_vm1, %v6637_v41 }
 0x66f   : > { %v6638_v36 = vadd.f32 %v6606_v0, %v6542_v42 }
 0x670   : > { %v6543_v35 = vadd.f32 %v6511_v51, %v6447_v21 }
 0x671   : > { %6670 = vst.msk [vmem:[%s10071_s23 + $0xf0] sm:$0xff] %vm2904_vm1, %v6638_v36 }
 0x672   : > { %v6639_v15 = vadd.f32 %v6607_v33, %v6543_v35 }
 0x674   : > { %6671 = vst.msk [vmem:[%s10071_s23 + $0xf8] sm:$0xff] %vm2904_vm1, %v6639_v15 }
 0x675 PF: > { %s15_s18 = sadd.s32 1, %s8742_s18  }
 0x676   : > { %p12_p4 = scmp.ge.s32.totalorder %s15_s18, 4  }
 0x678   :  { %14 = sbr.rel (!%p12_p4) target bundleno = 1 (0x1), region = 92 }

</bundles_post_ra>
